<compile_context>
chip_gen: v7x
topology: tpu7x:2x2x1
jax: 0.10.0
libtpu: 0.0.40
codegen_flags: <defaults>
</compile_context>

<pallas_src>
import numpy as np
import jax
import jax.numpy as jnp
from jax import lax
from jax.experimental import pallas as pl
from jax.experimental.pallas import tpu as pltpu


# ----------------------------------------------------------------------------
# Host-side folded matrices (numpy, float64 -> cast to f32 once)
# ----------------------------------------------------------------------------
def _cubic_weights(d):
    """Bicubic taps, exactly like PyrUpBicubic2d.__init__ (a=-0.75)."""
    x = np.abs(d + np.arange(-1, 3, dtype=np.float64))
    a = -0.75
    return np.where(
        x < 1, (a + 2) * x ** 3 - (a + 3) * x ** 2 + 1,
        np.where(x < 2, a * x ** 3 - 5 * a * x ** 2 + 8 * a * x - 4 * a, 0.0))


_WE = _cubic_weights(-0.25)          # even phase
_WO = _cubic_weights(-0.25 - 0.5)    # odd phase


def _pyrup_full_matrix(size):
    """(2*(size+1), size): full interleaved PyrUpBicubic2d output (before the
    crop), including the replicate-by-2 edge padding, as a 1-D linear operator."""
    m = np.zeros((2 * (size + 1), size), np.float64)
    for Y in range(2 * (size + 1)):
        i, p = Y // 2, Y % 2
        wts = _WE if p == 0 else _WO
        for d in range(4):
            r = min(max(i + d - 2, 0), size - 1)
            m[Y, r] += wts[d]
    return m


def _up1_pad_matrix(size):
    """PyrUp x2, then F.pad(-1) crop, then conv1's zero pad of 1 -> rows 0 and
    2*size+1 of the full matrix become zero rows."""
    m = _pyrup_full_matrix(size).copy()
    m[0, :] = 0.0
    m[-1, :] = 0.0
    return m                                   # (2*size+2, size)


def _bilinear_matrix(in_size, out_size):
    """F.interpolate(mode='bilinear', align_corners=False) as a matrix."""
    scale = in_size / out_size
    i = np.arange(out_size, dtype=np.float64)
    src = np.maximum((i + 0.5) * scale - 0.5, 0.0)
    x0 = np.minimum(np.floor(src).astype(np.int64), in_size - 1)
    x1 = np.minimum(x0 + 1, in_size - 1)
    w1 = src - x0
    w0 = 1.0 - w1
    r = np.zeros((out_size, in_size), np.float64)
    r[np.arange(out_size), x0] += w0
    r[np.arange(out_size), x1] += w1
    return r


def _up2_resize_matrix(size, out_size):
    """PyrUp x2 (+ crop) followed by the bilinear resize, folded: (out, size)."""
    full = _pyrup_full_matrix(size)            # (2*size+2, size)
    cropped = full[1:-1, :]                    # (2*size, size)
    return _bilinear_matrix(2 * size, out_size) @ cropped


# ----------------------------------------------------------------------------
# Fused Pallas kernel (one grid step per batch image)
# ----------------------------------------------------------------------------
def _make_fused_kernel(cmid, s_mid, lq, off, wpad):
    def kernel(x_ref, k1t_ref, w1m_ref, b1_ref, k2t_ref, w2m_ref, b2_ref, o_ref):
        x = x_ref[...]                                           # (cin, h*w)

        # ---- up1 + conv1 (matrix-folded im2col, 9 taps) + bias + ReLU ----
        acc = jnp.zeros((cmid, s_mid), jnp.float32)
        for t in range(9):
            k1 = k1t_ref[:, t * s_mid:(t + 1) * s_mid]           # (h*w, s_mid)
            patch = jnp.dot(x, k1, preferred_element_type=jnp.float32)   # (cin, s_mid)
            acc = acc + jnp.dot(w1m_ref[t], patch,
                                preferred_element_type=jnp.float32)      # (cmid, s_mid)
        h1 = jnp.maximum(acc + b1_ref[...], 0.0)                 # (cmid, s_mid)

        # ---- up2 + bilinear resize + conv2's zero pad (one matmul) ----
        resp = jnp.dot(h1, k2t_ref[...],
                       preferred_element_type=jnp.float32)       # (cmid, n_pad)

        # ---- conv2: channel mix (matmul) + 9 spatial tap slice-adds ----
        mix = jnp.dot(w2m_ref[...], resp,
                      preferred_element_type=jnp.float32)        # (9, n_pad)
        out = jnp.zeros((1, lq), jnp.float32) + b2_ref[0]
        for t in range(9):
            ky, kx = t // 3, t % 3
            s = (ky - 1) * wpad + (kx - 1)
            out = out + mix[t:t + 1, off + s: off + s + lq]
        o_ref[...] = out

    return kernel


def upsampler_forward(x, params, image_size):
    """BackwardCompatibleUpsampler.forward, x: (N, C, H, W) float32 NCHW."""
    n, cin, h, w = x.shape
    cmid = params['w1'].shape[-1]
    hout, wout = image_size[-2:]
    h2, w2 = 2 * h, 2 * w
    s_in, s_mid = h * w, h2 * w2
    hpad, wpad = hout + 2, wout + 2
    n_pad = hpad * wpad
    off = wpad + 1
    lq = n_pad - 2 * off

    # ---- host-side folded matrices ----
    m1r = _up1_pad_matrix(h)                                     # (2h+2, h)
    m1c = _up1_pad_matrix(w)                                     # (2w+2, w)
    k1t = np.concatenate(
        [np.kron(m1r[ky:ky + h2, :], m1c[kx:kx + w2, :]).T
         for ky in range(3) for kx in range(3)], axis=1)         # (h*w, 9*s_mid)

    m2r = _up2_resize_matrix(h2, hout)                           # (hout, 2h)
    m2c = _up2_resize_matrix(w2, wout)                           # (wout, 2w)
    m2r_p = np.zeros((hpad, h2), np.float64); m2r_p[1:-1] = m2r
    m2c_p = np.zeros((wpad, w2), np.float64); m2c_p[1:-1] = m2c
    k2t = np.kron(m2r_p, m2c_p).T                                # (s_mid, n_pad)

    w1m = jnp.transpose(params['w1'].astype(jnp.float32).reshape(9, cin, cmid),
                        (0, 2, 1))                               # (9, cmid, cin)
    b1 = params['b1'].astype(jnp.float32).reshape(cmid, 1)
    w2m = params['w2'].astype(jnp.float32).reshape(9, cmid)      # (9, cmid)
    b2 = params['b2'].astype(jnp.float32).reshape(1)

    x_flat = x.astype(jnp.float32).reshape(n, cin, s_in)

    out = pl.pallas_call(
        _make_fused_kernel(cmid, s_mid, lq, off, wpad),
        out_shape=jax.ShapeDtypeStruct((n, 1, lq), jnp.float32),
        grid=(n,),
        in_specs=[
            pl.BlockSpec((None, cin, s_in), lambda i: (i, 0, 0)),
            pl.BlockSpec((s_in, 9 * s_mid), lambda i: (0, 0)),
            pl.BlockSpec((9, cmid, cin), lambda i: (0, 0, 0)),
            pl.BlockSpec((cmid, 1), lambda i: (0, 0)),
            pl.BlockSpec((s_mid, n_pad), lambda i: (0, 0)),
            pl.BlockSpec((9, cmid), lambda i: (0, 0)),
            pl.BlockSpec(memory_space=pltpu.MemorySpace.SMEM),
        ],
        out_specs=pl.BlockSpec((None, 1, lq), lambda i: (i, 0, 0)),
        compiler_params=pltpu.CompilerParams(dimension_semantics=("parallel",)),
    )(x_flat, jnp.asarray(k1t, jnp.float32), w1m, b1,
      jnp.asarray(k2t, jnp.float32), w2m, b2)

    # tiny XLA unpack: padded-flat (stride wout+2) -> (n, 1, hout, wout)
    out = out.reshape(n, lq)
    out = jnp.pad(out, ((0, 0), (off, off)))
    out = out.reshape(n, hpad, wpad)[:, 1:-1, 1:-1]
    return out[:, None, :, :]


# ----------------------------------------------------------------------------
# Pure-JAX reference (independent of the folded matrices) for verification
# ----------------------------------------------------------------------------
def _ref_pyrup(x):
    n, c, h, w = x.shape
    a = jnp.pad(x, ((0, 0), (0, 0), (2, 2), (2, 2)), mode='edge')

    def dw(wv, wh):
        k = jnp.asarray(np.outer(wv, wh), jnp.float32)
        k = jnp.tile(k[None, None], (c, 1, 1, 1))
        return lax.conv_general_dilated(
            a, k, (1, 1), 'VALID',
            dimension_numbers=('NCHW', 'OIHW', 'NCHW'), feature_group_count=c)

    i00, i01 = dw(_WE, _WE), dw(_WE, _WO)
    i10, i11 = dw(_WO, _WE), dw(_WO, _WO)
    hp1, wp1 = h + 1, w + 1
    j0 = jnp.stack([i00, i01], axis=-1).reshape(n, c, hp1, 2 * wp1)
    j1 = jnp.stack([i10, i11], axis=-1).reshape(n, c, hp1, 2 * wp1)
    out = jnp.stack([j0, j1], axis=-2).reshape(n, c, 2 * hp1, 2 * wp1)
    return out[:, :, 1:-1, 1:-1]


def _ref_conv3x3(x, w_hwio, b, relu):
    w = jnp.transpose(w_hwio, (3, 2, 0, 1))
    y = lax.conv_general_dilated(x, w, (1, 1), ((1, 1), (1, 1)),
                                 dimension_numbers=('NCHW', 'OIHW', 'NCHW'))
    y = y + b.reshape(1, -1, 1, 1)
    return jnp.maximum(y, 0.0) if relu else y


def ref_forward(x, params, image_size):
    x = _ref_pyrup(x)
    x = _ref_conv3x3(x, params['w1'], params['b1'], True)
    x = _ref_pyrup(x)
    hout, wout = image_size[-2:]
    rh = jnp.asarray(_bilinear_matrix(x.shape[2], hout), jnp.float32)
    rw = jnp.asarray(_bilinear_matrix(x.shape[3], wout), jnp.float32)
    x = jnp.einsum('nchw,Hh,Ww->ncHW', x, rh, rw)
    x = _ref_conv3x3(x, params['w2'], params['b2'], False)
    return x


# ----------------------------------------------------------------------------
if __name__ == "__main__":
    key = jax.random.PRNGKey(0)
    N, C, H, W = 2, 16, 8, 8                   # in_channels = 16
    image_size = (40, 40)                       # F.interpolate target (H, W)

    k1, k2, k3, k4, k5 = jax.random.split(key, 5)
    x = jax.random.normal(k1, (N, C, H, W), jnp.float32)
    params = dict(
        w1=jax.random.normal(k2, (3, 3, C, C // 2), jnp.float32) * 0.05,
        b1=jax.random.normal(k3, (C // 2,), jnp.float32) * 0.05,
        w2=jax.random.normal(k4, (3, 3, C // 2, 1), jnp.float32) * 0.05,
        b2=jax.random.normal(k5, (1,), jnp.float32) * 0.05,
    )

    out = jax.block_until_ready(upsampler_forward(x, params, image_size))
    assert out.shape == (N, 1, image_size[0], image_size[1]), out.shape

    ref = jax.block_until_ready(ref_forward(x, params, image_size))
    np.testing.assert_allclose(np.asarray(out), np.asarray(ref),
                               rtol=2e-3, atol=2e-3)
    print("KERNEL_OK")
</pallas_src>

<mosaic_0001>
module attributes {stable_mosaic.version = 11 : i64} {
  func.func @kernel(%arg0: i32, %arg1: memref<1x16x64xf32, #tpu.memory_space<vmem>>, %arg2: memref<64x2304xf32, #tpu.memory_space<vmem>>, %arg3: memref<9x8x16xf32, #tpu.memory_space<vmem>>, %arg4: memref<8x1xf32, #tpu.memory_space<vmem>>, %arg5: memref<256x1764xf32, #tpu.memory_space<vmem>>, %arg6: memref<9x8xf32, #tpu.memory_space<vmem>>, %arg7: memref<1xf32, #tpu.memory_space<smem>>, %arg8: memref<1x1x1678xf32, #tpu.memory_space<vmem>>) attributes {dimension_semantics = [#tpu.dimension_semantics<parallel>], iteration_bounds = array<i64: 2>, scalar_prefetch = 0 : i64, scratch_operands = 0 : i64, tpu.core_type = #tpu.core_type<tc>, window_params = [{transform_indices = @transform_0, window_bounds = array<i64: 1, 16, 64>}, {pipeline_mode = #tpu.pipeline_mode<synchronous>, transform_indices = @transform_1, window_bounds = array<i64: 64, 2304>}, {pipeline_mode = #tpu.pipeline_mode<synchronous>, transform_indices = @transform_2, window_bounds = array<i64: 9, 8, 16>}, {pipeline_mode = #tpu.pipeline_mode<synchronous>, transform_indices = @transform_3, window_bounds = array<i64: 8, 1>}, {pipeline_mode = #tpu.pipeline_mode<synchronous>, transform_indices = @transform_4, window_bounds = array<i64: 256, 1764>}, {pipeline_mode = #tpu.pipeline_mode<synchronous>, transform_indices = @transform_5, window_bounds = array<i64: 9, 8>}, {transform_indices = @transform_6, window_bounds = array<i64: 1>}, {transform_indices = @transform_7, window_bounds = array<i64: 1, 1, 1678>}]} {
    %c0 = arith.constant 0 : index
    %c0_0 = arith.constant 0 : index
    %c0_1 = arith.constant 0 : index
    %0 = vector.load %arg1[%c0, %c0_0, %c0_1] : memref<1x16x64xf32, #tpu.memory_space<vmem>>, vector<1x16x64xf32>
    %1 = vector.shape_cast %0 : vector<1x16x64xf32> to vector<16x64xf32>
    %cst = arith.constant 0.000000e+00 : f32
    %2 = vector.broadcast %cst : f32 to vector<8x256xf32>
    %c0_2 = arith.constant 0 : index
    %c0_3 = arith.constant 0 : index
    %3 = vector.load %arg2[%c0_2, %c0_3] : memref<64x2304xf32, #tpu.memory_space<vmem>>, vector<64x256xf32>
    %cst_4 = arith.constant dense<0.000000e+00> : vector<16x256xf32>
    %4 = tpu.matmul %1, %3, %cst_4 {dimension_numbers = #tpu.dot_dimension_numbers<[1], [0], [0], [1], [0, 0, 1, 1], [], []>} : vector<16x64xf32>, vector<64x256xf32>, vector<16x256xf32> -> vector<16x256xf32>
    %c0_5 = arith.constant 0 : index
    %c0_6 = arith.constant 0 : index
    %c0_7 = arith.constant 0 : index
    %5 = vector.load %arg3[%c0_5, %c0_6, %c0_7] : memref<9x8x16xf32, #tpu.memory_space<vmem>>, vector<1x8x16xf32>
    %6 = vector.shape_cast %5 : vector<1x8x16xf32> to vector<8x16xf32>
    %cst_8 = arith.constant dense<0.000000e+00> : vector<8x256xf32>
    %7 = tpu.matmul %6, %4, %cst_8 {dimension_numbers = #tpu.dot_dimension_numbers<[1], [0], [0], [1], [0, 0, 1, 1], [], []>} : vector<8x16xf32>, vector<16x256xf32>, vector<8x256xf32> -> vector<8x256xf32>
    %8 = arith.addf %2, %7 : vector<8x256xf32>
    %c0_9 = arith.constant 0 : index
    %c256 = arith.constant 256 : index
    %9 = vector.load %arg2[%c0_9, %c256] : memref<64x2304xf32, #tpu.memory_space<vmem>>, vector<64x256xf32>
    %cst_10 = arith.constant dense<0.000000e+00> : vector<16x256xf32>
    %10 = tpu.matmul %1, %9, %cst_10 {dimension_numbers = #tpu.dot_dimension_numbers<[1], [0], [0], [1], [0, 0, 1, 1], [], []>} : vector<16x64xf32>, vector<64x256xf32>, vector<16x256xf32> -> vector<16x256xf32>
    %c1 = arith.constant 1 : index
    %c0_11 = arith.constant 0 : index
    %c0_12 = arith.constant 0 : index
    %11 = vector.load %arg3[%c1, %c0_11, %c0_12] : memref<9x8x16xf32, #tpu.memory_space<vmem>>, vector<1x8x16xf32>
    %12 = vector.shape_cast %11 : vector<1x8x16xf32> to vector<8x16xf32>
    %cst_13 = arith.constant dense<0.000000e+00> : vector<8x256xf32>
    %13 = tpu.matmul %12, %10, %cst_13 {dimension_numbers = #tpu.dot_dimension_numbers<[1], [0], [0], [1], [0, 0, 1, 1], [], []>} : vector<8x16xf32>, vector<16x256xf32>, vector<8x256xf32> -> vector<8x256xf32>
    %14 = arith.addf %8, %13 : vector<8x256xf32>
    %c0_14 = arith.constant 0 : index
    %c512 = arith.constant 512 : index
    %15 = vector.load %arg2[%c0_14, %c512] : memref<64x2304xf32, #tpu.memory_space<vmem>>, vector<64x256xf32>
    %cst_15 = arith.constant dense<0.000000e+00> : vector<16x256xf32>
    %16 = tpu.matmul %1, %15, %cst_15 {dimension_numbers = #tpu.dot_dimension_numbers<[1], [0], [0], [1], [0, 0, 1, 1], [], []>} : vector<16x64xf32>, vector<64x256xf32>, vector<16x256xf32> -> vector<16x256xf32>
    %c2 = arith.constant 2 : index
    %c0_16 = arith.constant 0 : index
    %c0_17 = arith.constant 0 : index
    %17 = vector.load %arg3[%c2, %c0_16, %c0_17] : memref<9x8x16xf32, #tpu.memory_space<vmem>>, vector<1x8x16xf32>
    %18 = vector.shape_cast %17 : vector<1x8x16xf32> to vector<8x16xf32>
    %cst_18 = arith.constant dense<0.000000e+00> : vector<8x256xf32>
    %19 = tpu.matmul %18, %16, %cst_18 {dimension_numbers = #tpu.dot_dimension_numbers<[1], [0], [0], [1], [0, 0, 1, 1], [], []>} : vector<8x16xf32>, vector<16x256xf32>, vector<8x256xf32> -> vector<8x256xf32>
    %20 = arith.addf %14, %19 : vector<8x256xf32>
    %c0_19 = arith.constant 0 : index
    %c768 = arith.constant 768 : index
    %21 = vector.load %arg2[%c0_19, %c768] : memref<64x2304xf32, #tpu.memory_space<vmem>>, vector<64x256xf32>
    %cst_20 = arith.constant dense<0.000000e+00> : vector<16x256xf32>
    %22 = tpu.matmul %1, %21, %cst_20 {dimension_numbers = #tpu.dot_dimension_numbers<[1], [0], [0], [1], [0, 0, 1, 1], [], []>} : vector<16x64xf32>, vector<64x256xf32>, vector<16x256xf32> -> vector<16x256xf32>
    %c3 = arith.constant 3 : index
    %c0_21 = arith.constant 0 : index
    %c0_22 = arith.constant 0 : index
    %23 = vector.load %arg3[%c3, %c0_21, %c0_22] : memref<9x8x16xf32, #tpu.memory_space<vmem>>, vector<1x8x16xf32>
    %24 = vector.shape_cast %23 : vector<1x8x16xf32> to vector<8x16xf32>
    %cst_23 = arith.constant dense<0.000000e+00> : vector<8x256xf32>
    %25 = tpu.matmul %24, %22, %cst_23 {dimension_numbers = #tpu.dot_dimension_numbers<[1], [0], [0], [1], [0, 0, 1, 1], [], []>} : vector<8x16xf32>, vector<16x256xf32>, vector<8x256xf32> -> vector<8x256xf32>
    %26 = arith.addf %20, %25 : vector<8x256xf32>
    %c0_24 = arith.constant 0 : index
    %c1024 = arith.constant 1024 : index
    %27 = vector.load %arg2[%c0_24, %c1024] : memref<64x2304xf32, #tpu.memory_space<vmem>>, vector<64x256xf32>
    %cst_25 = arith.constant dense<0.000000e+00> : vector<16x256xf32>
    %28 = tpu.matmul %1, %27, %cst_25 {dimension_numbers = #tpu.dot_dimension_numbers<[1], [0], [0], [1], [0, 0, 1, 1], [], []>} : vector<16x64xf32>, vector<64x256xf32>, vector<16x256xf32> -> vector<16x256xf32>
    %c4 = arith.constant 4 : index
    %c0_26 = arith.constant 0 : index
    %c0_27 = arith.constant 0 : index
    %29 = vector.load %arg3[%c4, %c0_26, %c0_27] : memref<9x8x16xf32, #tpu.memory_space<vmem>>, vector<1x8x16xf32>
    %30 = vector.shape_cast %29 : vector<1x8x16xf32> to vector<8x16xf32>
    %cst_28 = arith.constant dense<0.000000e+00> : vector<8x256xf32>
    %31 = tpu.matmul %30, %28, %cst_28 {dimension_numbers = #tpu.dot_dimension_numbers<[1], [0], [0], [1], [0, 0, 1, 1], [], []>} : vector<8x16xf32>, vector<16x256xf32>, vector<8x256xf32> -> vector<8x256xf32>
    %32 = arith.addf %26, %31 : vector<8x256xf32>
    %c0_29 = arith.constant 0 : index
    %c1280 = arith.constant 1280 : index
    %33 = vector.load %arg2[%c0_29, %c1280] : memref<64x2304xf32, #tpu.memory_space<vmem>>, vector<64x256xf32>
    %cst_30 = arith.constant dense<0.000000e+00> : vector<16x256xf32>
    %34 = tpu.matmul %1, %33, %cst_30 {dimension_numbers = #tpu.dot_dimension_numbers<[1], [0], [0], [1], [0, 0, 1, 1], [], []>} : vector<16x64xf32>, vector<64x256xf32>, vector<16x256xf32> -> vector<16x256xf32>
    %c5 = arith.constant 5 : index
    %c0_31 = arith.constant 0 : index
    %c0_32 = arith.constant 0 : index
    %35 = vector.load %arg3[%c5, %c0_31, %c0_32] : memref<9x8x16xf32, #tpu.memory_space<vmem>>, vector<1x8x16xf32>
    %36 = vector.shape_cast %35 : vector<1x8x16xf32> to vector<8x16xf32>
    %cst_33 = arith.constant dense<0.000000e+00> : vector<8x256xf32>
    %37 = tpu.matmul %36, %34, %cst_33 {dimension_numbers = #tpu.dot_dimension_numbers<[1], [0], [0], [1], [0, 0, 1, 1], [], []>} : vector<8x16xf32>, vector<16x256xf32>, vector<8x256xf32> -> vector<8x256xf32>
    %38 = arith.addf %32, %37 : vector<8x256xf32>
    %c0_34 = arith.constant 0 : index
    %c1536 = arith.constant 1536 : index
    %39 = vector.load %arg2[%c0_34, %c1536] : memref<64x2304xf32, #tpu.memory_space<vmem>>, vector<64x256xf32>
    %cst_35 = arith.constant dense<0.000000e+00> : vector<16x256xf32>
    %40 = tpu.matmul %1, %39, %cst_35 {dimension_numbers = #tpu.dot_dimension_numbers<[1], [0], [0], [1], [0, 0, 1, 1], [], []>} : vector<16x64xf32>, vector<64x256xf32>, vector<16x256xf32> -> vector<16x256xf32>
    %c6 = arith.constant 6 : index
    %c0_36 = arith.constant 0 : index
    %c0_37 = arith.constant 0 : index
    %41 = vector.load %arg3[%c6, %c0_36, %c0_37] : memref<9x8x16xf32, #tpu.memory_space<vmem>>, vector<1x8x16xf32>
    %42 = vector.shape_cast %41 : vector<1x8x16xf32> to vector<8x16xf32>
    %cst_38 = arith.constant dense<0.000000e+00> : vector<8x256xf32>
    %43 = tpu.matmul %42, %40, %cst_38 {dimension_numbers = #tpu.dot_dimension_numbers<[1], [0], [0], [1], [0, 0, 1, 1], [], []>} : vector<8x16xf32>, vector<16x256xf32>, vector<8x256xf32> -> vector<8x256xf32>
    %44 = arith.addf %38, %43 : vector<8x256xf32>
    %c0_39 = arith.constant 0 : index
    %c1792 = arith.constant 1792 : index
    %45 = vector.load %arg2[%c0_39, %c1792] : memref<64x2304xf32, #tpu.memory_space<vmem>>, vector<64x256xf32>
    %cst_40 = arith.constant dense<0.000000e+00> : vector<16x256xf32>
    %46 = tpu.matmul %1, %45, %cst_40 {dimension_numbers = #tpu.dot_dimension_numbers<[1], [0], [0], [1], [0, 0, 1, 1], [], []>} : vector<16x64xf32>, vector<64x256xf32>, vector<16x256xf32> -> vector<16x256xf32>
    %c7 = arith.constant 7 : index
    %c0_41 = arith.constant 0 : index
    %c0_42 = arith.constant 0 : index
    %47 = vector.load %arg3[%c7, %c0_41, %c0_42] : memref<9x8x16xf32, #tpu.memory_space<vmem>>, vector<1x8x16xf32>
    %48 = vector.shape_cast %47 : vector<1x8x16xf32> to vector<8x16xf32>
    %cst_43 = arith.constant dense<0.000000e+00> : vector<8x256xf32>
    %49 = tpu.matmul %48, %46, %cst_43 {dimension_numbers = #tpu.dot_dimension_numbers<[1], [0], [0], [1], [0, 0, 1, 1], [], []>} : vector<8x16xf32>, vector<16x256xf32>, vector<8x256xf32> -> vector<8x256xf32>
    %50 = arith.addf %44, %49 : vector<8x256xf32>
    %c0_44 = arith.constant 0 : index
    %c2048 = arith.constant 2048 : index
    %51 = vector.load %arg2[%c0_44, %c2048] : memref<64x2304xf32, #tpu.memory_space<vmem>>, vector<64x256xf32>
    %cst_45 = arith.constant dense<0.000000e+00> : vector<16x256xf32>
    %52 = tpu.matmul %1, %51, %cst_45 {dimension_numbers = #tpu.dot_dimension_numbers<[1], [0], [0], [1], [0, 0, 1, 1], [], []>} : vector<16x64xf32>, vector<64x256xf32>, vector<16x256xf32> -> vector<16x256xf32>
    %c8 = arith.constant 8 : index
    %c0_46 = arith.constant 0 : index
    %c0_47 = arith.constant 0 : index
    %53 = vector.load %arg3[%c8, %c0_46, %c0_47] : memref<9x8x16xf32, #tpu.memory_space<vmem>>, vector<1x8x16xf32>
    %54 = vector.shape_cast %53 : vector<1x8x16xf32> to vector<8x16xf32>
    %cst_48 = arith.constant dense<0.000000e+00> : vector<8x256xf32>
    %55 = tpu.matmul %54, %52, %cst_48 {dimension_numbers = #tpu.dot_dimension_numbers<[1], [0], [0], [1], [0, 0, 1, 1], [], []>} : vector<8x16xf32>, vector<16x256xf32>, vector<8x256xf32> -> vector<8x256xf32>
    %56 = arith.addf %50, %55 : vector<8x256xf32>
    %c0_49 = arith.constant 0 : index
    %c0_50 = arith.constant 0 : index
    %57 = vector.load %arg4[%c0_49, %c0_50] : memref<8x1xf32, #tpu.memory_space<vmem>>, vector<8x1xf32>
    %58 = vector.broadcast %57 : vector<8x1xf32> to vector<8x256xf32>
    %59 = arith.addf %56, %58 : vector<8x256xf32>
    %cst_51 = arith.constant 0.000000e+00 : f32
    %60 = vector.broadcast %cst_51 : f32 to vector<8x256xf32>
    %61 = arith.maximumf %59, %60 : vector<8x256xf32>
    %c0_52 = arith.constant 0 : index
    %c0_53 = arith.constant 0 : index
    %62 = vector.load %arg5[%c0_52, %c0_53] : memref<256x1764xf32, #tpu.memory_space<vmem>>, vector<256x1764xf32>
    %cst_54 = arith.constant dense<0.000000e+00> : vector<8x1764xf32>
    %63 = tpu.matmul %61, %62, %cst_54 {dimension_numbers = #tpu.dot_dimension_numbers<[1], [0], [0], [1], [0, 0, 1, 1], [], []>} : vector<8x256xf32>, vector<256x1764xf32>, vector<8x1764xf32> -> vector<8x1764xf32>
    %c0_55 = arith.constant 0 : index
    %c0_56 = arith.constant 0 : index
    %64 = vector.load %arg6[%c0_55, %c0_56] : memref<9x8xf32, #tpu.memory_space<vmem>>, vector<9x8xf32>
    %cst_57 = arith.constant dense<0.000000e+00> : vector<9x1764xf32>
    %65 = tpu.matmul %64, %63, %cst_57 {dimension_numbers = #tpu.dot_dimension_numbers<[1], [0], [0], [1], [0, 0, 1, 1], [], []>} : vector<9x8xf32>, vector<8x1764xf32>, vector<9x1764xf32> -> vector<9x1764xf32>
    %cst_58 = arith.constant 0.000000e+00 : f32
    %66 = vector.broadcast %cst_58 : f32 to vector<1x1678xf32>
    %c0_59 = arith.constant 0 : index
    %67 = memref.load %arg7[%c0_59] : memref<1xf32, #tpu.memory_space<smem>>
    %68 = vector.broadcast %67 : f32 to vector<1x1678xf32>
    %69 = arith.addf %66, %68 : vector<1x1678xf32>
    %70 = vector.extract_strided_slice %65 {offsets = [0, 0], sizes = [1, 1678], strides = [1, 1]} : vector<9x1764xf32> to vector<1x1678xf32>
    %71 = arith.addf %69, %70 : vector<1x1678xf32>
    %72 = vector.extract_strided_slice %65 {offsets = [1, 1], sizes = [1, 1678], strides = [1, 1]} : vector<9x1764xf32> to vector<1x1678xf32>
    %73 = arith.addf %71, %72 : vector<1x1678xf32>
    %74 = vector.extract_strided_slice %65 {offsets = [2, 2], sizes = [1, 1678], strides = [1, 1]} : vector<9x1764xf32> to vector<1x1678xf32>
    %75 = arith.addf %73, %74 : vector<1x1678xf32>
    %76 = vector.extract_strided_slice %65 {offsets = [3, 42], sizes = [1, 1678], strides = [1, 1]} : vector<9x1764xf32> to vector<1x1678xf32>
    %77 = arith.addf %75, %76 : vector<1x1678xf32>
    %78 = vector.extract_strided_slice %65 {offsets = [4, 43], sizes = [1, 1678], strides = [1, 1]} : vector<9x1764xf32> to vector<1x1678xf32>
    %79 = arith.addf %77, %78 : vector<1x1678xf32>
    %80 = vector.extract_strided_slice %65 {offsets = [5, 44], sizes = [1, 1678], strides = [1, 1]} : vector<9x1764xf32> to vector<1x1678xf32>
    %81 = arith.addf %79, %80 : vector<1x1678xf32>
    %82 = vector.extract_strided_slice %65 {offsets = [6, 84], sizes = [1, 1678], strides = [1, 1]} : vector<9x1764xf32> to vector<1x1678xf32>
    %83 = arith.addf %81, %82 : vector<1x1678xf32>
    %84 = vector.extract_strided_slice %65 {offsets = [7, 85], sizes = [1, 1678], strides = [1, 1]} : vector<9x1764xf32> to vector<1x1678xf32>
    %85 = arith.addf %83, %84 : vector<1x1678xf32>
    %86 = vector.extract_strided_slice %65 {offsets = [8, 86], sizes = [1, 1678], strides = [1, 1]} : vector<9x1764xf32> to vector<1x1678xf32>
    %87 = arith.addf %85, %86 : vector<1x1678xf32>
    %c0_60 = arith.constant 0 : index
    %c0_61 = arith.constant 0 : index
    %c0_62 = arith.constant 0 : index
    %88 = vector.load %arg8[%c0_60, %c0_61, %c0_62] : memref<1x1x1678xf32, #tpu.memory_space<vmem>>, vector<1x1x1678xf32>
    %89 = vector.shape_cast %88 : vector<1x1x1678xf32> to vector<1x1678xf32>
    %90 = vector.shape_cast %87 : vector<1x1678xf32> to vector<1x1x1678xf32>
    tpu.vector_store %arg8[%c0_60, %c0_61, %c0_62], %90 {strides = array<i32>} : memref<1x1x1678xf32, #tpu.memory_space<vmem>>, vector<1x1x1678xf32>,
    return
  }
  func.func @transform_0(%arg0: i32) -> (i32, i32, i32) {
    %c0_i32 = arith.constant 0 : i32
    %c0_i32_0 = arith.constant 0 : i32
    %c0_i32_1 = arith.constant 0 : i32
    return %arg0, %c0_i32, %c0_i32_0 : i32, i32, i32
  }
  func.func @transform_1(%arg0: i32) -> (i32, i32) {
    %c0_i32 = arith.constant 0 : i32
    %c0_i32_0 = arith.constant 0 : i32
    %c0_i32_1 = arith.constant 0 : i32
    return %c0_i32, %c0_i32_0 : i32, i32
  }
  func.func @transform_2(%arg0: i32) -> (i32, i32, i32) {
    %c0_i32 = arith.constant 0 : i32
    %c0_i32_0 = arith.constant 0 : i32
    %c0_i32_1 = arith.constant 0 : i32
    %c0_i32_2 = arith.constant 0 : i32
    return %c0_i32, %c0_i32_0, %c0_i32_1 : i32, i32, i32
  }
  func.func @transform_3(%arg0: i32) -> (i32, i32) {
    %c0_i32 = arith.constant 0 : i32
    %c0_i32_0 = arith.constant 0 : i32
    %c0_i32_1 = arith.constant 0 : i32
    return %c0_i32, %c0_i32_0 : i32, i32
  }
  func.func @transform_4(%arg0: i32) -> (i32, i32) {
    %c0_i32 = arith.constant 0 : i32
    %c0_i32_0 = arith.constant 0 : i32
    %c0_i32_1 = arith.constant 0 : i32
    return %c0_i32, %c0_i32_0 : i32, i32
  }
  func.func @transform_5(%arg0: i32) -> (i32, i32) {
    %c0_i32 = arith.constant 0 : i32
    %c0_i32_0 = arith.constant 0 : i32
    %c0_i32_1 = arith.constant 0 : i32
    return %c0_i32, %c0_i32_0 : i32, i32
  }
  func.func @transform_6(%arg0: i32) -> i32 {
    %c0_i32 = arith.constant 0 : i32
    %c0_i32_0 = arith.constant 0 : i32
    return %c0_i32 : i32
  }
  func.func @transform_7(%arg0: i32) -> (i32, i32, i32) {
    %c0_i32 = arith.constant 0 : i32
    %c0_i32_0 = arith.constant 0 : i32
    %c0_i32_1 = arith.constant 0 : i32
    return %arg0, %c0_i32, %c0_i32_0 : i32, i32, i32
  }
}

</mosaic_0001>

<bundles_post_ra>
// kernel: tpu_custom_call.1
= control target key start
LH: loop header
LB: loop body
LE: loop exit
PB: predicated region body
PF: predicated region fallthrough
CT: control target
= control target key end

     0   :  { %s7776_s0 = inlined_call_operand.vmem [shape: f32[2,16,64], index: 0, kind: input, shape index: {}]   ;;  %s7777_s1 = inlined_call_operand.vmem [shape: f32[64,2304], index: 1, kind: input, shape index: {}]   ;;  %s7778_s2 = inlined_call_operand.vmem [shape: f32[9,8,16], index: 2, kind: input, shape index: {}]   ;;  %s7779_s3 = inlined_call_operand.vmem [shape: f32[8,1], index: 3, kind: input, shape index: {}]   ;;  %s7780_s4 = inlined_call_operand.vmem [shape: f32[256,1764], index: 4, kind: input, shape index: {}]   ;;  %s7781_s5 = inlined_call_operand.vmem [shape: f32[9,8], index: 5, kind: input, shape index: {}]   ;;  %s7782_s6 = inlined_call_operand.<no memory space> [shape: f32[1], index: 6, kind: input, shape index: {}]   ;;  %s7783_s7 = inlined_call_operand.hbm [shape: f32[2,1,1678], index: 7, kind: output, shape index: {}]  }
   0x1   :  { %12 = sst [smem:[#allocation2]] %s7782_s6 }
   0x2   :  { %13 = vsyncpa [#allocation4], 0 }
   0x3   :  { %15 = vsyncpa [#allocation4 + $0x1], 0  ;;  %s5088_s26 = smov 0   ;;  %s5090_s27 = smov 0  }
   0x4   :  { %s5092_s28 = smov 0   ;;  %s5094_s29 = smov 0  }
   0x5 LB: > { %s5109_s6 = sadd.s32 4294967295, %s5031_s29   ;;  %s4213_s30 = sadd.s32 4294967294, %s5031_s29   ;;  %s5031_s29 = sphi %s5094_s29, %s7789_s29   ;;  %s5027_s28 = sphi %s5092_s28, %s7788_s28   ;;  %s5023_s27 = sphi %s5090_s27, %s7787_s27   ;;  %s5019_s26 = sphi %s5088_s26, %s7786_s26  }
   0x6   : > { %s5113_s8 = sadd.s32 1, %s5031_s29   ;;  %s180_s9 = sadd.s32 1, %s5027_s28 }
   0x7   : > { %s177_s10 = ssub.s32 %s5031_s29, %s5113_s8  ;;  %p190_p0 = scmp.ne.s32.totalorder %s5027_s28, %s5023_s27 }
   0x8   : > { %p178_p1 = scmp.eq.s32.totalorder %s177_s10, 0  ;;  %p191_p2 = scmp.eq.s32.totalorder %s5109_s6, 1 }
   0x9   : > { %p196_p3 = scmp.ne.s32.totalorder %s5023_s27, %s5019_s26  ;;  %p197_p4 = scmp.eq.s32.totalorder %s4213_s30, 1 }
   0xa   : > { %s5124_s11 = scalar_select %p178_p1, %s5027_s28, %s180_s9  }
   0xb   : > { %p5126_p5 = por %p191_p2, %p190_p0  ;;  %p5130_p6 = por %p197_p4, %p196_p3 }
   0xc   : > { %p4216_p7 = scmp.ge.s32.totalorder %s5031_s29, 1  ;;  %p241_p8 = scmp.lt.s32.totalorder %s5031_s29, 3 }
   0xe   : > { %p242_p9 = pnand %p4216_p7, %p241_p8 }
   0xf   : > { %v382_v0 = vld [vmem:[%s7777_s1 + $0x18] sm:$0xff] (!%p242_p9)  ;;  %v384_v1 = vld [vmem:[%s7777_s1 + $0xa8] sm:$0xff] (!%p242_p9)  ;;  %v381_v2 = vld [vmem:[%s7777_s1 + $0x10] sm:$0xff] (!%p242_p9)  ;;  %v5033_v7 = vmov (!%p242_p9), 0.0   ;;  %p273_p10 = scmp.lt.s32.totalorder (!%p242_p9), %s5109_s6, 1  ;;  %vm296_vm0 = vcmask (!%p242_p9), 523264  }
  0x10   : > { %245 = sbr.rel (%p242_p9) target bundleno = 1792 (0x700), region = 48  ;;  %v4288_v3 = vpack.c.bf16 (!%p242_p9), %v384_v1, %v382_v0  ;;  %v383_v4 = vld [vmem:[%s7777_s1 + $0xa0] sm:$0xff] (!%p242_p9)  ;;  %v281_v5 = vld [vmem:[%s7777_s1 + $0x8] sm:$0xff] (!%p242_p9)  ;;  %v283_v6 = vld [vmem:[%s7777_s1 + $0x98] sm:$0xff] (!%p242_p9)  ;;  %461 = vmatprep.mubr.f32.mxu1 (!%p242_p9), %v5033_v7  ;;  %367 = vmatprep.mubr.f32.mxu0 (!%p242_p9), %v5033_v7  ;;  %vm476_vm1 = vcmask (!%p242_p9), 130048   ;;  %vm2779_vm2 = vcmask (!%p242_p9), 64512  }
  0x11   : > { %v4290_v8 = vpack.c.bf16 (!%p242_p9), %v383_v4, %v381_v2  ;;  %v4272_v9 = vpack.c.bf16 (!%p242_p9), %v283_v6, %v281_v5  ;;  %v386_v10 = vld [vmem:[%s7777_s1 + $0x138] sm:$0xff] (!%p242_p9)  ;;  %v388_v11 = vld [vmem:[%s7777_s1 + $0x1c8] sm:$0xff] (!%p242_p9)  ;;  %v280_v12 = vld [vmem:[%s7777_s1] sm:$0xff] (!%p242_p9)  ;;  %s5035_s14 = smov (!%p242_p9), 126   ;;  %s5036_s15 = smov (!%p242_p9), 127   ;;  %vm3398_vm3 = vcmask (!%p242_p9), 1039360  }
  0x12   : > { %4289 = vmatprep.subr.bf16.mxu1 (!%p242_p9), %v4288_v3  ;;  %v4292_v13 = vpack.c.bf16 (!%p242_p9), %v388_v11, %v386_v10  ;;  %v282_v14 = vld [vmem:[%s7777_s1 + $0x90] sm:$0xff] (!%p242_p9)  ;;  %v387_v16 = vld [vmem:[%s7777_s1 + $0x1c0] sm:$0xff] (!%p242_p9)  ;;  %v285_v19 = vld [vmem:[%s7777_s1 + $0x128] sm:$0xff] (!%p242_p9)  ;;  %s5037_s17 = smov (!%p242_p9), 86   ;;  %s5038_s18 = smov (!%p242_p9), 85   ;;  %vm3482_vm4 = vcmask (!%p242_p9), 1031168  }
  0x13   : > { %v385_v15 = vld [vmem:[%s7777_s1 + $0x130] sm:$0xff] (!%p242_p9)  ;;  %4291 = vmatpush1.bf16.msra.mxu1 (!%p242_p9), %v4290_v8  ;;  %4273 = vmatprep.subr.bf16.mxu0 (!%p242_p9), %v4272_v9  ;;  %v4274_v17 = vpack.c.bf16 (!%p242_p9), %v282_v14, %v280_v12  ;;  %v287_v20 = vld [vmem:[%s7777_s1 + $0x1b8] sm:$0xff] (!%p242_p9)  ;;  %v392_v23 = vld [vmem:[%s7777_s1 + $0x2e8] sm:$0xff] (!%p242_p9)  ;;  %s5039_s19 = smov (!%p242_p9), 84   ;;  %s5040_s20 = smov (!%p242_p9), 44   ;;  %vm3566_vm5 = vcmask (!%p242_p9), 703488  }
  0x14   : > { %v4294_v18 = vpack.c.bf16 (!%p242_p9), %v387_v16, %v385_v15  ;;  %v390_v21 = vld [vmem:[%s7777_s1 + $0x258] sm:$0xff] (!%p242_p9)  ;;  %4293 = vmatprep.subr.bf16.mxu1 (!%p242_p9), %v4292_v13  ;;  %v4276_v22 = vpack.c.bf16 (!%p242_p9), %v287_v20, %v285_v19  ;;  %v284_v24 = vld [vmem:[%s7777_s1 + $0x120] sm:$0xff] (!%p242_p9)  ;;  %v286_v25 = vld [vmem:[%s7777_s1 + $0x1b0] sm:$0xff] (!%p242_p9)  ;;  %s5041_s21 = smov (!%p242_p9), 43   ;;  %vm3986_vm6 = vcmask (!%p242_p9), 343040   ;;  %vm3650_vm7 = vcmask (!%p242_p9), 695296  }
  0x15   : > { %4275 = vmatpush1.bf16.msra.mxu0 (!%p242_p9), %v4274_v17  ;;  %v4296_v26 = vpack.c.bf16 (!%p242_p9), %v392_v23, %v390_v21  ;;  %v4278_v27 = vpack.c.bf16 (!%p242_p9), %v286_v25, %v284_v24  ;;  %v389_v28 = vld [vmem:[%s7777_s1 + $0x250] sm:$0xff] (!%p242_p9)  ;;  %v391_v29 = vld [vmem:[%s7777_s1 + $0x2e0] sm:$0xff] (!%p242_p9)  ;;  %v289_v30 = vld [vmem:[%s7777_s1 + $0x248] sm:$0xff] (!%p242_p9)  ;;  %vm3734_vm8 = vcmask (!%p242_p9), 687104   ;;  %vm3818_vm9 = vcmask (!%p242_p9), 359424   ;;  %s270_s22 = sand.u32 (!%p242_p9), 1, %s5023_s27  }
  0x16   : > { %4277 = vmatprep.subr.bf16.mxu0 (!%p242_p9), %v4276_v22  ;;  %v291_v31 = vld [vmem:[%s7777_s1 + $0x2d8] sm:$0xff] (!%p242_p9)  ;;  %v396_v33 = vld [vmem:[%s7777_s1 + $0x408] sm:$0xff] (!%p242_p9)  ;;  %v4298_v34 = vpack.c.bf16 (!%p242_p9), %v391_v29, %v389_v28  ;;  %v288_v36 = vld [vmem:[%s7777_s1 + $0x240] sm:$0xff] (!%p242_p9)  ;;  %vm3902_vm10 = vcmask (!%p242_p9), 351232   ;;  %s4916_s23 = smul.u32 (!%p242_p9), 14, %s270_s22 }
  0x17   : > { %s5205_s30 = scalar_select %p273_p10, %s5109_s6, 1  ;;  %v394_v32 = vld [vmem:[%s7777_s1 + $0x378] sm:$0xff]  ;;  %4295 = vmatpush1.bf16.msra.mxu1 %v4294_v18  ;;  %v4280_v35 = vpack.c.bf16 %v291_v31, %v289_v30  ;;  %v290_v37 = vld [vmem:[%s7777_s1 + $0x2d0] sm:$0xff]  ;;  %v395_v40 = vld [vmem:[%s7777_s1 + $0x400] sm:$0xff] }
  0x18   : > { %v393_v38 = vld [vmem:[%s7777_s1 + $0x370] sm:$0xff]  ;;  %4297 = vmatprep.subr.bf16.mxu1 %v4296_v26  ;;  %v4300_v39 = vpack.c.bf16 %v396_v33, %v394_v32  ;;  %v293_v41 = vld [vmem:[%s7777_s1 + $0x368] sm:$0xff]  ;;  %v295_v42 = vld [vmem:[%s7777_s1 + $0x3f8] sm:$0xff]  ;;  %v4282_v43 = vpack.c.bf16 %v290_v37, %v288_v36  ;;  %s7655_s24 = scalar_lea.vmem [#allocation3], %s4916_s23 }
  0x19   : > { %4279 = vmatpush1.bf16.msra.mxu0 %v4278_v27  ;;  %s4271_s16 = sshll.u32 %s5205_s30, 4  ;;  %v626_v44 = vld [vmem:[%s7777_s1 + $0x28] sm:$0xff]  ;;  %v628_v45 = vld [vmem:[%s7777_s1 + $0xb8] sm:$0xff]  ;;  %v4284_v46 = vpack.c.bf16 %v295_v42, %v293_v41  ;;  %v292_v47 = vld [vmem:[%s7777_s1 + $0x360] sm:$0xff]  ;;  %v4302_v49 = vpack.c.bf16 %v395_v40, %v393_v38  ;;  %s4917_s30 = smul.u32 224, %s5109_s6 }
  0x1a   : > { %4281 = vmatprep.subr.bf16.mxu0 %v4280_v35  ;;  %v294_v48 = vld [vmem:[%s7777_s1 + $0x3f0] sm:$0xff]  ;;  %s277_s9 = scalar_lea.vmem %s7776_s0, %s4271_s16  ;;  %v4312_v50 = vpack.c.bf16 %v628_v45, %v626_v44  ;;  %v625_v51 = vld [vmem:[%s7777_s1 + $0x20] sm:$0xff]  ;;  %v630_v54 = vld [vmem:[%s7777_s1 + $0x148] sm:$0xff]  ;;  %s3325_s16 = sld [smem:[#allocation2]] }
  0x1b   : > { %4299 = vmatpush1.bf16.msra.mxu1 %v4298_v34  ;;  %v627_v52 = vld [vmem:[%s7777_s1 + $0xb0] sm:$0xff]  ;;  %v4286_v53 = vpack.c.bf16 %v294_v48, %v292_v47  ;;  %v632_v55 = vld [vmem:[%s7777_s1 + $0x1d8] sm:$0xff]  ;;  %v5262_v56 = vld [vmem:[%s277_s9] sm:$0xff]  ;;  %s4154_s25 = sshll.u32 %s7655_s24, 4  ;;  %s4140_s6 = scalar_lea.sflag [#allocation4], %s270_s22  ;;  %s7733_s25 = int_to_ptr.vmem [resolvable:$true] %s4154_s25 }
  0x1c   : > { %4301 = vmatprep.subr.bf16.mxu1 %v4300_v39  ;;  %v4314_v57 = vpack.c.bf16 %v627_v52, %v625_v51  ;;  %v4316_v58 = vpack.c.bf16 %v632_v55, %v630_v54  ;;  %v629_v59 = vld [vmem:[%s7777_s1 + $0x140] sm:$0xff]  ;;  %v631_v60 = vld [vmem:[%s7777_s1 + $0x1d0] sm:$0xff]  ;;  %v634_v61 = vld [vmem:[%s7777_s1 + $0x268] sm:$0xff] }
  0x1d   : > { %4283 = vmatpush1.bf16.msra.mxu0 %v4282_v43  ;;  %v636_v62 = vld [vmem:[%s7777_s1 + $0x2f8] sm:$0xff]  ;;  %v5279_v63 = vld [vmem:[%s277_s9 + $0x8] sm:$0xff]  ;;  %v4318_v0 = vpack.c.bf16 %v631_v60, %v629_v59  ;;  %v633_v2 = vld [vmem:[%s7777_s1 + $0x260] sm:$0xff]  ;;  %s5042_s9 = smov 42  }
  0x1e   : > { %4285 = vmatprep.subr.bf16.mxu0 %v4284_v46  ;;  %v4320_v1 = vpack.c.bf16 %v636_v62, %v634_v61  ;;  %v635_v3 = vld [vmem:[%s7777_s1 + $0x2f0] sm:$0xff]  ;;  %v638_v4 = vld [vmem:[%s7777_s1 + $0x388] sm:$0xff]  ;;  %v640_v5 = vld [vmem:[%s7777_s1 + $0x418] sm:$0xff] }
  0x1f   : > { %4303 = vmatpush1.bf16.msra.mxu1 %v4302_v49  ;;  %v4322_v6 = vpack.c.bf16 %v635_v3, %v633_v2  ;;  %v4324_v8 = vpack.c.bf16 %v640_v5, %v638_v4  ;;  %v637_v9 = vld [vmem:[%s7777_s1 + $0x380] sm:$0xff]  ;;  %v639_v10 = vld [vmem:[%s7777_s1 + $0x410] sm:$0xff]  ;;  %v968_v12 = vld [vmem:[%s7777_s1 + $0x48] sm:$0xff] }
  0x20   : > { %4313 = vmatprep.subr.bf16.mxu1 %v4312_v50  ;;  %v4326_v11 = vpack.c.bf16 %v639_v10, %v637_v9  ;;  %v970_v13 = vld [vmem:[%s7777_s1 + $0xd8] sm:$0xff]  ;;  %v967_v15 = vld [vmem:[%s7777_s1 + $0x40] sm:$0xff]  ;;  %v969_v16 = vld [vmem:[%s7777_s1 + $0xd0] sm:$0xff] }
  0x21   : > { %4287 = vmatpush1.bf16.msra.mxu0 %v4286_v53  ;;  %v4352_v14 = vpack.c.bf16 %v970_v13, %v968_v12  ;;  %v4354_v17 = vpack.c.bf16 %v969_v16, %v967_v15  ;;  %v972_v18 = vld [vmem:[%s7777_s1 + $0x168] sm:$0xff]  ;;  %v974_v19 = vld [vmem:[%s7777_s1 + $0x1f8] sm:$0xff]  ;;  %v971_v21 = vld [vmem:[%s7777_s1 + $0x160] sm:$0xff] }
  0x22   : > { %4221 = vmatmul.mubr.msk.f32.vlgmr.msra.gmra.mrb[0].mxu1 %vm296_vm0, %v5262_v56  ;;  %v4356_v20 = vpack.c.bf16 %v974_v19, %v972_v18  ;;  %v973_v22 = vld [vmem:[%s7777_s1 + $0x1f0] sm:$0xff]  ;;  %v976_v24 = vld [vmem:[%s7777_s1 + $0x288] sm:$0xff]  ;;  %v978_v25 = vld [vmem:[%s7777_s1 + $0x318] sm:$0xff] }
  0x23   : > { %4315 = vmatpush1.bf16.msra.mxu1 %v4314_v57  ;;  %467 = vmatprep.mubr.f32.mxu1 %v5033_v7  ;;  %v4358_v23 = vpack.c.bf16 %v973_v22, %v971_v21  ;;  %v4360_v26 = vpack.c.bf16 %v978_v25, %v976_v24  ;;  %v975_v27 = vld [vmem:[%s7777_s1 + $0x280] sm:$0xff]  ;;  %v977_v28 = vld [vmem:[%s7777_s1 + $0x310] sm:$0xff]  ;;  %v980_v30 = vld [vmem:[%s7777_s1 + $0x3a8] sm:$0xff] }
  0x24   : > { %4219 = vmatmul.mubr.msk.f32.vlgmr.msra.gmra.mrb[0].mxu0 %vm296_vm0, %v5262_v56  ;;  %4317 = vmatprep.subr.bf16.mxu1 %v4316_v58  ;;  %v4362_v29 = vpack.c.bf16 %v977_v28, %v975_v27  ;;  %v982_v31 = vld [vmem:[%s7777_s1 + $0x438] sm:$0xff]  ;;  %v979_v33 = vld [vmem:[%s7777_s1 + $0x3a0] sm:$0xff]  ;;  %v981_v34 = vld [vmem:[%s7777_s1 + $0x430] sm:$0xff] }
  0x25   : > { %373 = vmatprep.mubr.f32.mxu0 %v5033_v7  ;;  %v4364_v32 = vpack.c.bf16 %v982_v31, %v980_v30  ;;  %v4366_v35 = vpack.c.bf16 %v981_v34, %v979_v33  ;;  %v1139_v36 = vld [vmem:[%s7777_s1 + $0x58] sm:$0xff]  ;;  %v1141_v37 = vld [vmem:[%s7777_s1 + $0xe8] sm:$0xff]  ;;  %v1138_v39 = vld [vmem:[%s7777_s1 + $0x50] sm:$0xff] }
  0x26   : > { %4222 = vmatmul.mubr.msk.f32.gmra.mrb[2].mxu1 %vm296_vm0, %v5279_v63  ;;  %v4372_v38 = vpack.c.bf16 %v1141_v37, %v1139_v36  ;;  %v1140_v40 = vld [vmem:[%s7777_s1 + $0xe0] sm:$0xff]  ;;  %v1143_v42 = vld [vmem:[%s7777_s1 + $0x178] sm:$0xff]  ;;  %v1145_v43 = vld [vmem:[%s7777_s1 + $0x208] sm:$0xff] }
  0x27   : > { %4319 = vmatpush1.bf16.msra.mxu1 %v4318_v0  ;;  %705 = vmatprep.mubr.f32.mxu1 %v5033_v7  ;;  %v4374_v41 = vpack.c.bf16 %v1140_v40, %v1138_v39  ;;  %v4376_v44 = vpack.c.bf16 %v1145_v43, %v1143_v42  ;;  %v1142_v45 = vld [vmem:[%s7777_s1 + $0x170] sm:$0xff]  ;;  %v1144_v46 = vld [vmem:[%s7777_s1 + $0x200] sm:$0xff]  ;;  %v1147_v48 = vld [vmem:[%s7777_s1 + $0x298] sm:$0xff] }
  0x28   : > { %4220 = vmatmul.mubr.msk.f32.gmra.mrb[2].mxu0 %vm296_vm0, %v5279_v63  ;;  %4321 = vmatprep.subr.bf16.mxu1 %v4320_v1  ;;  %v4378_v47 = vpack.c.bf16 %v1144_v46, %v1142_v45  ;;  %v1149_v49 = vld [vmem:[%s7777_s1 + $0x328] sm:$0xff]  ;;  %v1146_v51 = vld [vmem:[%s7777_s1 + $0x290] sm:$0xff]  ;;  %v1148_v52 = vld [vmem:[%s7777_s1 + $0x320] sm:$0xff] }
  0x29   : > { %544 = vmatprep.mubr.f32.mxu0 %v5033_v7  ;;  %v4380_v50 = vpack.c.bf16 %v1149_v49, %v1147_v48  ;;  %v4382_v53 = vpack.c.bf16 %v1148_v52, %v1146_v51  ;;  %v1151_v54 = vld [vmem:[%s7777_s1 + $0x3b8] sm:$0xff]  ;;  %v1153_v55 = vld [vmem:[%s7777_s1 + $0x448] sm:$0xff]  ;;  %v1150_v58 = vld [vmem:[%s7777_s1 + $0x3b0] sm:$0xff] }
  0x2a   : > { %v4384_v57 = vpack.c.bf16 %v1153_v55, %v1151_v54  ;;  %v1152_v59 = vld [vmem:[%s7777_s1 + $0x440] sm:$0xff]  ;;  %v797_v15 = vld [vmem:[%s7777_s1 + $0x38] sm:$0xff]  ;;  %v799_v16 = vld [vmem:[%s7777_s1 + $0xc8] sm:$0xff] }
  0x2b   : > { %4323 = vmatpush1.bf16.msra.mxu1 %v4322_v6  ;;  %v4386_v60 = vpack.c.bf16 %v1152_v59, %v1150_v58  ;;  %v4332_v21 = vpack.c.bf16 %v799_v16, %v797_v15  ;;  %v796_v22 = vld [vmem:[%s7777_s1 + $0x30] sm:$0xff]  ;;  %v801_v24 = vld [vmem:[%s7777_s1 + $0x158] sm:$0xff]  ;;  %v803_v25 = vld [vmem:[%s7777_s1 + $0x1e8] sm:$0xff] }
  0x2c   : > { %4325 = vmatprep.subr.bf16.mxu1 %v4324_v8  ;;  %v4336_v28 = vpack.c.bf16 %v803_v25, %v801_v24  ;;  %v802_v30 = vld [vmem:[%s7777_s1 + $0x1e0] sm:$0xff]  ;;  %v805_v31 = vld [vmem:[%s7777_s1 + $0x278] sm:$0xff]  ;;  %v1483_v58 = vld [vmem:[%s7777_s1 + $0x108] sm:$0xff] }
  0x2d   : > { %v806_v36 = vld [vmem:[%s7777_s1 + $0x300] sm:$0xff]  ;;  %v809_v37 = vld [vmem:[%s7777_s1 + $0x398] sm:$0xff]  ;;  %v1492_v16 = vld [vmem:[%s7777_s1 + $0x3d0] sm:$0xff] }
  0x2e   : > { %v810_v42 = vld [vmem:[%s7777_s1 + $0x420] sm:$0xff]  ;;  %v1656_v25 = vld [vmem:[%s7777_s1 + $0x1a8] sm:$0xff] }
  0x2f   : > { %4327 = vmatpush1.bf16.msra.mxu1 %v4326_v11  ;;  %v4223_v11 = vld [vmem:[%s7778_s2 + $0x8] sm:$0xff] }
  0x30   : > { %4353 = vmatprep.subr.bf16.mxu1 %v4352_v14  ;;  %v380_v14 = vld [vmem:[%s7778_s2] sm:$0xff] }
  0x32   : > { %4226 = vmatmul.mubr.msk.f32.vlgmr.msra.gmra.mrb[4].mxu1 %vm296_vm0, %v5262_v56 }
  0x33   : > { %711 = vmatprep.mubr.f32.mxu1 %v5033_v7  ;;  %4355 = vmatpush1.bf16.msra.mxu1 %v4354_v17 }
  0x34   : > { %4357 = vmatprep.subr.bf16.mxu1 %v4356_v20 }
  0x36   : > { %4227 = vmatmul.mubr.msk.f32.gmra.mrb[6].mxu1 %vm296_vm0, %v5279_v63 }
  0x37   : > { %1047 = vmatprep.mubr.f32.mxu1 %v5033_v7  ;;  %4359 = vmatpush1.bf16.msra.mxu1 %v4358_v23  ;;  %v798_v23 = vld [vmem:[%s7777_s1 + $0xc0] sm:$0xff] }
  0x38   : > { %4361 = vmatprep.subr.bf16.mxu1 %v4360_v26  ;;  %v4228_v26 = vld [vmem:[%s7778_s2 + $0x10] sm:$0xff]  ;;  %v4334_v27 = vpack.c.bf16 %v798_v23, %v796_v22  ;;  %v1651_v22 = vld [vmem:[%s7777_s1 + $0x80] sm:$0xff] }
  0x39   : > { %v1653_v23 = vld [vmem:[%s7777_s1 + $0x110] sm:$0xff] }
  0x3a   : > { %v4434_v24 = vpack.c.bf16 %v1653_v23, %v1651_v22 }
  0x3b   : > { %4363 = vmatpush1.bf16.msra.mxu1 %v4362_v29  ;;  %v800_v29 = vld [vmem:[%s7777_s1 + $0x150] sm:$0xff] }
  0x3c   : > { %4365 = vmatprep.subr.bf16.mxu1 %v4364_v32  ;;  %v807_v32 = vld [vmem:[%s7777_s1 + $0x308] sm:$0xff]  ;;  %v4338_v33 = vpack.c.bf16 %v802_v30, %v800_v29  ;;  %v1657_v29 = vld [vmem:[%s7777_s1 + $0x230] sm:$0xff] }
  0x3d   : > { %v4340_v34 = vpack.c.bf16 %v807_v32, %v805_v31  ;;  %v1660_v31 = vld [vmem:[%s7777_s1 + $0x2c8] sm:$0xff]  ;;  %v1662_v32 = vld [vmem:[%s7777_s1 + $0x358] sm:$0xff] }
  0x3f   : > { %4367 = vmatpush1.bf16.msra.mxu1 %v4366_v35  ;;  %v804_v35 = vld [vmem:[%s7777_s1 + $0x270] sm:$0xff] }
  0x40   : > { %4373 = vmatprep.subr.bf16.mxu1 %v4372_v38  ;;  %v811_v38 = vld [vmem:[%s7777_s1 + $0x428] sm:$0xff]  ;;  %v4342_v39 = vpack.c.bf16 %v806_v36, %v804_v35  ;;  %v1661_v35 = vld [vmem:[%s7777_s1 + $0x350] sm:$0xff] }
  0x41   : > { %v4344_v40 = vpack.c.bf16 %v811_v38, %v809_v37  ;;  %v1664_v37 = vld [vmem:[%s7777_s1 + $0x3e8] sm:$0xff]  ;;  %v1666_v38 = vld [vmem:[%s7777_s1 + $0x478] sm:$0xff] }
  0x42   : > { %4234 = vmatmul.mubr.msk.f32.vlgmr.msra.gmra.mrb[8].mxu1 %vm296_vm0, %v5262_v56 }
  0x43   : > { %4375 = vmatpush1.bf16.msra.mxu1 %v4374_v41  ;;  %1053 = vmatprep.mubr.f32.mxu1 %v5033_v7  ;;  %v808_v41 = vld [vmem:[%s7777_s1 + $0x390] sm:$0xff] }
  0x44   : > { %4377 = vmatprep.subr.bf16.mxu1 %v4376_v44  ;;  %v4346_v43 = vpack.c.bf16 %v810_v42, %v808_v41  ;;  %v1665_v41 = vld [vmem:[%s7777_s1 + $0x470] sm:$0xff] }
  0x46   : > { %4235 = vmatmul.mubr.msk.f32.gmra.mrb[10].mxu1 %vm296_vm0, %v5279_v63 }
  0x47   : > { %4379 = vmatpush1.bf16.msra.mxu1 %v4378_v47  ;;  %1218 = vmatprep.mubr.f32.mxu1 %v5033_v7 }
  0x48   : > { %4381 = vmatprep.subr.bf16.mxu1 %v4380_v50 }
  0x4b   : > { %4383 = vmatpush1.bf16.msra.mxu1 %v4382_v53 }
  0x4c   : > { %4385 = vmatprep.subr.bf16.mxu1 %v4384_v57  ;;  %v1481_v57 = vld [vmem:[%s7777_s1 + $0x78] sm:$0xff] }
  0x4d   : > { %v4412_v59 = vpack.c.bf16 %v1483_v58, %v1481_v57 }
  0x4f   : > { %4387 = vmatpush1.bf16.msra.mxu1 %v4386_v60  ;;  %v1480_v60 = vld [vmem:[%s7777_s1 + $0x70] sm:$0xff] }
  0x50   : > { %4413 = vmatprep.subr.bf16.mxu1 %v4412_v59 }
  0x52   : > { %4238 = vmatmul.mubr.msk.f32.vlgmr.msra.gmra.mrb[12].mxu1 %vm296_vm0, %v5262_v56 }
  0x53   : > { %1224 = vmatprep.mubr.f32.mxu1 %v5033_v7 }
  0x56   : > { %4239 = vmatmul.mubr.msk.f32.gmra.mrb[14].mxu1 %vm296_vm0, %v5279_v63 }
  0x57   : > { %1560 = vmatprep.mubr.f32.mxu1 %v5033_v7 }
  0xf5   : > { %v463_v61 = vpop.f32.mrb[0].mxu1 }
  0xf6   : > { %v465_v62 = vpop.f32.mrb[1].mxu1 }
  0xf7   : > { %v369_v0 = vpop.f32.mrb[0].mxu0 }
  0xf8   : > { %v371_v1 = vpop.f32.mrb[1].mxu0 }
  0xf9   : > { %v469_v2 = vpop.f32.mrb[2].mxu1 }
  0xfa   : > { %v4306_v3 = vpack.c.bf16 %v469_v2, %v463_v61  ;;  %v471_v4 = vpop.f32.mrb[3].mxu1  ;;  %v1482_v61 = vld [vmem:[%s7777_s1 + $0x100] sm:$0xff] }
  0xfb   : > { %v4304_v5 = vpack.c.bf16 %v471_v4, %v465_v62  ;;  %v375_v6 = vpop.f32.mrb[2].mxu0  ;;  %v1485_v62 = vld [vmem:[%s7777_s1 + $0x198] sm:$0xff]  ;;  %v1486_v4 = vld [vmem:[%s7777_s1 + $0x220] sm:$0xff] }
  0xfc   : > { %v4310_v8 = vpack.c.bf16 %v375_v6, %v369_v0  ;;  %v377_v9 = vpop.f32.mrb[3].mxu0  ;;  %v4414_v0 = vpack.c.bf16 %v1482_v61, %v1480_v60  ;;  %v1489_v6 = vld [vmem:[%s7777_s1 + $0x2b8] sm:$0xff] }
  0xfd   : > { %4305 = vmatprep.subr.bf16.mxu0 %v4304_v5  ;;  %v4308_v10 = vpack.c.bf16 %v377_v9, %v371_v1  ;;  %v1487_v1 = vld [vmem:[%s7777_s1 + $0x228] sm:$0xff] }
  0xfe   : > { %4307 = vmatpush1.bf16.msra.mxu0 %v4306_v3  ;;  %v4416_v2 = vpack.c.bf16 %v1487_v1, %v1485_v62  ;;  %v1484_v3 = vld [vmem:[%s7777_s1 + $0x190] sm:$0xff]  ;;  %4415 = vmatpush1.bf16.msra.mxu1 %v4414_v0  ;;  %v4232_v62 = vld [vmem:[%s7778_s2 + $0x18] sm:$0xff]  ;;  %v1310_v0 = vld [vmem:[%s7777_s1 + $0x68] sm:$0xff] }
  0xff   : > { %4309 = vmatprep.subr.bf16.mxu0 %v4308_v10  ;;  %v4418_v5 = vpack.c.bf16 %v1486_v4, %v1484_v3  ;;  %v1488_v10 = vld [vmem:[%s7777_s1 + $0x2b0] sm:$0xff]  ;;  %v1318_v1 = vld [vmem:[%s7777_s1 + $0x2a8] sm:$0xff] }
 0x100   : > { %4417 = vmatprep.subr.bf16.mxu1 %v4416_v2  ;;  %v1320_v2 = vld [vmem:[%s7777_s1 + $0x338] sm:$0xff] }
 0x101   : > { %4224 = vmatmul.mubr.msk.f32.vlgmr.msra.gmra.mrb[4].mxu0 %vm476_vm1, %v4223_v11  ;;  %v1490_v11 = vld [vmem:[%s7777_s1 + $0x340] sm:$0xff]  ;;  %v4400_v4 = vpack.c.bf16 %v1320_v2, %v1318_v1  ;;  %v2003_v1 = vld [vmem:[%s7780_s4 + $0x558] sm:$0xff]  ;;  %v2017_v2 = vld [vmem:[%s7780_s4 + $0x5c8] sm:$0xff] }
 0x102   : > { %4311 = vmatpush1.bf16.msra.mxu0 %v4310_v8  ;;  %618 = vmatprep.mubr.f32.mxu0 %v5033_v7  ;;  %v1491_v8 = vld [vmem:[%s7777_s1 + $0x348] sm:$0xff] }
 0x103   : > { %4419 = vmatpush1.bf16.msra.mxu1 %v4418_v5  ;;  %v4420_v9 = vpack.c.bf16 %v1491_v8, %v1489_v6  ;;  %v1317_v5 = vld [vmem:[%s7777_s1 + $0x2a0] sm:$0xff]  ;;  %v1319_v6 = vld [vmem:[%s7777_s1 + $0x330] sm:$0xff]  ;;  %v1322_v8 = vld [vmem:[%s7777_s1 + $0x3c8] sm:$0xff] }
 0x105   : > { %v707_v12 = vpop.f32.mrb[4].mxu1  ;;  %4421 = vmatprep.subr.bf16.mxu1 %v4420_v9  ;;  %v1324_v9 = vld [vmem:[%s7777_s1 + $0x458] sm:$0xff] }
 0x106   : > { %v709_v13 = vpop.f32.mrb[5].mxu1 }
 0x109   : > { %v713_v17 = vpop.f32.mrb[6].mxu1  ;;  %4225 = vmatmul.mubr.msk.f32.vlgmr.msra.gmra.mrb[4].mxu0 %vm476_vm1, %v380_v14  ;;  %v1495_v14 = vld [vmem:[%s7777_s1 + $0x468] sm:$0xff] }
 0x10a   : > { %v4330_v18 = vpack.c.bf16 %v713_v17, %v707_v12  ;;  %v715_v19 = vpop.f32.mrb[7].mxu1  ;;  %787 = vmatprep.mubr.f32.mxu0 %v5033_v7  ;;  %v4422_v12 = vpack.c.bf16 %v1490_v11, %v1488_v10  ;;  %v1494_v17 = vld [vmem:[%s7777_s1 + $0x460] sm:$0xff]  ;;  %v4402_v10 = vpack.c.bf16 %v1319_v6, %v1317_v5  ;;  %v4404_v11 = vpack.c.bf16 %v1324_v9, %v1322_v8  ;;  %v2031_v8 = vld [vmem:[%s7780_s4 + $0x638] sm:$0xff]  ;;  %v2045_v9 = vld [vmem:[%s7780_s4 + $0x6a8] sm:$0xff] }
 0x10b   : > { %v4328_v20 = vpack.c.bf16 %v715_v19, %v709_v13  ;;  %v1493_v13 = vld [vmem:[%s7777_s1 + $0x3d8] sm:$0xff]  ;;  %v1652_v19 = vld [vmem:[%s7777_s1 + $0x88] sm:$0xff]  ;;  %v2016_v5 = vld [vmem:[%s7780_s4 + $0x5c0] sm:$0xff] }
 0x10c   : > { %4423 = vmatpush1.bf16.msra.mxu1 %v4422_v12  ;;  %v4424_v15 = vpack.c.bf16 %v1495_v14, %v1493_v13  ;;  %v1321_v12 = vld [vmem:[%s7777_s1 + $0x3c0] sm:$0xff]  ;;  %v1323_v13 = vld [vmem:[%s7777_s1 + $0x450] sm:$0xff] }
 0x10d   : > { %4329 = vmatprep.subr.bf16.mxu0 %v4328_v20  ;;  %v1654_v20 = vld [vmem:[%s7777_s1 + $0x118] sm:$0xff]  ;;  %v4406_v14 = vpack.c.bf16 %v1323_v13, %v1321_v12  ;;  %v2044_v12 = vld [vmem:[%s7780_s4 + $0x6a0] sm:$0xff] }
 0x10e   : > { %4331 = vmatpush1.bf16.msra.mxu0 %v4330_v18  ;;  %4425 = vmatprep.subr.bf16.mxu1 %v4424_v15  ;;  %v4426_v18 = vpack.c.bf16 %v1494_v17, %v1492_v16 }
 0x10f   : > { %4333 = vmatprep.subr.bf16.mxu0 %v4332_v21  ;;  %v4432_v21 = vpack.c.bf16 %v1654_v20, %v1652_v19 }
 0x110   : > { %4427 = vmatpush1.bf16.msra.mxu1 %v4426_v18 }
 0x111   : > { %4229 = vmatmul.mubr.msk.f32.vlgmr.msra.gmra.mrb[4].mxu0 %vm476_vm1, %v4228_v26  ;;  %4433 = vmatprep.subr.bf16.mxu1 %v4432_v21  ;;  %v1658_v26 = vld [vmem:[%s7777_s1 + $0x238] sm:$0xff] }
 0x112   : > { %4335 = vmatpush1.bf16.msra.mxu0 %v4334_v27  ;;  %876 = vmatprep.mubr.f32.mxu0 %v5033_v7  ;;  %v4436_v27 = vpack.c.bf16 %v1658_v26, %v1656_v25  ;;  %v1822_v25 = vld [vmem:[%s7779_s3] sm:$0xff]  ;;  %v5034_v26 = vmov 0  }
 0x113   : > { %4337 = vmatprep.subr.bf16.mxu0 %v4336_v28  ;;  %4246 = vmatmul.mubr.msk.f32.vlgmr.msra.gmra.mrb[16].mxu1 %vm296_vm0, %v5262_v56  ;;  %v1655_v28 = vld [vmem:[%s7777_s1 + $0x1a0] sm:$0xff] }
 0x114   : > { %4435 = vmatpush1.bf16.msra.mxu1 %v4434_v24  ;;  %1566 = vmatprep.mubr.f32.mxu1 %v5033_v7  ;;  %v4438_v30 = vpack.c.bf16 %v1657_v29, %v1655_v28  ;;  %v1849_v28 = vld [vmem:[%s7780_s4 + $0x88] sm:$0xff] }
 0x115   : > { %v5491_v44 = vpop.f32.mrb[8].mxu1  ;;  %4437 = vmatprep.subr.bf16.mxu1 %v4436_v27  ;;  %4968 = vset.pattern.permute.xlu0 %v5034_v26  ;;  %v1835_v27 = vld [vmem:[%s7780_s4 + $0x18] sm:$0xff] }
 0x116   : > { %4339 = vmatpush1.bf16.msra.mxu0 %v4338_v33  ;;  %v5493_v45 = vpop.f32.mrb[9].mxu1  ;;  %v4440_v33 = vpack.c.bf16 %v1662_v32, %v1660_v31  ;;  %1825 = vperm.xlu0 %4968, %v1822_v25   ;;  %v4516_v29 = vpack.c.bf16 %v1849_v28, %v1835_v27  ;;  %v1848_v31 = vld [vmem:[%s7780_s4 + $0x80] sm:$0xff]  ;;  %v2073_v25 = vld [vmem:[%s7780_s4 + $0x788] sm:$0xff]  ;;  %v2058_v27 = vld [vmem:[%s7780_s4 + $0x710] sm:$0xff] }
 0x117   : > { %4341 = vmatprep.subr.bf16.mxu0 %v4340_v34  ;;  %4247 = vmatmul.mubr.msk.f32.gmra.mrb[18].mxu1 %vm296_vm0, %v5279_v63  ;;  %v1659_v34 = vld [vmem:[%s7777_s1 + $0x2c0] sm:$0xff] }
 0x118   : > { %4439 = vmatpush1.bf16.msra.mxu1 %v4438_v30  ;;  %1731 = vmatprep.mubr.f32.mxu1 %v5033_v7  ;;  %v4442_v36 = vpack.c.bf16 %v1661_v35, %v1659_v34  ;;  %v1834_v30 = vld [vmem:[%s7780_s4 + $0x10] sm:$0xff]  ;;  %v1877_v34 = vld [vmem:[%s7780_s4 + $0x168] sm:$0xff]  ;;  %v2072_v28 = vld [vmem:[%s7780_s4 + $0x780] sm:$0xff] }
 0x119   : > { %v5495_v46 = vpop.f32.mrb[10].mxu1  ;;  %4441 = vmatprep.subr.bf16.mxu1 %v4440_v33  ;;  %v4518_v32 = vpack.c.bf16 %v1848_v31, %v1834_v30  ;;  %v1863_v33 = vld [vmem:[%s7780_s4 + $0xf8] sm:$0xff]  ;;  %v2101_v31 = vld [vmem:[%s7780_s4 + $0x868] sm:$0xff] }
 0x11a   : > { %4343 = vmatpush1.bf16.msra.mxu0 %v4342_v39  ;;  %v4370_v47 = vpack.c.bf16 %v5495_v46, %v5491_v44  ;;  %v5499_v48 = vpop.f32.mrb[11].mxu1  ;;  %v1663_v39 = vld [vmem:[%s7777_s1 + $0x3e0] sm:$0xff]  ;;  %v4520_v35 = vpack.c.bf16 %v1877_v34, %v1863_v33  ;;  %v2087_v30 = vld [vmem:[%s7780_s4 + $0x7f8] sm:$0xff]  ;;  %v2086_v33 = vld [vmem:[%s7780_s4 + $0x7f0] sm:$0xff] }
 0x11b   : > { %4345 = vmatprep.subr.bf16.mxu0 %v4344_v40  ;;  %v4368_v49 = vpack.c.bf16 %v5499_v48, %v5493_v45  ;;  %v4444_v40 = vpack.c.bf16 %v1666_v38, %v1664_v37  ;;  %v4446_v42 = vpack.c.bf16 %v1665_v41, %v1663_v39  ;;  %v1312_v45 = vld [vmem:[%s7777_s1 + $0xf8] sm:$0xff]  ;;  %v4236_v48 = vld [vmem:[%s7778_s2 + $0x20] sm:$0xff] }
 0x11c   : > { %4443 = vmatpush1.bf16.msra.mxu1 %v4442_v36  ;;  %v4392_v44 = vpack.c.bf16 %v1312_v45, %v1310_v0  ;;  %v1309_v46 = vld [vmem:[%s7777_s1 + $0x60] sm:$0xff]  ;;  %v1862_v36 = vld [vmem:[%s7780_s4 + $0xf0] sm:$0xff]  ;;  %v1891_v39 = vld [vmem:[%s7780_s4 + $0x1d8] sm:$0xff] }
 0x11d   : > { %4445 = vmatprep.subr.bf16.mxu1 %v4444_v40  ;;  %v1876_v37 = vld [vmem:[%s7780_s4 + $0x160] sm:$0xff]  ;;  %v1905_v40 = vld [vmem:[%s7780_s4 + $0x248] sm:$0xff]  ;;  %v1947_v45 = vld [vmem:[%s7780_s4 + $0x398] sm:$0xff] }
 0x11e   : > { %4347 = vmatpush1.bf16.msra.mxu0 %v4346_v43  ;;  %v4522_v38 = vpack.c.bf16 %v1876_v37, %v1862_v36  ;;  %v4524_v41 = vpack.c.bf16 %v1905_v40, %v1891_v39  ;;  %v2100_v34 = vld [vmem:[%s7780_s4 + $0x860] sm:$0xff]  ;;  %v2115_v36 = vld [vmem:[%s7780_s4 + $0x8d8] sm:$0xff]  ;;  %v2129_v37 = vld [vmem:[%s7780_s4 + $0x948] sm:$0xff] }
 0x11f   : > { %v2114_v39 = vld [vmem:[%s7780_s4 + $0x8d0] sm:$0xff]  ;;  %v2128_v40 = vld [vmem:[%s7780_s4 + $0x940] sm:$0xff] }
 0x120   : > { %4447 = vmatpush1.bf16.msra.mxu1 %v4446_v42  ;;  %v1890_v42 = vld [vmem:[%s7780_s4 + $0x1d0] sm:$0xff] }
 0x121   : > { %4230 = vmatmul.mubr.msk.f32.vlgmr.msra.gmra.mrb[6].mxu0 %vm296_vm0, %v5262_v56  ;;  %4517 = vmatprep.subr.bf16.mxu1 %v4516_v29  ;;  %v4550_v29 = vpack.c.bf16 %v2072_v28, %v2058_v27  ;;  %v1888_v27 = vld [vmem:[%s7780_s4 + $0x1c0] sm:$0xff]  ;;  %v1902_v28 = vld [vmem:[%s7780_s4 + $0x230] sm:$0xff] }
 0x122   : > { %882 = vmatprep.mubr.f32.mxu0 %v5033_v7 }
 0x123   : > { %4250 = vmatmul.mubr.msk.f32.vlgmr.msra.gmra.mrb[20].mxu1 %vm296_vm0, %v5262_v56 }
 0x124   : > { %1737 = vmatprep.mubr.f32.mxu1 %v5033_v7  ;;  %4519 = vmatpush1.bf16.msra.mxu1 %v4518_v32  ;;  %v4552_v32 = vpack.c.bf16 %v2101_v31, %v2087_v30  ;;  %v1931_v30 = vld [vmem:[%s7780_s4 + $0x318] sm:$0xff]  ;;  %v4462_v31 = vpack.c.bf16 %v1902_v28, %v1888_v27 }
 0x125   : > { %4231 = vmatmul.mubr.msk.f32.gmra.mrb[8].mxu0 %vm296_vm0, %v5279_v63  ;;  %v5503_v50 = vpop.f32.mrb[12].mxu1  ;;  %4521 = vmatprep.subr.bf16.mxu1 %v4520_v35  ;;  %v4554_v35 = vpack.c.bf16 %v2100_v34, %v2086_v33  ;;  %v1916_v33 = vld [vmem:[%s7780_s4 + $0x2a0] sm:$0xff]  ;;  %v1930_v34 = vld [vmem:[%s7780_s4 + $0x310] sm:$0xff]  ;;  %v2211_v27 = vld [vmem:[%s7780_s4 + $0xbd8] sm:$0xff] }
 0x126   : > { %958 = vmatprep.mubr.f32.mxu0 %v5033_v7  ;;  %v5505_v51 = vpop.f32.mrb[13].mxu1 }
 0x127   : > { %4251 = vmatmul.mubr.msk.f32.gmra.mrb[22].mxu1 %vm296_vm0, %v5279_v63 }
 0x128   : > { %4523 = vmatpush1.bf16.msra.mxu1 %v4522_v38  ;;  %v4556_v38 = vpack.c.bf16 %v2129_v37, %v2115_v36  ;;  %v1959_v36 = vld [vmem:[%s7780_s4 + $0x3f8] sm:$0xff]  ;;  %v4466_v37 = vpack.c.bf16 %v1930_v34, %v1916_v33 }
 0x129   : > { %v5507_v52 = vpop.f32.mrb[14].mxu1  ;;  %4525 = vmatprep.subr.bf16.mxu1 %v4524_v41  ;;  %v4558_v41 = vpack.c.bf16 %v2128_v40, %v2114_v39  ;;  %v1944_v39 = vld [vmem:[%s7780_s4 + $0x380] sm:$0xff]  ;;  %v1958_v40 = vld [vmem:[%s7780_s4 + $0x3f0] sm:$0xff]  ;;  %v2239_v33 = vld [vmem:[%s7780_s4 + $0xcb8] sm:$0xff] }
 0x12a   : > { %v4390_v53 = vpack.c.bf16 %v5507_v52, %v5503_v50  ;;  %v5511_v54 = vpop.f32.mrb[15].mxu1  ;;  %v1316_v50 = vld [vmem:[%s7777_s1 + $0x218] sm:$0xff] }
 0x12b   : > { %v4388_v55 = vpack.c.bf16 %v5511_v54, %v5505_v51  ;;  %v4240_v51 = vld [vmem:[%s7778_s2 + $0x28] sm:$0xff]  ;;  %v1313_v54 = vld [vmem:[%s7777_s1 + $0x180] sm:$0xff] }
 0x1e6   : > { %v5703_v15 = vpop.f32.mrb[16].mxu1 }
 0x1e7   : > { %v5705_v16 = vpop.f32.mrb[17].mxu1 }
 0x1ea   : > { %v5707_v17 = vpop.f32.mrb[18].mxu1 }
 0x1eb   : > { %v4430_v18 = vpack.c.bf16 %v5707_v17, %v5703_v15  ;;  %v5711_v19 = vpop.f32.mrb[19].mxu1  ;;  %v1832_v17 = vld [vmem:[%s7780_s4] sm:$0xff] }
 0x1f4   : > { %v878_v43 = vpop.f32.mrb[6].mxu0 }
 0x1f5   : > { %v880_v57 = vpop.f32.mrb[7].mxu0 }
 0x1f6   : > { %v5715_v20 = vpop.f32.mrb[20].mxu1 }
 0x1f7   : > { %v5717_v21 = vpop.f32.mrb[21].mxu1 }
 0x1f8   : > { %v884_v58 = vpop.f32.mrb[8].mxu0 }
 0x1f9   : > { %v4350_v59 = vpack.c.bf16 %v884_v58, %v878_v43  ;;  %v886_v60 = vpop.f32.mrb[9].mxu0  ;;  %v1904_v43 = vld [vmem:[%s7780_s4 + $0x240] sm:$0xff]  ;;  %v1919_v58 = vld [vmem:[%s7780_s4 + $0x2b8] sm:$0xff] }
 0x1fa   : > { %v4348_v61 = vpack.c.bf16 %v886_v60, %v880_v57  ;;  %v4526_v57 = vpack.c.bf16 %v1904_v43, %v1890_v42  ;;  %v2143_v42 = vld [vmem:[%s7780_s4 + $0x9b8] sm:$0xff]  ;;  %v2157_v43 = vld [vmem:[%s7780_s4 + $0xa28] sm:$0xff] }
 0x1fc   : > { %4349 = vmatprep.subr.bf16.mxu0 %v4348_v61  ;;  %4527 = vmatpush1.bf16.msra.mxu1 %v4526_v57  ;;  %v1918_v61 = vld [vmem:[%s7780_s4 + $0x2b0] sm:$0xff]  ;;  %v4560_v57 = vpack.c.bf16 %v2157_v43, %v2143_v42  ;;  %v1987_v42 = vld [vmem:[%s7780_s4 + $0x4d8] sm:$0xff]  ;;  %v4470_v43 = vpack.c.bf16 %v1958_v40, %v1944_v39  ;;  %v2253_v39 = vld [vmem:[%s7780_s4 + $0xd28] sm:$0xff] }
 0x1fd   : > { %4351 = vmatpush1.bf16.msra.mxu0 %v4350_v59  ;;  %v1933_v59 = vld [vmem:[%s7780_s4 + $0x328] sm:$0xff]  ;;  %v2267_v40 = vld [vmem:[%s7780_s4 + $0xd98] sm:$0xff] }
 0x1fe   : > { %4369 = vmatprep.subr.bf16.mxu0 %v4368_v49  ;;  %v1314_v49 = vld [vmem:[%s7777_s1 + $0x188] sm:$0xff]  ;;  %v4528_v60 = vpack.c.bf16 %v1933_v59, %v1919_v58  ;;  %v2142_v58 = vld [vmem:[%s7780_s4 + $0x9b0] sm:$0xff]  ;;  %v2156_v59 = vld [vmem:[%s7780_s4 + $0xa20] sm:$0xff] }
 0x200   : > { %4233 = vmatmul.mubr.msk.f32.vlgmr.msra.gmra.mrb[4].mxu0 %vm476_vm1, %v4232_v62  ;;  %v1932_v62 = vld [vmem:[%s7780_s4 + $0x320] sm:$0xff]  ;;  %4529 = vmatprep.subr.bf16.mxu1 %v4528_v60  ;;  %v4562_v60 = vpack.c.bf16 %v2156_v59, %v2142_v58  ;;  %v1986_v59 = vld [vmem:[%s7780_s4 + $0x4d0] sm:$0xff] }
 0x201   : > { %4371 = vmatpush1.bf16.msra.mxu0 %v4370_v47  ;;  %1129 = vmatprep.mubr.f32.mxu0 %v5033_v7  ;;  %v1311_v47 = vld [vmem:[%s7777_s1 + $0xf0] sm:$0xff]  ;;  %v4530_v0 = vpack.c.bf16 %v1932_v62, %v1918_v61  ;;  %v2171_v61 = vld [vmem:[%s7780_s4 + $0xa98] sm:$0xff]  ;;  %v2185_v62 = vld [vmem:[%s7780_s4 + $0xb08] sm:$0xff] }
 0x202   : > { %4389 = vmatprep.subr.bf16.mxu0 %v4388_v55  ;;  %v4394_v52 = vpack.c.bf16 %v1311_v47, %v1309_v46  ;;  %v1315_v55 = vld [vmem:[%s7777_s1 + $0x210] sm:$0xff]  ;;  %v1960_v47 = vld [vmem:[%s7780_s4 + $0x400] sm:$0xff] }
 0x203   : > { %v4398_v3 = vpack.c.bf16 %v1315_v55, %v1313_v54  ;;  %4531 = vmatpush1.bf16.msra.mxu1 %v4530_v0  ;;  %v1946_v46 = vld [vmem:[%s7780_s4 + $0x390] sm:$0xff]  ;;  %v1988_v54 = vld [vmem:[%s7780_s4 + $0x4e0] sm:$0xff]  ;;  %v4564_v0 = vpack.c.bf16 %v2185_v62, %v2171_v61  ;;  %v2015_v61 = vld [vmem:[%s7780_s4 + $0x5b8] sm:$0xff] }
 0x204   : > { %v1972_v58 = vld [vmem:[%s7780_s4 + $0x460] sm:$0xff] }
 0x205   : > { %v4474_v62 = vpack.c.bf16 %v1986_v59, %v1972_v58  ;;  %v2266_v58 = vld [vmem:[%s7780_s4 + $0xd90] sm:$0xff] }
 0x208   : > { %4237 = vmatmul.mubr.msk.f32.vlgmr.msra.gmra.mrb[4].mxu0 %vm476_vm1, %v4236_v48  ;;  %v1961_v48 = vld [vmem:[%s7780_s4 + $0x408] sm:$0xff] }
 0x209   : > { %4391 = vmatpush1.bf16.msra.mxu0 %v4390_v53  ;;  %1300 = vmatprep.mubr.f32.mxu0 %v5033_v7  ;;  %v4396_v53 = vpack.c.bf16 %v1316_v50, %v1314_v49  ;;  %v4534_v49 = vpack.c.bf16 %v1960_v47, %v1946_v46  ;;  %v1975_v50 = vld [vmem:[%s7780_s4 + $0x478] sm:$0xff]  ;;  %v2213_v47 = vld [vmem:[%s7780_s4 + $0xbe8] sm:$0xff] }
 0x20a   : > { %4393 = vmatprep.subr.bf16.mxu0 %v4392_v44  ;;  %v4532_v44 = vpack.c.bf16 %v1961_v48, %v1947_v45  ;;  %v2170_v45 = vld [vmem:[%s7780_s4 + $0xa90] sm:$0xff]  ;;  %v2184_v48 = vld [vmem:[%s7780_s4 + $0xb00] sm:$0xff]  ;;  %v2199_v46 = vld [vmem:[%s7780_s4 + $0xb78] sm:$0xff] }
 0x20c   : > { %4533 = vmatprep.subr.bf16.mxu1 %v4532_v44  ;;  %v4566_v44 = vpack.c.bf16 %v2184_v48, %v2170_v45  ;;  %v2000_v45 = vld [vmem:[%s7780_s4 + $0x540] sm:$0xff]  ;;  %v2014_v48 = vld [vmem:[%s7780_s4 + $0x5b0] sm:$0xff] }
 0x20d   : > { %4535 = vmatpush1.bf16.msra.mxu1 %v4534_v49  ;;  %v4568_v49 = vpack.c.bf16 %v2213_v47, %v2199_v46  ;;  %v2043_v46 = vld [vmem:[%s7780_s4 + $0x698] sm:$0xff]  ;;  %v4478_v47 = vpack.c.bf16 %v2014_v48, %v2000_v45  ;;  %v1837_v45 = vld [vmem:[%s7780_s4 + $0x28] sm:$0xff] }
 0x20e   : > { %v1851_v48 = vld [vmem:[%s7780_s4 + $0x98] sm:$0xff] }
 0x210   : > { %4241 = vmatmul.mubr.msk.f32.vlgmr.msra.gmra.mrb[4].mxu0 %vm476_vm1, %v4240_v51  ;;  %v1989_v51 = vld [vmem:[%s7780_s4 + $0x4e8] sm:$0xff] }
 0x211   : > { %4395 = vmatpush1.bf16.msra.mxu0 %v4394_v52  ;;  %1389 = vmatprep.mubr.f32.mxu0 %v5033_v7  ;;  %v4536_v52 = vpack.c.bf16 %v1989_v51, %v1975_v50  ;;  %v2198_v50 = vld [vmem:[%s7780_s4 + $0xb70] sm:$0xff]  ;;  %v2212_v51 = vld [vmem:[%s7780_s4 + $0xbe0] sm:$0xff] }
 0x212   : > { %4397 = vmatprep.subr.bf16.mxu0 %v4396_v53  ;;  %v1974_v53 = vld [vmem:[%s7780_s4 + $0x470] sm:$0xff] }
 0x213   : > { %4537 = vmatprep.subr.bf16.mxu1 %v4536_v52  ;;  %v4538_v55 = vpack.c.bf16 %v1988_v54, %v1974_v53  ;;  %v4570_v52 = vpack.c.bf16 %v2212_v51, %v2198_v50  ;;  %v2227_v53 = vld [vmem:[%s7780_s4 + $0xc58] sm:$0xff]  ;;  %v2241_v54 = vld [vmem:[%s7780_s4 + $0xcc8] sm:$0xff]  ;;  %v2028_v50 = vld [vmem:[%s7780_s4 + $0x620] sm:$0xff] }
 0x214   : > { %v2042_v51 = vld [vmem:[%s7780_s4 + $0x690] sm:$0xff] }
 0x215   : > { %4399 = vmatpush1.bf16.msra.mxu0 %v4398_v3  ;;  %v4540_v3 = vpack.c.bf16 %v2017_v2, %v2003_v1  ;;  %4539 = vmatpush1.bf16.msra.mxu1 %v4538_v55  ;;  %v4572_v55 = vpack.c.bf16 %v2241_v54, %v2227_v53  ;;  %v2226_v1 = vld [vmem:[%s7780_s4 + $0xc50] sm:$0xff]  ;;  %v2240_v2 = vld [vmem:[%s7780_s4 + $0xcc0] sm:$0xff]  ;;  %v2071_v53 = vld [vmem:[%s7780_s4 + $0x778] sm:$0xff]  ;;  %v4482_v54 = vpack.c.bf16 %v2042_v51, %v2028_v50  ;;  %v1826_v50 = vpop.permute.xlu0 %1825 }
 0x216   : > { %4401 = vmatprep.subr.bf16.mxu0 %v4400_v4  ;;  %v2002_v4 = vld [vmem:[%s7780_s4 + $0x550] sm:$0xff] }
 0x217   : > { %4541 = vmatprep.subr.bf16.mxu1 %v4540_v3  ;;  %v4542_v6 = vpack.c.bf16 %v2016_v5, %v2002_v4  ;;  %v4574_v3 = vpack.c.bf16 %v2240_v2, %v2226_v1  ;;  %v2056_v1 = vld [vmem:[%s7780_s4 + $0x700] sm:$0xff]  ;;  %v2070_v2 = vld [vmem:[%s7780_s4 + $0x770] sm:$0xff] }
 0x219   : > { %4403 = vmatpush1.bf16.msra.mxu0 %v4402_v10  ;;  %v4544_v10 = vpack.c.bf16 %v2045_v9, %v2031_v8  ;;  %4543 = vmatpush1.bf16.msra.mxu1 %v4542_v6 }
 0x21a   : > { %4405 = vmatprep.subr.bf16.mxu0 %v4404_v11  ;;  %v2030_v11 = vld [vmem:[%s7780_s4 + $0x630] sm:$0xff] }
 0x21b   : > { %4545 = vmatprep.subr.bf16.mxu1 %v4544_v10  ;;  %v4546_v13 = vpack.c.bf16 %v2044_v12, %v2030_v11  ;;  %v4244_v11 = vld [vmem:[%s7778_s2 + $0x30] sm:$0xff]  ;;  %v1833_v12 = vld [vmem:[%s7780_s4 + $0x8] sm:$0xff] }
 0x21d   : > { %4407 = vmatpush1.bf16.msra.mxu0 %v4406_v14  ;;  %v2059_v14 = vld [vmem:[%s7780_s4 + $0x718] sm:$0xff]  ;;  %4547 = vmatpush1.bf16.msra.mxu1 %v4546_v13  ;;  %v1889_v13 = vld [vmem:[%s7780_s4 + $0x1c8] sm:$0xff] }
 0x21e   : > { %v4548_v26 = vpack.c.bf16 %v2073_v25, %v2059_v14  ;;  %v1903_v14 = vld [vmem:[%s7780_s4 + $0x238] sm:$0xff] }
 0x220   : > { %4242 = vmatmul.mubr.msk.f32.vlgmr.msra.gmra.mrb[10].mxu0 %vm296_vm0, %v5262_v56  ;;  %v4428_v56 = vpack.c.bf16 %v5711_v19, %v5705_v16  ;;  %4549 = vmatprep.subr.bf16.mxu1 %v4548_v26  ;;  %v1847_v16 = vld [vmem:[%s7780_s4 + $0x78] sm:$0xff]  ;;  %v4460_v26 = vpack.c.bf16 %v1903_v14, %v1889_v13  ;;  %v2168_v14 = vld [vmem:[%s7780_s4 + $0xa80] sm:$0xff] }
 0x221   : > { %1395 = vmatprep.mubr.f32.mxu0 %v5033_v7  ;;  %4551 = vmatpush1.bf16.msra.mxu1 %v4550_v29  ;;  %v4248_v19 = vld [vmem:[%s7778_s2 + $0x38] sm:$0xff]  ;;  %v4452_v15 = vpack.c.bf16 %v1847_v16, %v1833_v12  ;;  %v1917_v29 = vld [vmem:[%s7780_s4 + $0x2a8] sm:$0xff] }
 0x222   : > { %4553 = vmatprep.subr.bf16.mxu1 %v4552_v32  ;;  %v4464_v32 = vpack.c.bf16 %v1931_v30, %v1917_v29  ;;  %v2196_v30 = vld [vmem:[%s7780_s4 + $0xb60] sm:$0xff] }
 0x224   : > { %4243 = vmatmul.mubr.msk.f32.gmra.mrb[12].mxu0 %vm296_vm0, %v5279_v63  ;;  %v5719_v63 = vpop.f32.mrb[22].mxu1 }
 0x225   : > { %1471 = vmatprep.mubr.f32.mxu0 %v5033_v7  ;;  %v4450_v22 = vpack.c.bf16 %v5719_v63, %v5715_v20  ;;  %v5723_v23 = vpop.f32.mrb[23].mxu1  ;;  %4555 = vmatpush1.bf16.msra.mxu1 %v4554_v35  ;;  %v1875_v20 = vld [vmem:[%s7780_s4 + $0x158] sm:$0xff]  ;;  %v1945_v35 = vld [vmem:[%s7780_s4 + $0x388] sm:$0xff] }
 0x226   : > { %v4448_v24 = vpack.c.bf16 %v5723_v23, %v5717_v21  ;;  %4557 = vmatprep.subr.bf16.mxu1 %v4556_v38  ;;  %v4252_v21 = vld [vmem:[%s7778_s2 + $0x40] sm:$0xff]  ;;  %v4468_v38 = vpack.c.bf16 %v1959_v36, %v1945_v35 }
 0x227   : > { %v1860_v23 = vld [vmem:[%s7780_s4 + $0xe0] sm:$0xff] }
 0x228   : > { %v2224_v36 = vld [vmem:[%s7780_s4 + $0xc40] sm:$0xff] }
 0x229   : > { %4559 = vmatpush1.bf16.msra.mxu1 %v4558_v41  ;;  %v1973_v41 = vld [vmem:[%s7780_s4 + $0x468] sm:$0xff] }
 0x22a   : > { %4561 = vmatprep.subr.bf16.mxu1 %v4560_v57  ;;  %v4472_v57 = vpack.c.bf16 %v1987_v42, %v1973_v41  ;;  %v2255_v41 = vld [vmem:[%s7780_s4 + $0xd38] sm:$0xff]  ;;  %v4512_v42 = vpack.c.bf16 %v2267_v40, %v2253_v39  ;;  %v1922_v39 = vld [vmem:[%s7780_s4 + $0x2d0] sm:$0xff]  ;;  %v1936_v40 = vld [vmem:[%s7780_s4 + $0x340] sm:$0xff] }
 0x22d   : > { %4563 = vmatpush1.bf16.msra.mxu1 %v4562_v60  ;;  %v2001_v60 = vld [vmem:[%s7780_s4 + $0x548] sm:$0xff] }
 0x22e   : > { %4565 = vmatprep.subr.bf16.mxu1 %v4564_v0  ;;  %v4476_v0 = vpack.c.bf16 %v2015_v61, %v2001_v60  ;;  %v2254_v61 = vld [vmem:[%s7780_s4 + $0xd30] sm:$0xff] }
 0x231   : > { %4567 = vmatpush1.bf16.msra.mxu1 %v4566_v44  ;;  %v2029_v44 = vld [vmem:[%s7780_s4 + $0x628] sm:$0xff] }
 0x232   : > { %4569 = vmatprep.subr.bf16.mxu1 %v4568_v49  ;;  %v4480_v49 = vpack.c.bf16 %v2043_v46, %v2029_v44  ;;  %v1839_v44 = vld [vmem:[%s7780_s4 + $0x38] sm:$0xff]  ;;  %v4580_v46 = vpack.c.bf16 %v1851_v48, %v1837_v45  ;;  %v1950_v45 = vld [vmem:[%s7780_s4 + $0x3b0] sm:$0xff]  ;;  %v1964_v48 = vld [vmem:[%s7780_s4 + $0x420] sm:$0xff] }
 0x235   : > { %4571 = vmatpush1.bf16.msra.mxu1 %v4570_v52  ;;  %v2057_v52 = vld [vmem:[%s7780_s4 + $0x708] sm:$0xff] }
 0x236   : > { %4573 = vmatprep.subr.bf16.mxu1 %v4572_v55  ;;  %v4484_v55 = vpack.c.bf16 %v2071_v53, %v2057_v52  ;;  %v1836_v52 = vld [vmem:[%s7780_s4 + $0x20] sm:$0xff] }
 0x239   : > { %4575 = vmatpush1.bf16.msra.mxu1 %v4574_v3  ;;  %v2085_v3 = vld [vmem:[%s7780_s4 + $0x7e8] sm:$0xff] }
 0x2f3   : > { %v1391_v4 = vpop.f32.mrb[10].mxu0 }
 0x2f4   : > { %v1393_v5 = vpop.f32.mrb[11].mxu0 }
 0x2f7   : > { %v1397_v6 = vpop.f32.mrb[12].mxu0 }
 0x2f8   : > { %v4410_v8 = vpack.c.bf16 %v1397_v6, %v1391_v4  ;;  %v1399_v9 = vpop.f32.mrb[13].mxu0  ;;  %v2099_v4 = vld [vmem:[%s7780_s4 + $0x858] sm:$0xff] }
 0x2f9   : > { %v4408_v10 = vpack.c.bf16 %v1399_v9, %v1393_v5  ;;  %v4486_v5 = vpack.c.bf16 %v2070_v2, %v2056_v1  ;;  %v4488_v6 = vpack.c.bf16 %v2099_v4, %v2085_v3  ;;  %v2098_v9 = vld [vmem:[%s7780_s4 + $0x850] sm:$0xff]  ;;  %v1852_v2 = vld [vmem:[%s7780_s4 + $0xa0] sm:$0xff]  ;;  %v1865_v4 = vld [vmem:[%s7780_s4 + $0x108] sm:$0xff] }
 0x2fa   : > { %v1838_v1 = vld [vmem:[%s7780_s4 + $0x30] sm:$0xff] }
 0x2fb   : > { %4409 = vmatprep.subr.bf16.mxu0 %v4408_v10  ;;  %v2113_v10 = vld [vmem:[%s7780_s4 + $0x8c8] sm:$0xff] }
 0x2fc   : > { %4411 = vmatpush1.bf16.msra.mxu0 %v4410_v8  ;;  %v2084_v8 = vld [vmem:[%s7780_s4 + $0x7e0] sm:$0xff] }
 0x2fd   : > { %4429 = vmatprep.subr.bf16.mxu0 %v4428_v56  ;;  %v1861_v56 = vld [vmem:[%s7780_s4 + $0xe8] sm:$0xff]  ;;  %v4490_v12 = vpack.c.bf16 %v2098_v9, %v2084_v8 }
 0x2fe   : > { %v1881_v8 = vld [vmem:[%s7780_s4 + $0x188] sm:$0xff] }
 0x2ff   : > { %4245 = vmatmul.mubr.msk.f32.vlgmr.msra.gmra.mrb[4].mxu0 %vm476_vm1, %v4244_v11  ;;  %v2127_v11 = vld [vmem:[%s7780_s4 + $0x938] sm:$0xff] }
 0x300   : > { %4431 = vmatpush1.bf16.msra.mxu0 %v4430_v18  ;;  %1642 = vmatprep.mubr.f32.mxu0 %v5033_v7  ;;  %v1846_v18 = vld [vmem:[%s7780_s4 + $0x70] sm:$0xff]  ;;  %v4492_v16 = vpack.c.bf16 %v2127_v11, %v2113_v10  ;;  %v4646_v11 = vpack.c.bf16 %v1852_v2, %v1838_v1  ;;  %v1992_v2 = vld [vmem:[%s7780_s4 + $0x500] sm:$0xff] }
 0x301   : > { %4449 = vmatprep.subr.bf16.mxu0 %v4448_v24  ;;  %v4454_v63 = vpack.c.bf16 %v1846_v18, %v1832_v17  ;;  %v1874_v24 = vld [vmem:[%s7780_s4 + $0x150] sm:$0xff]  ;;  %v2141_v17 = vld [vmem:[%s7780_s4 + $0x9a8] sm:$0xff]  ;;  %v2155_v18 = vld [vmem:[%s7780_s4 + $0xa18] sm:$0xff] }
 0x302   : > { %v4458_v25 = vpack.c.bf16 %v1874_v24, %v1860_v23  ;;  %v2183_v23 = vld [vmem:[%s7780_s4 + $0xaf8] sm:$0xff]  ;;  %v1978_v1 = vld [vmem:[%s7780_s4 + $0x490] sm:$0xff] }
 0x307   : > { %4249 = vmatmul.mubr.msk.f32.vlgmr.msra.gmra.mrb[4].mxu0 %vm476_vm1, %v4248_v19  ;;  %v2112_v19 = vld [vmem:[%s7780_s4 + $0x8c0] sm:$0xff] }
 0x308   : > { %4451 = vmatpush1.bf16.msra.mxu0 %v4450_v22  ;;  %1813 = vmatprep.mubr.f32.mxu0 %v5033_v7  ;;  %v4456_v22 = vpack.c.bf16 %v1875_v20, %v1861_v56  ;;  %v4496_v20 = vpack.c.bf16 %v2155_v18, %v2141_v17  ;;  %v1880_v17 = vld [vmem:[%s7780_s4 + $0x180] sm:$0xff]  ;;  %v1893_v18 = vld [vmem:[%s7780_s4 + $0x1e8] sm:$0xff] }
 0x309   : > { %4453 = vmatprep.subr.bf16.mxu0 %v4452_v15  ;;  %v2126_v15 = vld [vmem:[%s7780_s4 + $0x930] sm:$0xff] }
 0x30a   : > { %v4494_v56 = vpack.c.bf16 %v2126_v15, %v2112_v19  ;;  %v1866_v15 = vld [vmem:[%s7780_s4 + $0x110] sm:$0xff] }
 0x30f   : > { %4253 = vmatmul.mubr.msk.f32.vlgmr.msra.gmra.mrb[4].mxu0 %vm476_vm1, %v4252_v21  ;;  %v2140_v21 = vld [vmem:[%s7780_s4 + $0x9a0] sm:$0xff] }
 0x310   : > { %4455 = vmatpush1.bf16.msra.mxu0 %v4454_v63  ;;  %v2154_v63 = vld [vmem:[%s7780_s4 + $0xa10] sm:$0xff] }
 0x311   : > { %4457 = vmatprep.subr.bf16.mxu0 %v4456_v22  ;;  %v2169_v22 = vld [vmem:[%s7780_s4 + $0xa88] sm:$0xff]  ;;  %v4498_v24 = vpack.c.bf16 %v2154_v63, %v2140_v21  ;;  %v1907_v21 = vld [vmem:[%s7780_s4 + $0x258] sm:$0xff] }
 0x312   : > { %v4500_v13 = vpack.c.bf16 %v2183_v23, %v2169_v22  ;;  %v1895_v63 = vld [vmem:[%s7780_s4 + $0x1f8] sm:$0xff]  ;;  %v1909_v22 = vld [vmem:[%s7780_s4 + $0x268] sm:$0xff] }
 0x314   : > { %4459 = vmatpush1.bf16.msra.mxu0 %v4458_v25  ;;  %v2182_v25 = vld [vmem:[%s7780_s4 + $0xaf0] sm:$0xff] }
 0x315   : > { %4461 = vmatprep.subr.bf16.mxu0 %v4460_v26  ;;  %v2197_v26 = vld [vmem:[%s7780_s4 + $0xb68] sm:$0xff]  ;;  %v4502_v28 = vpack.c.bf16 %v2182_v25, %v2168_v14  ;;  %v1906_v14 = vld [vmem:[%s7780_s4 + $0x250] sm:$0xff]  ;;  %v4588_v25 = vpack.c.bf16 %v1907_v21, %v1893_v18  ;;  %v2020_v18 = vld [vmem:[%s7780_s4 + $0x5e0] sm:$0xff] }
 0x316   : > { %v4504_v29 = vpack.c.bf16 %v2211_v27, %v2197_v26  ;;  %v4652_v26 = vpack.c.bf16 %v1909_v22, %v1895_v63  ;;  %v1894_v27 = vld [vmem:[%s7780_s4 + $0x1f0] sm:$0xff]  ;;  %v2035_v21 = vld [vmem:[%s7780_s4 + $0x658] sm:$0xff]  ;;  %v2049_v63 = vld [vmem:[%s7780_s4 + $0x6c8] sm:$0xff] }
 0x318   : > { %4463 = vmatpush1.bf16.msra.mxu0 %v4462_v31  ;;  %v2210_v31 = vld [vmem:[%s7780_s4 + $0xbd0] sm:$0xff] }
 0x319   : > { %4465 = vmatprep.subr.bf16.mxu0 %v4464_v32  ;;  %v2225_v32 = vld [vmem:[%s7780_s4 + $0xc48] sm:$0xff]  ;;  %v4506_v34 = vpack.c.bf16 %v2210_v31, %v2196_v30  ;;  %v1935_v30 = vld [vmem:[%s7780_s4 + $0x338] sm:$0xff] }
 0x31a   : > { %v4508_v35 = vpack.c.bf16 %v2239_v33, %v2225_v32  ;;  %v1923_v31 = vld [vmem:[%s7780_s4 + $0x2d8] sm:$0xff]  ;;  %v1937_v32 = vld [vmem:[%s7780_s4 + $0x348] sm:$0xff] }
 0x31c   : > { %4467 = vmatpush1.bf16.msra.mxu0 %v4466_v37  ;;  %v2238_v37 = vld [vmem:[%s7780_s4 + $0xcb0] sm:$0xff] }
 0x31d   : > { %4469 = vmatprep.subr.bf16.mxu0 %v4468_v38  ;;  %v4510_v38 = vpack.c.bf16 %v2238_v37, %v2224_v36  ;;  %v1934_v36 = vld [vmem:[%s7780_s4 + $0x330] sm:$0xff] }
 0x320   : > { %4471 = vmatpush1.bf16.msra.mxu0 %v4470_v43  ;;  %v2269_v43 = vld [vmem:[%s7780_s4 + $0xda8] sm:$0xff] }
 0x321   : > { %4473 = vmatprep.subr.bf16.mxu0 %v4472_v57  ;;  %v2252_v57 = vld [vmem:[%s7780_s4 + $0xd20] sm:$0xff]  ;;  %v4576_v59 = vpack.c.bf16 %v2269_v43, %v2255_v41  ;;  %v1949_v41 = vld [vmem:[%s7780_s4 + $0x3a8] sm:$0xff]  ;;  %v1951_v43 = vld [vmem:[%s7780_s4 + $0x3b8] sm:$0xff] }
 0x322   : > { %v4514_v60 = vpack.c.bf16 %v2266_v58, %v2252_v57  ;;  %v1965_v57 = vld [vmem:[%s7780_s4 + $0x428] sm:$0xff] }
 0x323   : > { %4577 = vmatprep.subr.bf16.mxu1 %v4576_v59  ;;  %v4658_v59 = vpack.c.bf16 %v1936_v40, %v1922_v39  ;;  %v2076_v39 = vld [vmem:[%s7780_s4 + $0x7a0] sm:$0xff]  ;;  %v2089_v40 = vld [vmem:[%s7780_s4 + $0x808] sm:$0xff] }
 0x324   : > { %4475 = vmatpush1.bf16.msra.mxu0 %v4474_v62  ;;  %v2268_v62 = vld [vmem:[%s7780_s4 + $0xda0] sm:$0xff] }
 0x325   : > { %4477 = vmatprep.subr.bf16.mxu0 %v4476_v0  ;;  %v4578_v0 = vpack.c.bf16 %v2268_v62, %v2254_v61  ;;  %v1962_v61 = vld [vmem:[%s7780_s4 + $0x410] sm:$0xff] }
 0x327   : > { %4579 = vmatpush1.bf16.msra.mxu1 %v4578_v0  ;;  %v4660_v0 = vpack.c.bf16 %v1965_v57, %v1951_v43  ;;  %v2105_v43 = vld [vmem:[%s7780_s4 + $0x888] sm:$0xff] }
 0x328   : > { %4479 = vmatpush1.bf16.msra.mxu0 %v4478_v47  ;;  %v1853_v47 = vld [vmem:[%s7780_s4 + $0xa8] sm:$0xff] }
 0x329   : > { %4481 = vmatprep.subr.bf16.mxu0 %v4480_v49  ;;  %v4644_v49 = vpack.c.bf16 %v1853_v47, %v1839_v44  ;;  %v1977_v44 = vld [vmem:[%s7780_s4 + $0x488] sm:$0xff]  ;;  %v1979_v47 = vld [vmem:[%s7780_s4 + $0x498] sm:$0xff] }
 0x32b   : > { %4645 = vmatprep.subr.bf16.mxu1 %v4644_v49  ;;  %v1993_v49 = vld [vmem:[%s7780_s4 + $0x508] sm:$0xff] }
 0x32c   : > { %4483 = vmatpush1.bf16.msra.mxu0 %v4482_v54 }
 0x32d   : > { %4485 = vmatprep.subr.bf16.mxu0 %v4484_v55  ;;  %v1850_v55 = vld [vmem:[%s7780_s4 + $0x90] sm:$0xff] }
 0x32e   : > { %v4582_v10 = vpack.c.bf16 %v1850_v55, %v1836_v52  ;;  %v1976_v52 = vld [vmem:[%s7780_s4 + $0x480] sm:$0xff]  ;;  %v4664_v55 = vpack.c.bf16 %v1993_v49, %v1979_v47  ;;  %v2133_v47 = vld [vmem:[%s7780_s4 + $0x968] sm:$0xff] }
 0x330   : > { %4487 = vmatpush1.bf16.msra.mxu0 %v4486_v5  ;;  %v1879_v5 = vld [vmem:[%s7780_s4 + $0x178] sm:$0xff] }
 0x331   : > { %4489 = vmatprep.subr.bf16.mxu0 %v4488_v6  ;;  %v1867_v6 = vld [vmem:[%s7780_s4 + $0x118] sm:$0xff] }
 0x334   : > { %4491 = vmatpush1.bf16.msra.mxu0 %v4490_v12  ;;  %v1864_v12 = vld [vmem:[%s7780_s4 + $0x100] sm:$0xff] }
 0x335   : > { %4493 = vmatprep.subr.bf16.mxu0 %v4492_v16  ;;  %v1878_v16 = vld [vmem:[%s7780_s4 + $0x170] sm:$0xff] }
 0x336   : > { %v4586_v23 = vpack.c.bf16 %v1878_v16, %v1864_v12  ;;  %v2018_v12 = vld [vmem:[%s7780_s4 + $0x5d0] sm:$0xff] }
 0x338   : > { %4495 = vmatpush1.bf16.msra.mxu0 %v4494_v56  ;;  %v4584_v56 = vpack.c.bf16 %v1879_v5, %v1865_v4  ;;  %v2019_v4 = vld [vmem:[%s7780_s4 + $0x5d8] sm:$0xff] }
 0x339   : > { %4497 = vmatprep.subr.bf16.mxu0 %v4496_v20  ;;  %v4648_v20 = vpack.c.bf16 %v1881_v8, %v1867_v6  ;;  %v2007_v5 = vld [vmem:[%s7780_s4 + $0x578] sm:$0xff]  ;;  %v2021_v6 = vld [vmem:[%s7780_s4 + $0x5e8] sm:$0xff] }
 0x33c   : > { %4499 = vmatpush1.bf16.msra.mxu0 %v4498_v24  ;;  %v4650_v24 = vpack.c.bf16 %v1880_v17, %v1866_v15  ;;  %v4668_v15 = vpack.c.bf16 %v2021_v6, %v2007_v5  ;;  %v2006_v17 = vld [vmem:[%s7780_s4 + $0x570] sm:$0xff]  ;;  %v2161_v5 = vld [vmem:[%s7780_s4 + $0xa48] sm:$0xff] }
 0x33d   : > { %4501 = vmatprep.subr.bf16.mxu0 %v4500_v13  ;;  %v1892_v13 = vld [vmem:[%s7780_s4 + $0x1e0] sm:$0xff] }
 0x33e   : > { %v4590_v33 = vpack.c.bf16 %v1906_v14, %v1892_v13  ;;  %v2046_v13 = vld [vmem:[%s7780_s4 + $0x6b0] sm:$0xff] }
 0x340   : > { %4503 = vmatpush1.bf16.msra.mxu0 %v4502_v28  ;;  %v1908_v28 = vld [vmem:[%s7780_s4 + $0x260] sm:$0xff] }
 0x341   : > { %4505 = vmatprep.subr.bf16.mxu0 %v4504_v29  ;;  %v1921_v29 = vld [vmem:[%s7780_s4 + $0x2c8] sm:$0xff] }
 0x342   : > { %v4592_v37 = vpack.c.bf16 %v1935_v30, %v1921_v29  ;;  %v2075_v29 = vld [vmem:[%s7780_s4 + $0x798] sm:$0xff] }
 0x343   : > { %v2063_v30 = vld [vmem:[%s7780_s4 + $0x738] sm:$0xff] }
 0x344   : > { %4507 = vmatpush1.bf16.msra.mxu0 %v4506_v34  ;;  %v4654_v34 = vpack.c.bf16 %v1908_v28, %v1894_v27  ;;  %v2048_v27 = vld [vmem:[%s7780_s4 + $0x6c0] sm:$0xff]  ;;  %v2061_v28 = vld [vmem:[%s7780_s4 + $0x728] sm:$0xff] }
 0x345   : > { %4509 = vmatprep.subr.bf16.mxu0 %v4508_v35  ;;  %v1920_v35 = vld [vmem:[%s7780_s4 + $0x2c0] sm:$0xff] }
 0x346   : > { %v4594_v58 = vpack.c.bf16 %v1934_v36, %v1920_v35  ;;  %v2074_v35 = vld [vmem:[%s7780_s4 + $0x790] sm:$0xff]  ;;  %v4612_v36 = vpack.c.bf16 %v2075_v29, %v2061_v28  ;;  %v2215_v28 = vld [vmem:[%s7780_s4 + $0xbf8] sm:$0xff] }
 0x347   : > { %v2203_v29 = vld [vmem:[%s7780_s4 + $0xb98] sm:$0xff] }
 0x348   : > { %4511 = vmatpush1.bf16.msra.mxu0 %v4510_v38  ;;  %v4656_v38 = vpack.c.bf16 %v1937_v32, %v1923_v31  ;;  %v2077_v31 = vld [vmem:[%s7780_s4 + $0x7a8] sm:$0xff] }
 0x349   : > { %4513 = vmatprep.subr.bf16.mxu0 %v4512_v42  ;;  %v1963_v42 = vld [vmem:[%s7780_s4 + $0x418] sm:$0xff] }
 0x34a   : > { %v4596_v62 = vpack.c.bf16 %v1963_v42, %v1949_v41  ;;  %v2103_v41 = vld [vmem:[%s7780_s4 + $0x878] sm:$0xff] }
 0x34b   : > { %v2091_v42 = vld [vmem:[%s7780_s4 + $0x818] sm:$0xff] }
 0x34c   : > { %4515 = vmatpush1.bf16.msra.mxu0 %v4514_v60  ;;  %v1948_v60 = vld [vmem:[%s7780_s4 + $0x3a0] sm:$0xff] }
 0x34d   : > { %4581 = vmatprep.subr.bf16.mxu0 %v4580_v46  ;;  %v1991_v46 = vld [vmem:[%s7780_s4 + $0x4f8] sm:$0xff] }
 0x3e2   : > { %v1815_v51 = vpop.f32.mrb[4].mxu0 }
 0x3e3   : > { %v1828_v53 = vadd.f32 %v1826_v50, %v1815_v51  ;;  %v1817_v54 = vpop.f32.mrb[5].mxu0  ;;  %v4662_v51 = vpack.c.bf16 %v1964_v48, %v1950_v45  ;;  %v2104_v45 = vld [vmem:[%s7780_s4 + $0x880] sm:$0xff]  ;;  %v2117_v48 = vld [vmem:[%s7780_s4 + $0x8e8] sm:$0xff] }
 0x3e4   : > { %v1829_v3 = vadd.f32 %v1826_v50, %v1817_v54  ;;  %v4598_v50 = vpack.c.bf16 %v1962_v61, %v1948_v60  ;;  %v4600_v54 = vpack.c.bf16 %v1991_v46, %v1977_v44  ;;  %v2102_v60 = vld [vmem:[%s7780_s4 + $0x870] sm:$0xff]  ;;  %v4616_v61 = vpack.c.bf16 %v2103_v41, %v2089_v40  ;;  %v2131_v44 = vld [vmem:[%s7780_s4 + $0x958] sm:$0xff] }
 0x3e5   : > { %v6184_v19 = vmax.f32 %v1828_v53, 0.0  ;;  %v1990_v53 = vld [vmem:[%s7780_s4 + $0x4f0] sm:$0xff]  ;;  %v2119_v46 = vld [vmem:[%s7780_s4 + $0x8f8] sm:$0xff] }
 0x3e6   : > { %v6176_v9 = vmax.f32 %v1829_v3, 0.0  ;;  %v2005_v3 = vld [vmem:[%s7780_s4 + $0x568] sm:$0xff]  ;;  %v4602_v8 = vpack.c.bf16 %v1990_v53, %v1976_v52  ;;  %v2130_v52 = vld [vmem:[%s7780_s4 + $0x950] sm:$0xff]  ;;  %v4620_v53 = vpack.c.bf16 %v2131_v44, %v2117_v48  ;;  %v2243_v40 = vld [vmem:[%s7780_s4 + $0xcd8] sm:$0xff] }
 0x3e7   : > { %v4604_v16 = vpack.c.bf16 %v2019_v4, %v2005_v3  ;;  %v2159_v3 = vld [vmem:[%s7780_s4 + $0xa38] sm:$0xff] }
 0x3e8   : > { %2344 = vmatprep.mubr.f32.mxu0 %v6176_v9  ;;  %2415 = vmatprep.mubr.f32.mxu1 %v6176_v9  ;;  %v2147_v4 = vld [vmem:[%s7780_s4 + $0x9d8] sm:$0xff] }
 0x3e9   : > { %2345 = vmatmul.mubr.f32.vlgmr.msra.gmra.mrb[14].mxu0 %v6184_v19  ;;  %2416 = vmatmul.mubr.f32.vlgmr.msra.gmra.mrb[24].mxu1 %v6184_v19  ;;  %v2231_v41 = vld [vmem:[%s7780_s4 + $0xc78] sm:$0xff] }
 0x3ea   : > { %4583 = vmatpush1.bf16.msra.mxu0 %v4582_v10  ;;  %4647 = vmatpush1.bf16.msra.mxu1 %v4646_v11  ;;  %v4666_v10 = vpack.c.bf16 %v1992_v2, %v1978_v1  ;;  %v2004_v11 = vld [vmem:[%s7780_s4 + $0x560] sm:$0xff]  ;;  %v2145_v2 = vld [vmem:[%s7780_s4 + $0x9c8] sm:$0xff]  ;;  %v2271_v48 = vld [vmem:[%s7780_s4 + $0xdb8] sm:$0xff] }
 0x3eb   : > { %2486 = vmatprep.mubr.f32.mxu0 %v6176_v9  ;;  %2557 = vmatprep.mubr.f32.mxu1 %v6176_v9  ;;  %v4606_v22 = vpack.c.bf16 %v2018_v12, %v2004_v11  ;;  %v2132_v1 = vld [vmem:[%s7780_s4 + $0x960] sm:$0xff]  ;;  %v2158_v11 = vld [vmem:[%s7780_s4 + $0xa30] sm:$0xff]  ;;  %v4624_v12 = vpack.c.bf16 %v2159_v3, %v2145_v2  ;;  %v2259_v44 = vld [vmem:[%s7780_s4 + $0xd58] sm:$0xff] }
 0x3ec   : > { %4585 = vmatprep.subr.bf16.mxu0 %v4584_v56  ;;  %4649 = vmatprep.subr.bf16.mxu1 %v4648_v20  ;;  %v2033_v56 = vld [vmem:[%s7780_s4 + $0x648] sm:$0xff]  ;;  %v2047_v20 = vld [vmem:[%s7780_s4 + $0x6b8] sm:$0xff] }
 0x3ed   : > { %v4608_v14 = vpack.c.bf16 %v2047_v20, %v2033_v56  ;;  %v2187_v56 = vld [vmem:[%s7780_s4 + $0xb18] sm:$0xff] }
 0x3ee   : > { %4587 = vmatpush1.bf16.msra.mxu0 %v4586_v23  ;;  %4651 = vmatpush1.bf16.msra.mxu1 %v4650_v24  ;;  %v4670_v23 = vpack.c.bf16 %v2020_v18, %v2006_v17  ;;  %v2032_v24 = vld [vmem:[%s7780_s4 + $0x640] sm:$0xff]  ;;  %v2173_v18 = vld [vmem:[%s7780_s4 + $0xaa8] sm:$0xff]  ;;  %v2175_v20 = vld [vmem:[%s7780_s4 + $0xab8] sm:$0xff] }
 0x3ef   : > { %4589 = vmatprep.subr.bf16.mxu0 %v4588_v25  ;;  %4653 = vmatprep.subr.bf16.mxu1 %v4652_v26  ;;  %v4672_v25 = vpack.c.bf16 %v2049_v63, %v2035_v21  ;;  %v2034_v26 = vld [vmem:[%s7780_s4 + $0x650] sm:$0xff]  ;;  %v4610_v32 = vpack.c.bf16 %v2046_v13, %v2032_v24  ;;  %v2160_v17 = vld [vmem:[%s7780_s4 + $0xa40] sm:$0xff]  ;;  %v2189_v21 = vld [vmem:[%s7780_s4 + $0xb28] sm:$0xff]  ;;  %v4628_v13 = vpack.c.bf16 %v2187_v56, %v2173_v18 }
 0x3f0   : > { %v2186_v24 = vld [vmem:[%s7780_s4 + $0xb10] sm:$0xff]  ;;  %v1855_v2 = vld [vmem:[%s7780_s4 + $0xb8] sm:$0xff] }
 0x3f1   : > { %v1843_v3 = vld [vmem:[%s7780_s4 + $0x58] sm:$0xff] }
 0x3f2   : > { %4591 = vmatpush1.bf16.msra.mxu0 %v4590_v33  ;;  %4655 = vmatpush1.bf16.msra.mxu1 %v4654_v34  ;;  %v4674_v33 = vpack.c.bf16 %v2048_v27, %v2034_v26  ;;  %v2060_v34 = vld [vmem:[%s7780_s4 + $0x720] sm:$0xff]  ;;  %v2201_v27 = vld [vmem:[%s7780_s4 + $0xb88] sm:$0xff]  ;;  %v1883_v18 = vld [vmem:[%s7780_s4 + $0x198] sm:$0xff] }
 0x3f3   : > { %4593 = vmatprep.subr.bf16.mxu0 %v4592_v37  ;;  %4657 = vmatprep.subr.bf16.mxu1 %v4656_v38  ;;  %v4676_v37 = vpack.c.bf16 %v2077_v31, %v2063_v30  ;;  %v2062_v38 = vld [vmem:[%s7780_s4 + $0x730] sm:$0xff]  ;;  %v4614_v57 = vpack.c.bf16 %v2074_v35, %v2060_v34  ;;  %v2188_v26 = vld [vmem:[%s7780_s4 + $0xb20] sm:$0xff]  ;;  %v2217_v30 = vld [vmem:[%s7780_s4 + $0xc08] sm:$0xff]  ;;  %v4632_v35 = vpack.c.bf16 %v2215_v28, %v2201_v27 }
 0x3f4   : > { %v2214_v34 = vld [vmem:[%s7780_s4 + $0xbf0] sm:$0xff]  ;;  %v1871_v56 = vld [vmem:[%s7780_s4 + $0x138] sm:$0xff] }
 0x3f5   : > { %v1911_v27 = vld [vmem:[%s7780_s4 + $0x278] sm:$0xff] }
 0x3f6   : > { %4595 = vmatpush1.bf16.msra.mxu0 %v4594_v58  ;;  %4659 = vmatpush1.bf16.msra.mxu1 %v4658_v59  ;;  %v4678_v58 = vpack.c.bf16 %v2076_v39, %v2062_v38  ;;  %v2088_v59 = vld [vmem:[%s7780_s4 + $0x800] sm:$0xff]  ;;  %v2229_v39 = vld [vmem:[%s7780_s4 + $0xc68] sm:$0xff]  ;;  %v1899_v28 = vld [vmem:[%s7780_s4 + $0x218] sm:$0xff] }
 0x3f7   : > { %4597 = vmatprep.subr.bf16.mxu0 %v4596_v62  ;;  %4661 = vmatprep.subr.bf16.mxu1 %v4660_v0  ;;  %v4680_v62 = vpack.c.bf16 %v2105_v43, %v2091_v42  ;;  %v2090_v0 = vld [vmem:[%s7780_s4 + $0x810] sm:$0xff]  ;;  %v4618_v49 = vpack.c.bf16 %v2102_v60, %v2088_v59  ;;  %v2216_v38 = vld [vmem:[%s7780_s4 + $0xc00] sm:$0xff]  ;;  %v2245_v42 = vld [vmem:[%s7780_s4 + $0xce8] sm:$0xff]  ;;  %v4636_v60 = vpack.c.bf16 %v2243_v40, %v2229_v39 }
 0x3f8   : > { %v2242_v59 = vld [vmem:[%s7780_s4 + $0xcd0] sm:$0xff]  ;;  %v1939_v39 = vld [vmem:[%s7780_s4 + $0x358] sm:$0xff] }
 0x3f9   : > { %v1927_v40 = vld [vmem:[%s7780_s4 + $0x2f8] sm:$0xff] }
 0x3fa   : > { %4599 = vmatpush1.bf16.msra.mxu0 %v4598_v50  ;;  %4663 = vmatpush1.bf16.msra.mxu1 %v4662_v51  ;;  %v4682_v50 = vpack.c.bf16 %v2104_v45, %v2090_v0  ;;  %v2116_v51 = vld [vmem:[%s7780_s4 + $0x8e0] sm:$0xff]  ;;  %v2257_v45 = vld [vmem:[%s7780_s4 + $0xd48] sm:$0xff] }
 0x3fb   : > { %4601 = vmatprep.subr.bf16.mxu0 %v4600_v54  ;;  %4665 = vmatprep.subr.bf16.mxu1 %v4664_v55  ;;  %v4684_v54 = vpack.c.bf16 %v2133_v47, %v2119_v46  ;;  %v2118_v55 = vld [vmem:[%s7780_s4 + $0x8f0] sm:$0xff]  ;;  %v4622_v6 = vpack.c.bf16 %v2130_v52, %v2116_v51  ;;  %v2244_v0 = vld [vmem:[%s7780_s4 + $0xce0] sm:$0xff]  ;;  %v2273_v46 = vld [vmem:[%s7780_s4 + $0xdc8] sm:$0xff]  ;;  %v4640_v52 = vpack.c.bf16 %v2271_v48, %v2257_v45 }
 0x3fc   : > { %v2270_v51 = vld [vmem:[%s7780_s4 + $0xdb0] sm:$0xff]  ;;  %v1967_v45 = vld [vmem:[%s7780_s4 + $0x438] sm:$0xff] }
 0x3fd   : > { %v1955_v48 = vld [vmem:[%s7780_s4 + $0x3d8] sm:$0xff] }
 0x3fe   : > { %4603 = vmatpush1.bf16.msra.mxu0 %v4602_v8  ;;  %4667 = vmatpush1.bf16.msra.mxu1 %v4666_v10  ;;  %v4686_v8 = vpack.c.bf16 %v2132_v1, %v2118_v55  ;;  %v2144_v10 = vld [vmem:[%s7780_s4 + $0x9c0] sm:$0xff]  ;;  %v1841_v1 = vld [vmem:[%s7780_s4 + $0x48] sm:$0xff] }
 0x3ff   : > { %4605 = vmatprep.subr.bf16.mxu0 %v4604_v16  ;;  %4669 = vmatprep.subr.bf16.mxu1 %v4668_v15  ;;  %v4688_v16 = vpack.c.bf16 %v2161_v5, %v2147_v4  ;;  %v2146_v15 = vld [vmem:[%s7780_s4 + $0x9d0] sm:$0xff]  ;;  %v4626_v63 = vpack.c.bf16 %v2158_v11, %v2144_v10  ;;  %v2272_v55 = vld [vmem:[%s7780_s4 + $0xdc0] sm:$0xff]  ;;  %v1857_v4 = vld [vmem:[%s7780_s4 + $0xc8] sm:$0xff] }
 0x400   : > { %v4772_v10 = vpack.c.bf16 %v1857_v4, %v1843_v3  ;;  %v1840_v11 = vld [vmem:[%s7780_s4 + $0x40] sm:$0xff]  ;;  %v1997_v3 = vld [vmem:[%s7780_s4 + $0x528] sm:$0xff] }
 0x402   : > { %4607 = vmatpush1.bf16.msra.mxu0 %v4606_v22  ;;  %4671 = vmatpush1.bf16.msra.mxu1 %v4670_v23  ;;  %v4690_v22 = vpack.c.bf16 %v2160_v17, %v2146_v15  ;;  %v2172_v23 = vld [vmem:[%s7780_s4 + $0xaa0] sm:$0xff]  ;;  %v1869_v17 = vld [vmem:[%s7780_s4 + $0x128] sm:$0xff] }
 0x403   : > { %4609 = vmatprep.subr.bf16.mxu0 %v4608_v14  ;;  %4673 = vmatprep.subr.bf16.mxu1 %v4672_v25  ;;  %v4692_v14 = vpack.c.bf16 %v2189_v21, %v2175_v20  ;;  %v2174_v25 = vld [vmem:[%s7780_s4 + $0xab0] sm:$0xff]  ;;  %v4630_v31 = vpack.c.bf16 %v2186_v24, %v2172_v23  ;;  %v1856_v15 = vld [vmem:[%s7780_s4 + $0xc0] sm:$0xff]  ;;  %v1885_v20 = vld [vmem:[%s7780_s4 + $0x1a8] sm:$0xff] }
 0x404   : > { %v1882_v23 = vld [vmem:[%s7780_s4 + $0x190] sm:$0xff] }
 0x405   : > { %v1870_v24 = vld [vmem:[%s7780_s4 + $0x130] sm:$0xff] }
 0x406   : > { %4611 = vmatpush1.bf16.msra.mxu0 %v4610_v32  ;;  %4675 = vmatpush1.bf16.msra.mxu1 %v4674_v33  ;;  %v4694_v32 = vpack.c.bf16 %v2188_v26, %v2174_v25  ;;  %v2200_v33 = vld [vmem:[%s7780_s4 + $0xb80] sm:$0xff]  ;;  %v1897_v26 = vld [vmem:[%s7780_s4 + $0x208] sm:$0xff] }
 0x407   : > { %4613 = vmatprep.subr.bf16.mxu0 %v4612_v36  ;;  %4677 = vmatprep.subr.bf16.mxu1 %v4676_v37  ;;  %v4696_v36 = vpack.c.bf16 %v2217_v30, %v2203_v29  ;;  %v2202_v37 = vld [vmem:[%s7780_s4 + $0xb90] sm:$0xff]  ;;  %v4634_v43 = vpack.c.bf16 %v2214_v34, %v2200_v33  ;;  %v1884_v25 = vld [vmem:[%s7780_s4 + $0x1a0] sm:$0xff]  ;;  %v1913_v29 = vld [vmem:[%s7780_s4 + $0x288] sm:$0xff] }
 0x408   : > { %v1896_v33 = vld [vmem:[%s7780_s4 + $0x200] sm:$0xff]  ;;  %v1910_v34 = vld [vmem:[%s7780_s4 + $0x270] sm:$0xff] }
 0x40a   : > { %4615 = vmatpush1.bf16.msra.mxu0 %v4614_v57  ;;  %4679 = vmatpush1.bf16.msra.mxu1 %v4678_v58  ;;  %v4698_v57 = vpack.c.bf16 %v2216_v38, %v2202_v37  ;;  %v2228_v58 = vld [vmem:[%s7780_s4 + $0xc60] sm:$0xff]  ;;  %v1925_v38 = vld [vmem:[%s7780_s4 + $0x2e8] sm:$0xff] }
 0x40b   : > { %4617 = vmatprep.subr.bf16.mxu0 %v4616_v61  ;;  %4681 = vmatprep.subr.bf16.mxu1 %v4680_v62  ;;  %v4700_v61 = vpack.c.bf16 %v2245_v42, %v2231_v41  ;;  %v2230_v62 = vld [vmem:[%s7780_s4 + $0xc70] sm:$0xff]  ;;  %v4638_v47 = vpack.c.bf16 %v2242_v59, %v2228_v58  ;;  %v1912_v37 = vld [vmem:[%s7780_s4 + $0x280] sm:$0xff]  ;;  %v1941_v41 = vld [vmem:[%s7780_s4 + $0x368] sm:$0xff]  ;;  %v4718_v42 = vpack.c.bf16 %v1910_v34, %v1896_v33 }
 0x40c   : > { %v1924_v58 = vld [vmem:[%s7780_s4 + $0x2e0] sm:$0xff]  ;;  %v1938_v59 = vld [vmem:[%s7780_s4 + $0x350] sm:$0xff] }
 0x40d   : > { %v2050_v33 = vld [vmem:[%s7780_s4 + $0x6d0] sm:$0xff] }
 0x40e   : > { %4619 = vmatpush1.bf16.msra.mxu0 %v4618_v49  ;;  %4683 = vmatpush1.bf16.msra.mxu1 %v4682_v50  ;;  %v4702_v49 = vpack.c.bf16 %v2244_v0, %v2230_v62  ;;  %v2256_v50 = vld [vmem:[%s7780_s4 + $0xd40] sm:$0xff]  ;;  %v1953_v0 = vld [vmem:[%s7780_s4 + $0x3c8] sm:$0xff]  ;;  %v2038_v34 = vld [vmem:[%s7780_s4 + $0x670] sm:$0xff] }
 0x40f   : > { %4621 = vmatprep.subr.bf16.mxu0 %v4620_v53  ;;  %4685 = vmatprep.subr.bf16.mxu1 %v4684_v54  ;;  %v4704_v53 = vpack.c.bf16 %v2273_v46, %v2259_v44  ;;  %v2258_v54 = vld [vmem:[%s7780_s4 + $0xd50] sm:$0xff]  ;;  %v4642_v5 = vpack.c.bf16 %v2270_v51, %v2256_v50  ;;  %v1940_v62 = vld [vmem:[%s7780_s4 + $0x360] sm:$0xff]  ;;  %v1969_v44 = vld [vmem:[%s7780_s4 + $0x448] sm:$0xff]  ;;  %v4722_v46 = vpack.c.bf16 %v1938_v59, %v1924_v58 }
 0x410   : > { %v1952_v50 = vld [vmem:[%s7780_s4 + $0x3c0] sm:$0xff]  ;;  %v1966_v51 = vld [vmem:[%s7780_s4 + $0x430] sm:$0xff] }
 0x411   : > { %v4726_v4 = vpack.c.bf16 %v1966_v51, %v1952_v50  ;;  %v2078_v58 = vld [vmem:[%s7780_s4 + $0x7b0] sm:$0xff] }
 0x412   : > { %4623 = vmatpush1.bf16.msra.mxu0 %v4622_v6  ;;  %4687 = vmatpush1.bf16.msra.mxu1 %v4686_v8  ;;  %v4706_v6 = vpack.c.bf16 %v2272_v55, %v2258_v54  ;;  %v4708_v8 = vpack.c.bf16 %v1855_v2, %v1841_v1  ;;  %v1968_v54 = vld [vmem:[%s7780_s4 + $0x440] sm:$0xff]  ;;  %v1981_v55 = vld [vmem:[%s7780_s4 + $0x4a8] sm:$0xff]  ;;  %v1995_v1 = vld [vmem:[%s7780_s4 + $0x518] sm:$0xff] }
 0x413   : > { %4625 = vmatprep.subr.bf16.mxu0 %v4624_v12  ;;  %4689 = vmatprep.subr.bf16.mxu1 %v4688_v16  ;;  %v1854_v12 = vld [vmem:[%s7780_s4 + $0xb0] sm:$0xff]  ;;  %v1983_v2 = vld [vmem:[%s7780_s4 + $0x4b8] sm:$0xff] }
 0x414   : > { %v1842_v16 = vld [vmem:[%s7780_s4 + $0x50] sm:$0xff]  ;;  %v4710_v21 = vpack.c.bf16 %v1854_v12, %v1840_v11  ;;  %v4792_v12 = vpack.c.bf16 %v1997_v3, %v1983_v2  ;;  %v2137_v2 = vld [vmem:[%s7780_s4 + $0x988] sm:$0xff] }
 0x415   : > { %v1982_v11 = vld [vmem:[%s7780_s4 + $0x4b0] sm:$0xff] }
 0x416   : > { %4627 = vmatpush1.bf16.msra.mxu0 %v4626_v63  ;;  %4691 = vmatpush1.bf16.msra.mxu1 %v4690_v22  ;;  %v4774_v63 = vpack.c.bf16 %v1856_v15, %v1842_v16  ;;  %v1868_v22 = vld [vmem:[%s7780_s4 + $0x120] sm:$0xff]  ;;  %v2009_v15 = vld [vmem:[%s7780_s4 + $0x588] sm:$0xff]  ;;  %v2066_v59 = vld [vmem:[%s7780_s4 + $0x750] sm:$0xff] }
 0x417   : > { %4629 = vmatprep.subr.bf16.mxu0 %v4628_v13  ;;  %4693 = vmatprep.subr.bf16.mxu1 %v4692_v14  ;;  %v4712_v13 = vpack.c.bf16 %v1883_v18, %v1869_v17  ;;  %v4776_v14 = vpack.c.bf16 %v1885_v20, %v1871_v56  ;;  %v4714_v30 = vpack.c.bf16 %v1882_v23, %v1868_v22  ;;  %v1996_v16 = vld [vmem:[%s7780_s4 + $0x520] sm:$0xff]  ;;  %v2023_v17 = vld [vmem:[%s7780_s4 + $0x5f8] sm:$0xff]  ;;  %v2025_v56 = vld [vmem:[%s7780_s4 + $0x608] sm:$0xff] }
 0x418   : > { %v2011_v18 = vld [vmem:[%s7780_s4 + $0x598] sm:$0xff]  ;;  %v2008_v22 = vld [vmem:[%s7780_s4 + $0x580] sm:$0xff]  ;;  %v2022_v23 = vld [vmem:[%s7780_s4 + $0x5f0] sm:$0xff] }
 0x419   : > { %v2106_v50 = vld [vmem:[%s7780_s4 + $0x890] sm:$0xff] }
 0x41a   : > { %4631 = vmatpush1.bf16.msra.mxu0 %v4630_v31  ;;  %4695 = vmatpush1.bf16.msra.mxu1 %v4694_v32  ;;  %v4778_v31 = vpack.c.bf16 %v1884_v25, %v1870_v24  ;;  %v4716_v32 = vpack.c.bf16 %v1911_v27, %v1897_v26  ;;  %v2010_v24 = vld [vmem:[%s7780_s4 + $0x590] sm:$0xff]  ;;  %v2037_v25 = vld [vmem:[%s7780_s4 + $0x668] sm:$0xff]  ;;  %v2051_v26 = vld [vmem:[%s7780_s4 + $0x6d8] sm:$0xff] }
 0x41b   : > { %4633 = vmatprep.subr.bf16.mxu0 %v4632_v35  ;;  %4697 = vmatprep.subr.bf16.mxu1 %v4696_v36  ;;  %v1898_v35 = vld [vmem:[%s7780_s4 + $0x210] sm:$0xff]  ;;  %v4780_v36 = vpack.c.bf16 %v1913_v29, %v1899_v28  ;;  %v2039_v27 = vld [vmem:[%s7780_s4 + $0x678] sm:$0xff]  ;;  %v2053_v28 = vld [vmem:[%s7780_s4 + $0x6e8] sm:$0xff]  ;;  %v4734_v29 = vpack.c.bf16 %v2022_v23, %v2008_v22 }
 0x41c   : > { %v2094_v51 = vld [vmem:[%s7780_s4 + $0x830] sm:$0xff] }
 0x41d   : > { %v2162_v22 = vld [vmem:[%s7780_s4 + $0xa50] sm:$0xff] }
 0x41e   : > { %4635 = vmatpush1.bf16.msra.mxu0 %v4634_v43  ;;  %4699 = vmatpush1.bf16.msra.mxu1 %v4698_v57  ;;  %v4782_v43 = vpack.c.bf16 %v1912_v37, %v1898_v35  ;;  %v4720_v57 = vpack.c.bf16 %v1939_v39, %v1925_v38  ;;  %v4800_v35 = vpack.c.bf16 %v2053_v28, %v2039_v27  ;;  %v2065_v37 = vld [vmem:[%s7780_s4 + $0x748] sm:$0xff]  ;;  %v2079_v38 = vld [vmem:[%s7780_s4 + $0x7b8] sm:$0xff]  ;;  %v2150_v23 = vld [vmem:[%s7780_s4 + $0x9f0] sm:$0xff] }
 0x41f   : > { %4637 = vmatprep.subr.bf16.mxu0 %v4636_v60  ;;  %4701 = vmatprep.subr.bf16.mxu1 %v4700_v61  ;;  %v1926_v60 = vld [vmem:[%s7780_s4 + $0x2f0] sm:$0xff]  ;;  %v4784_v61 = vpack.c.bf16 %v1941_v41, %v1927_v40  ;;  %v2067_v39 = vld [vmem:[%s7780_s4 + $0x758] sm:$0xff]  ;;  %v2081_v40 = vld [vmem:[%s7780_s4 + $0x7c8] sm:$0xff] }
 0x420   : > { %v2193_v27 = vld [vmem:[%s7780_s4 + $0xb48] sm:$0xff] }
 0x422   : > { %4639 = vmatpush1.bf16.msra.mxu0 %v4638_v47  ;;  %4703 = vmatpush1.bf16.msra.mxu1 %v4702_v49  ;;  %v4786_v47 = vpack.c.bf16 %v1940_v62, %v1926_v60  ;;  %v4724_v49 = vpack.c.bf16 %v1967_v45, %v1953_v0  ;;  %v4804_v60 = vpack.c.bf16 %v2081_v40, %v2067_v39  ;;  %v2093_v62 = vld [vmem:[%s7780_s4 + $0x828] sm:$0xff]  ;;  %v2107_v0 = vld [vmem:[%s7780_s4 + $0x898] sm:$0xff] }
 0x423   : > { %4641 = vmatprep.subr.bf16.mxu0 %v4640_v52  ;;  %4705 = vmatprep.subr.bf16.mxu1 %v4704_v53  ;;  %v1954_v52 = vld [vmem:[%s7780_s4 + $0x3d0] sm:$0xff]  ;;  %v4788_v53 = vpack.c.bf16 %v1969_v44, %v1955_v48  ;;  %v2095_v45 = vld [vmem:[%s7780_s4 + $0x838] sm:$0xff]  ;;  %v2109_v48 = vld [vmem:[%s7780_s4 + $0x8a8] sm:$0xff] }
 0x424   : > { %v2221_v39 = vld [vmem:[%s7780_s4 + $0xc28] sm:$0xff] }
 0x426   : > { %4643 = vmatpush1.bf16.msra.mxu0 %v4642_v5  ;;  %4707 = vmatpush1.bf16.msra.mxu1 %v4706_v6  ;;  %v4790_v5 = vpack.c.bf16 %v1968_v54, %v1954_v52  ;;  %v4728_v6 = vpack.c.bf16 %v1995_v1, %v1981_v55  ;;  %v4808_v52 = vpack.c.bf16 %v2109_v48, %v2095_v45  ;;  %v2121_v54 = vld [vmem:[%s7780_s4 + $0x908] sm:$0xff]  ;;  %v2135_v55 = vld [vmem:[%s7780_s4 + $0x978] sm:$0xff] }
 0x427   : > { %4709 = vmatprep.subr.bf16.mxu0 %v4708_v8  ;;  %4773 = vmatprep.subr.bf16.mxu1 %v4772_v10  ;;  %v1980_v8 = vld [vmem:[%s7780_s4 + $0x4a0] sm:$0xff]  ;;  %v1994_v10 = vld [vmem:[%s7780_s4 + $0x510] sm:$0xff]  ;;  %v2123_v1 = vld [vmem:[%s7780_s4 + $0x918] sm:$0xff] }
 0x428   : > { %v4730_v20 = vpack.c.bf16 %v1994_v10, %v1980_v8  ;;  %v2134_v8 = vld [vmem:[%s7780_s4 + $0x970] sm:$0xff]  ;;  %v2249_v45 = vld [vmem:[%s7780_s4 + $0xd08] sm:$0xff] }
 0x429   : > { %2487 = vmatmul.mubr.f32.vlgmr.msra.gmra.mrb[16].mxu0 %v6184_v19  ;;  %2558 = vmatmul.mubr.f32.vlgmr.msra.gmra.mrb[26].mxu1 %v6184_v19  ;;  %v2122_v10 = vld [vmem:[%s7780_s4 + $0x910] sm:$0xff] }
 0x42a   : > { %4711 = vmatpush1.bf16.msra.mxu0 %v4710_v21  ;;  %2628 = vmatprep.mubr.f32.mxu0 %v6176_v9  ;;  %v4794_v21 = vpack.c.bf16 %v1996_v16, %v1982_v11  ;;  %v4812_v11 = vpack.c.bf16 %v2137_v2, %v2123_v1  ;;  %v2149_v16 = vld [vmem:[%s7780_s4 + $0x9e8] sm:$0xff] }
 0x42b   : > { %4775 = vmatpush1.bf16.msra.mxu1 %v4774_v63  ;;  %2699 = vmatprep.mubr.f32.mxu1 %v6176_v9  ;;  %v4732_v63 = vpack.c.bf16 %v2023_v17, %v2009_v15  ;;  %v2163_v15 = vld [vmem:[%s7780_s4 + $0xa58] sm:$0xff]  ;;  %v2277_v1 = vld [vmem:[%s7780_s4 + $0xde8] sm:$0xff] }
 0x42c   : > { %4713 = vmatprep.subr.bf16.mxu0 %v4712_v13  ;;  %4777 = vmatprep.subr.bf16.mxu1 %v4776_v14  ;;  %v4796_v13 = vpack.c.bf16 %v2025_v56, %v2011_v18  ;;  %v2024_v14 = vld [vmem:[%s7780_s4 + $0x600] sm:$0xff]  ;;  %v2151_v17 = vld [vmem:[%s7780_s4 + $0x9f8] sm:$0xff]  ;;  %v2165_v18 = vld [vmem:[%s7780_s4 + $0xa68] sm:$0xff] }
 0x42e   : > { %4715 = vmatpush1.bf16.msra.mxu0 %v4714_v30  ;;  %v4798_v30 = vpack.c.bf16 %v2024_v14, %v2010_v24  ;;  %v4816_v24 = vpack.c.bf16 %v2165_v18, %v2151_v17  ;;  %v2177_v14 = vld [vmem:[%s7780_s4 + $0xac8] sm:$0xff] }
 0x42f   : > { %4779 = vmatpush1.bf16.msra.mxu1 %v4778_v31  ;;  %4717 = vmatprep.subr.bf16.mxu0 %v4716_v32  ;;  %v4736_v31 = vpack.c.bf16 %v2051_v26, %v2037_v25  ;;  %v2036_v32 = vld [vmem:[%s7780_s4 + $0x660] sm:$0xff]  ;;  %v2191_v25 = vld [vmem:[%s7780_s4 + $0xb38] sm:$0xff] }
 0x430   : > { %4781 = vmatprep.subr.bf16.mxu1 %v4780_v36  ;;  %v2052_v36 = vld [vmem:[%s7780_s4 + $0x6e0] sm:$0xff]  ;;  %v4738_v41 = vpack.c.bf16 %v2050_v33, %v2036_v32  ;;  %v2179_v26 = vld [vmem:[%s7780_s4 + $0xad8] sm:$0xff]  ;;  %v2190_v32 = vld [vmem:[%s7780_s4 + $0xb30] sm:$0xff] }
 0x431   : > { %v2178_v33 = vld [vmem:[%s7780_s4 + $0xad0] sm:$0xff] }
 0x432   : > { %4719 = vmatpush1.bf16.msra.mxu0 %v4718_v42  ;;  %v4802_v42 = vpack.c.bf16 %v2052_v36, %v2038_v34  ;;  %v4820_v34 = vpack.c.bf16 %v2193_v27, %v2179_v26  ;;  %v2205_v36 = vld [vmem:[%s7780_s4 + $0xba8] sm:$0xff] }
 0x433   : > { %4783 = vmatpush1.bf16.msra.mxu1 %v4782_v43  ;;  %4721 = vmatprep.subr.bf16.mxu0 %v4720_v57  ;;  %v4740_v43 = vpack.c.bf16 %v2079_v38, %v2065_v37  ;;  %v2064_v57 = vld [vmem:[%s7780_s4 + $0x740] sm:$0xff]  ;;  %v2219_v37 = vld [vmem:[%s7780_s4 + $0xc18] sm:$0xff] }
 0x434   : > { %4785 = vmatprep.subr.bf16.mxu1 %v4784_v61  ;;  %v2080_v61 = vld [vmem:[%s7780_s4 + $0x7c0] sm:$0xff]  ;;  %v4742_v44 = vpack.c.bf16 %v2078_v58, %v2064_v57  ;;  %v2207_v38 = vld [vmem:[%s7780_s4 + $0xbb8] sm:$0xff]  ;;  %v2218_v57 = vld [vmem:[%s7780_s4 + $0xc10] sm:$0xff] }
 0x435   : > { %v2206_v58 = vld [vmem:[%s7780_s4 + $0xbb0] sm:$0xff] }
 0x436   : > { %4723 = vmatpush1.bf16.msra.mxu0 %v4722_v46  ;;  %v4806_v46 = vpack.c.bf16 %v2080_v61, %v2066_v59  ;;  %v4824_v59 = vpack.c.bf16 %v2221_v39, %v2207_v38  ;;  %v2233_v61 = vld [vmem:[%s7780_s4 + $0xc88] sm:$0xff]  ;;  %v1956_v39 = vld [vmem:[%s7780_s4 + $0x3e0] sm:$0xff] }
 0x437   : > { %4787 = vmatpush1.bf16.msra.mxu1 %v4786_v47  ;;  %4725 = vmatprep.subr.bf16.mxu0 %v4724_v49  ;;  %v4744_v47 = vpack.c.bf16 %v2107_v0, %v2093_v62  ;;  %v2092_v49 = vld [vmem:[%s7780_s4 + $0x820] sm:$0xff]  ;;  %v2247_v62 = vld [vmem:[%s7780_s4 + $0xcf8] sm:$0xff] }
 0x438   : > { %4789 = vmatprep.subr.bf16.mxu1 %v4788_v53  ;;  %v2108_v53 = vld [vmem:[%s7780_s4 + $0x8a0] sm:$0xff]  ;;  %v4746_v3 = vpack.c.bf16 %v2106_v50, %v2092_v49  ;;  %v2235_v0 = vld [vmem:[%s7780_s4 + $0xc98] sm:$0xff]  ;;  %v2246_v49 = vld [vmem:[%s7780_s4 + $0xcf0] sm:$0xff] }
 0x439   : > { %v2234_v50 = vld [vmem:[%s7780_s4 + $0xc90] sm:$0xff] }
 0x43a   : > { %4727 = vmatpush1.bf16.msra.mxu0 %v4726_v4  ;;  %v4810_v4 = vpack.c.bf16 %v2108_v53, %v2094_v51  ;;  %v4828_v51 = vpack.c.bf16 %v2249_v45, %v2235_v0  ;;  %v2261_v53 = vld [vmem:[%s7780_s4 + $0xd68] sm:$0xff]  ;;  %v2012_v45 = vld [vmem:[%s7780_s4 + $0x5a0] sm:$0xff] }
 0x43b   : > { %4791 = vmatpush1.bf16.msra.mxu1 %v4790_v5  ;;  %4729 = vmatprep.subr.bf16.mxu0 %v4728_v6  ;;  %v4748_v5 = vpack.c.bf16 %v2135_v55, %v2121_v54  ;;  %v2120_v6 = vld [vmem:[%s7780_s4 + $0x900] sm:$0xff]  ;;  %v2275_v54 = vld [vmem:[%s7780_s4 + $0xdd8] sm:$0xff] }
 0x43c   : > { %4793 = vmatprep.subr.bf16.mxu1 %v4792_v12  ;;  %v2136_v12 = vld [vmem:[%s7780_s4 + $0x980] sm:$0xff]  ;;  %v4750_v56 = vpack.c.bf16 %v2134_v8, %v2120_v6  ;;  %v2263_v55 = vld [vmem:[%s7780_s4 + $0xd78] sm:$0xff]  ;;  %v2274_v6 = vld [vmem:[%s7780_s4 + $0xdd0] sm:$0xff] }
 0x43d   : > { %v2262_v8 = vld [vmem:[%s7780_s4 + $0xd70] sm:$0xff] }
 0x43e   : > { %4731 = vmatpush1.bf16.msra.mxu0 %v4730_v20  ;;  %v4814_v20 = vpack.c.bf16 %v2136_v12, %v2122_v10  ;;  %v4832_v10 = vpack.c.bf16 %v2277_v1, %v2263_v55  ;;  %v1845_v12 = vld [vmem:[%s7780_s4 + $0x68] sm:$0xff]  ;;  %v2068_v1 = vld [vmem:[%s7780_s4 + $0x760] sm:$0xff] }
 0x43f   : > { %4795 = vmatpush1.bf16.msra.mxu1 %v4794_v21  ;;  %4733 = vmatprep.subr.bf16.mxu0 %v4732_v63  ;;  %v4752_v21 = vpack.c.bf16 %v2163_v15, %v2149_v16  ;;  %v2148_v63 = vld [vmem:[%s7780_s4 + $0x9e0] sm:$0xff]  ;;  %v1859_v16 = vld [vmem:[%s7780_s4 + $0xd8] sm:$0xff] }
 0x440   : > { %4797 = vmatprep.subr.bf16.mxu1 %v4796_v13  ;;  %v2164_v13 = vld [vmem:[%s7780_s4 + $0xa60] sm:$0xff]  ;;  %v4754_v28 = vpack.c.bf16 %v2162_v22, %v2148_v63  ;;  %v4836_v18 = vpack.c.bf16 %v1859_v16, %v1845_v12  ;;  %v1887_v63 = vld [vmem:[%s7780_s4 + $0x1b8] sm:$0xff] }
 0x441   : > { %v2139_v12 = vld [vmem:[%s7780_s4 + $0x998] sm:$0xff] }
 0x442   : > { %4735 = vmatpush1.bf16.msra.mxu0 %v4734_v29  ;;  %v4818_v29 = vpack.c.bf16 %v2164_v13, %v2150_v23  ;;  %v1886_v13 = vld [vmem:[%s7780_s4 + $0x1b0] sm:$0xff] }
 0x443   : > { %4799 = vmatpush1.bf16.msra.mxu1 %v4798_v30  ;;  %4737 = vmatprep.subr.bf16.mxu0 %v4736_v31  ;;  %v4756_v30 = vpack.c.bf16 %v2191_v25, %v2177_v14  ;;  %v2176_v31 = vld [vmem:[%s7780_s4 + $0xac0] sm:$0xff]  ;;  %v1901_v14 = vld [vmem:[%s7780_s4 + $0x228] sm:$0xff]  ;;  %v1915_v25 = vld [vmem:[%s7780_s4 + $0x298] sm:$0xff] }
 0x444   : > { %4801 = vmatprep.subr.bf16.mxu1 %v4800_v35  ;;  %v2192_v35 = vld [vmem:[%s7780_s4 + $0xb40] sm:$0xff]  ;;  %v4758_v40 = vpack.c.bf16 %v2190_v32, %v2176_v31  ;;  %v4844_v27 = vpack.c.bf16 %v1915_v25, %v1901_v14  ;;  %v1943_v31 = vld [vmem:[%s7780_s4 + $0x378] sm:$0xff] }
 0x446   : > { %4739 = vmatpush1.bf16.msra.mxu0 %v4738_v41  ;;  %v4822_v41 = vpack.c.bf16 %v2192_v35, %v2178_v33  ;;  %v1928_v33 = vld [vmem:[%s7780_s4 + $0x300] sm:$0xff]  ;;  %v1957_v35 = vld [vmem:[%s7780_s4 + $0x3e8] sm:$0xff] }
 0x447   : > { %4803 = vmatpush1.bf16.msra.mxu1 %v4802_v42  ;;  %4741 = vmatprep.subr.bf16.mxu0 %v4740_v43  ;;  %v4760_v42 = vpack.c.bf16 %v2219_v37, %v2205_v36  ;;  %v2204_v43 = vld [vmem:[%s7780_s4 + $0xba0] sm:$0xff]  ;;  %v1971_v36 = vld [vmem:[%s7780_s4 + $0x458] sm:$0xff] }
 0x448   : > { %4805 = vmatprep.subr.bf16.mxu1 %v4804_v60  ;;  %v2220_v60 = vld [vmem:[%s7780_s4 + $0xc20] sm:$0xff]  ;;  %v4762_v48 = vpack.c.bf16 %v2218_v57, %v2204_v43  ;;  %v4852_v38 = vpack.c.bf16 %v1971_v36, %v1957_v35 }
 0x44a   : > { %4743 = vmatpush1.bf16.msra.mxu0 %v4742_v44  ;;  %v4826_v44 = vpack.c.bf16 %v2220_v60, %v2206_v58  ;;  %v1984_v58 = vld [vmem:[%s7780_s4 + $0x4c0] sm:$0xff]  ;;  %v2013_v60 = vld [vmem:[%s7780_s4 + $0x5a8] sm:$0xff] }
 0x44b   : > { %4807 = vmatpush1.bf16.msra.mxu1 %v4806_v46  ;;  %4745 = vmatprep.subr.bf16.mxu0 %v4744_v47  ;;  %v4764_v46 = vpack.c.bf16 %v2247_v62, %v2233_v61  ;;  %v2232_v47 = vld [vmem:[%s7780_s4 + $0xc80] sm:$0xff]  ;;  %v2027_v61 = vld [vmem:[%s7780_s4 + $0x618] sm:$0xff] }
 0x44c   : > { %4809 = vmatprep.subr.bf16.mxu1 %v4808_v52  ;;  %v2248_v52 = vld [vmem:[%s7780_s4 + $0xd00] sm:$0xff]  ;;  %v4766_v2 = vpack.c.bf16 %v2246_v49, %v2232_v47  ;;  %v4860_v0 = vpack.c.bf16 %v2027_v61, %v2013_v60 }
 0x44e   : > { %4747 = vmatpush1.bf16.msra.mxu0 %v4746_v3  ;;  %v4830_v3 = vpack.c.bf16 %v2248_v52, %v2234_v50  ;;  %v2040_v50 = vld [vmem:[%s7780_s4 + $0x680] sm:$0xff]  ;;  %v2069_v52 = vld [vmem:[%s7780_s4 + $0x768] sm:$0xff] }
 0x44f   : > { %4811 = vmatpush1.bf16.msra.mxu1 %v4810_v4  ;;  %4749 = vmatprep.subr.bf16.mxu0 %v4748_v5  ;;  %v4768_v4 = vpack.c.bf16 %v2275_v54, %v2261_v53  ;;  %v2260_v5 = vld [vmem:[%s7780_s4 + $0xd60] sm:$0xff]  ;;  %v2083_v53 = vld [vmem:[%s7780_s4 + $0x7d8] sm:$0xff] }
 0x450   : > { %4813 = vmatprep.subr.bf16.mxu1 %v4812_v11  ;;  %v2276_v11 = vld [vmem:[%s7780_s4 + $0xde0] sm:$0xff]  ;;  %v4770_v15 = vpack.c.bf16 %v2274_v6, %v2260_v5  ;;  %v4868_v55 = vpack.c.bf16 %v2083_v53, %v2069_v52 }
 0x451   : > { %v4834_v17 = vpack.c.bf16 %v2276_v11, %v2262_v8  ;;  %v2096_v8 = vld [vmem:[%s7780_s4 + $0x840] sm:$0xff]  ;;  %v2125_v11 = vld [vmem:[%s7780_s4 + $0x928] sm:$0xff] }
 0x452   : > { %4751 = vmatpush1.bf16.msra.mxu0 %v4750_v56  ;;  %v1844_v56 = vld [vmem:[%s7780_s4 + $0x60] sm:$0xff] }
 0x453   : > { %4815 = vmatpush1.bf16.msra.mxu1 %v4814_v20  ;;  %4753 = vmatprep.subr.bf16.mxu0 %v4752_v21  ;;  %v1858_v20 = vld [vmem:[%s7780_s4 + $0xd0] sm:$0xff]  ;;  %v1873_v21 = vld [vmem:[%s7780_s4 + $0x148] sm:$0xff] }
 0x454   : > { %4817 = vmatprep.subr.bf16.mxu1 %v4816_v24  ;;  %v4838_v22 = vpack.c.bf16 %v1858_v20, %v1844_v56  ;;  %v4840_v23 = vpack.c.bf16 %v1887_v63, %v1873_v21  ;;  %v1872_v24 = vld [vmem:[%s7780_s4 + $0x140] sm:$0xff]  ;;  %v2153_v56 = vld [vmem:[%s7780_s4 + $0xa08] sm:$0xff]  ;;  %v2167_v20 = vld [vmem:[%s7780_s4 + $0xa78] sm:$0xff] }
 0x455   : > { %v4842_v26 = vpack.c.bf16 %v1886_v13, %v1872_v24  ;;  %v4880_v63 = vpack.c.bf16 %v2167_v20, %v2153_v56  ;;  %v2181_v24 = vld [vmem:[%s7780_s4 + $0xae8] sm:$0xff]  ;;  %v2195_v13 = vld [vmem:[%s7780_s4 + $0xb58] sm:$0xff] }
 0x456   : > { %4755 = vmatpush1.bf16.msra.mxu0 %v4754_v28  ;;  %v1900_v28 = vld [vmem:[%s7780_s4 + $0x220] sm:$0xff]  ;;  %v4884_v25 = vpack.c.bf16 %v2195_v13, %v2181_v24 }
 0x457   : > { %4819 = vmatpush1.bf16.msra.mxu1 %v4818_v29  ;;  %4757 = vmatprep.subr.bf16.mxu0 %v4756_v30  ;;  %v1914_v29 = vld [vmem:[%s7780_s4 + $0x290] sm:$0xff]  ;;  %v1929_v30 = vld [vmem:[%s7780_s4 + $0x308] sm:$0xff] }
 0x458   : > { %4821 = vmatprep.subr.bf16.mxu1 %v4820_v34  ;;  %v4848_v32 = vpack.c.bf16 %v1943_v31, %v1929_v30  ;;  %v1942_v34 = vld [vmem:[%s7780_s4 + $0x370] sm:$0xff] }
 0x459   : > { %v4850_v37 = vpack.c.bf16 %v1942_v34, %v1928_v33  ;;  %v2237_v33 = vld [vmem:[%s7780_s4 + $0xca8] sm:$0xff]  ;;  %v2251_v34 = vld [vmem:[%s7780_s4 + $0xd18] sm:$0xff] }
 0x45a   : > { %4759 = vmatpush1.bf16.msra.mxu0 %v4758_v40  ;;  %v1970_v40 = vld [vmem:[%s7780_s4 + $0x450] sm:$0xff]  ;;  %v4892_v36 = vpack.c.bf16 %v2251_v34, %v2237_v33 }
 0x45b   : > { %4823 = vmatpush1.bf16.msra.mxu1 %v4822_v41  ;;  %4761 = vmatprep.subr.bf16.mxu0 %v4760_v42  ;;  %v1985_v41 = vld [vmem:[%s7780_s4 + $0x4c8] sm:$0xff]  ;;  %v1999_v42 = vld [vmem:[%s7780_s4 + $0x538] sm:$0xff]  ;;  %v4854_v43 = vpack.c.bf16 %v1970_v40, %v1956_v39 }
 0x45c   : > { %4825 = vmatprep.subr.bf16.mxu1 %v4824_v59  ;;  %v4856_v57 = vpack.c.bf16 %v1999_v42, %v1985_v41  ;;  %v1998_v59 = vld [vmem:[%s7780_s4 + $0x530] sm:$0xff]  ;;  %v2265_v39 = vld [vmem:[%s7780_s4 + $0xd88] sm:$0xff]  ;;  %v2279_v40 = vld [vmem:[%s7780_s4 + $0xdf8] sm:$0xff] }
 0x45d   : > { %v4858_v62 = vpack.c.bf16 %v1998_v59, %v1984_v58  ;;  %v4896_v42 = vpack.c.bf16 %v2279_v40, %v2265_v39 }
 0x45e   : > { %4763 = vmatpush1.bf16.msra.mxu0 %v4762_v48  ;;  %v2026_v48 = vld [vmem:[%s7780_s4 + $0x610] sm:$0xff] }
 0x45f   : > { %4827 = vmatpush1.bf16.msra.mxu1 %v4826_v44  ;;  %4765 = vmatprep.subr.bf16.mxu0 %v4764_v46  ;;  %v2041_v44 = vld [vmem:[%s7780_s4 + $0x688] sm:$0xff]  ;;  %v2055_v46 = vld [vmem:[%s7780_s4 + $0x6f8] sm:$0xff]  ;;  %v4862_v47 = vpack.c.bf16 %v2026_v48, %v2012_v45 }
 0x460   : > { %4829 = vmatprep.subr.bf16.mxu1 %v4828_v51  ;;  %v4864_v49 = vpack.c.bf16 %v2055_v46, %v2041_v44  ;;  %v2054_v51 = vld [vmem:[%s7780_s4 + $0x6f0] sm:$0xff] }
 0x461   : > { %v4866_v54 = vpack.c.bf16 %v2054_v51, %v2040_v50 }
 0x462   : > { %4767 = vmatpush1.bf16.msra.mxu0 %v4766_v2  ;;  %v2082_v2 = vld [vmem:[%s7780_s4 + $0x7d0] sm:$0xff] }
 0x463   : > { %4831 = vmatpush1.bf16.msra.mxu1 %v4830_v3  ;;  %4769 = vmatprep.subr.bf16.mxu0 %v4768_v4  ;;  %v2097_v3 = vld [vmem:[%s7780_s4 + $0x848] sm:$0xff]  ;;  %v2111_v4 = vld [vmem:[%s7780_s4 + $0x8b8] sm:$0xff]  ;;  %v4870_v5 = vpack.c.bf16 %v2082_v2, %v2068_v1 }
 0x464   : > { %4833 = vmatprep.subr.bf16.mxu1 %v4832_v10  ;;  %v4872_v6 = vpack.c.bf16 %v2111_v4, %v2097_v3  ;;  %v2110_v10 = vld [vmem:[%s7780_s4 + $0x8b0] sm:$0xff] }
 0x465   : > { %v4874_v16 = vpack.c.bf16 %v2110_v10, %v2096_v8 }
 0x466   : > { %4771 = vmatpush1.bf16.msra.mxu0 %v4770_v15  ;;  %v4876_v15 = vpack.c.bf16 %v2139_v12, %v2125_v11 }
 0x467   : > { %4835 = vmatpush1.bf16.msra.mxu1 %v4834_v17  ;;  %4837 = vmatprep.subr.bf16.mxu0 %v4836_v18  ;;  %v2124_v17 = vld [vmem:[%s7780_s4 + $0x920] sm:$0xff]  ;;  %v2138_v18 = vld [vmem:[%s7780_s4 + $0x990] sm:$0xff] }
 0x468   : > { %v4878_v21 = vpack.c.bf16 %v2138_v18, %v2124_v17 }
 0x469   : > { %2629 = vmatmul.mubr.f32.vlgmr.msra.gmra.mrb[18].mxu0 %v6184_v19 }
 0x46a   : > { %2700 = vmatmul.mubr.f32.vlgmr.msra.gmra.mrb[28].mxu1 %v6184_v19  ;;  %4839 = vmatpush1.bf16.msra.mxu0 %v4838_v22  ;;  %v2152_v22 = vld [vmem:[%s7780_s4 + $0xa00] sm:$0xff] }
 0x46b   : > { %2770 = vmatprep.mubr.f32.mxu0 %v6176_v9  ;;  %4841 = vmatprep.subr.bf16.mxu0 %v4840_v23  ;;  %v4846_v9 = vpack.c.bf16 %v1914_v29, %v1900_v28  ;;  %v2166_v23 = vld [vmem:[%s7780_s4 + $0xa70] sm:$0xff]  ;;  %v2209_v28 = vld [vmem:[%s7780_s4 + $0xbc8] sm:$0xff]  ;;  %v2223_v29 = vld [vmem:[%s7780_s4 + $0xc38] sm:$0xff] }
 0x46c   : > { %2850 = vmatprep.mubr.f32.mxu1 %v5033_v7  ;;  %v4882_v14 = vpack.c.bf16 %v2166_v23, %v2152_v22  ;;  %v4888_v31 = vpack.c.bf16 %v2223_v29, %v2209_v28 }
 0x46e   : > { %4843 = vmatpush1.bf16.msra.mxu0 %v4842_v26  ;;  %v2180_v26 = vld [vmem:[%s7780_s4 + $0xae0] sm:$0xff] }
 0x46f   : > { %4845 = vmatprep.subr.bf16.mxu0 %v4844_v27  ;;  %v2194_v27 = vld [vmem:[%s7780_s4 + $0xb50] sm:$0xff] }
 0x470   : > { %v4886_v30 = vpack.c.bf16 %v2194_v27, %v2180_v26 }
 0x472   : > { %4847 = vmatpush1.bf16.msra.mxu0 %v4846_v9  ;;  %v2208_v9 = vld [vmem:[%s7780_s4 + $0xbc0] sm:$0xff] }
 0x473   : > { %4849 = vmatprep.subr.bf16.mxu0 %v4848_v32  ;;  %v2222_v32 = vld [vmem:[%s7780_s4 + $0xc30] sm:$0xff] }
 0x474   : > { %v4890_v35 = vpack.c.bf16 %v2222_v32, %v2208_v9 }
 0x476   : > { %4851 = vmatpush1.bf16.msra.mxu0 %v4850_v37  ;;  %v2236_v37 = vld [vmem:[%s7780_s4 + $0xca0] sm:$0xff] }
 0x477   : > { %4853 = vmatprep.subr.bf16.mxu0 %v4852_v38  ;;  %v2250_v38 = vld [vmem:[%s7780_s4 + $0xd10] sm:$0xff] }
 0x478   : > { %v4894_v41 = vpack.c.bf16 %v2250_v38, %v2236_v37 }
 0x47a   : > { %4855 = vmatpush1.bf16.msra.mxu0 %v4854_v43  ;;  %v2264_v43 = vld [vmem:[%s7780_s4 + $0xd80] sm:$0xff] }
 0x47b   : > { %4857 = vmatprep.subr.bf16.mxu0 %v4856_v57  ;;  %v2278_v57 = vld [vmem:[%s7780_s4 + $0xdf0] sm:$0xff] }
 0x47c   : > { %v4898_v58 = vpack.c.bf16 %v2278_v57, %v2264_v43 }
 0x47e   : > { %4859 = vmatpush1.bf16.msra.mxu0 %v4858_v62 }
 0x47f   : > { %4861 = vmatprep.subr.bf16.mxu0 %v4860_v0  ;;  %v2777_v0 = vld [vmem:[%s7781_s5] sm:$0xff] }
 0x482   : > { %4863 = vmatpush1.bf16.msra.mxu0 %v4862_v47 }
 0x483   : > { %4865 = vmatprep.subr.bf16.mxu0 %v4864_v49 }
 0x486   : > { %4867 = vmatpush1.bf16.msra.mxu0 %v4866_v54 }
 0x487   : > { %4869 = vmatprep.subr.bf16.mxu0 %v4868_v55 }
 0x48a   : > { %4871 = vmatpush1.bf16.msra.mxu0 %v4870_v5 }
 0x48b   : > { %4873 = vmatprep.subr.bf16.mxu0 %v4872_v6 }
 0x48e   : > { %4875 = vmatpush1.bf16.msra.mxu0 %v4874_v16 }
 0x48f   : > { %4877 = vmatprep.subr.bf16.mxu0 %v4876_v15 }
 0x492   : > { %4879 = vmatpush1.bf16.msra.mxu0 %v4878_v21 }
 0x493   : > { %4881 = vmatprep.subr.bf16.mxu0 %v4880_v63 }
 0x496   : > { %4883 = vmatpush1.bf16.msra.mxu0 %v4882_v14 }
 0x497   : > { %4885 = vmatprep.subr.bf16.mxu0 %v4884_v25 }
 0x49a   : > { %4887 = vmatpush1.bf16.msra.mxu0 %v4886_v30 }
 0x49b   : > { %4889 = vmatprep.subr.bf16.mxu0 %v4888_v31 }
 0x49e   : > { %4891 = vmatpush1.bf16.msra.mxu0 %v4890_v35 }
 0x49f   : > { %4893 = vmatprep.subr.bf16.mxu0 %v4892_v36 }
 0x4a2   : > { %4895 = vmatpush1.bf16.msra.mxu0 %v4894_v41 }
 0x4a3   : > { %4897 = vmatprep.subr.bf16.mxu0 %v4896_v42 }
 0x4a6   : > { %4899 = vmatpush1.bf16.msra.mxu0 %v4898_v58 }
 0x4a9   : > { %2771 = vmatmul.mubr.f32.vlgmr.msra.gmra.mrb[20].mxu0 %v6184_v19  ;;  %v2778_v19 = vld [vmem:[%s7781_s5 + $0x8] sm:$0x1] }
 0x4bc   : > { %v2346_v59 = vpop.f32.mrb[14].mxu0  ;;  %v2417_v60 = vpop.f32.mrb[24].mxu1 }
 0x4bd   : > { %v2348_v61 = vpop.f32.mrb[15].mxu0  ;;  %v2419_v62 = vpop.f32.mrb[25].mxu1 }
 0x4be   : > { %2786 = vmatprep.subr.mxu1 %v2348_v61 }
 0x4bf   : > { %2787 = vmatpush1.msra.mxu1 %v2346_v59 }
 0x4c0   : > { %4254 = vmatmul.mubr.msk.f32.vlgmr.msra.gmra.mrb[30].mxu1 %vm2779_vm2, %v2777_v0  ;;  %2863 = vmatprep.subr.mxu1 %v2419_v62 }
 0x4c1   : > { %2864 = vmatpush1.msra.mxu1 %v2417_v60  ;;  %2856 = vmatprep.mubr.f32.mxu1 %v5033_v7 }
 0x4c4   : > { %4255 = vmatmul.mubr.msk.f32.gmra.mrb[32].mxu1 %vm2779_vm2, %v2778_v19 }
 0x4c5   : > { %2927 = vmatprep.mubr.f32.mxu1 %v5033_v7 }
 0x4c8   : > { %4256 = vmatmul.mubr.msk.f32.vlgmr.msra.gmra.mrb[34].mxu1 %vm2779_vm2, %v2777_v0 }
 0x4c9   : > { %2933 = vmatprep.mubr.f32.mxu1 %v5033_v7 }
 0x4cc   : > { %4257 = vmatmul.mubr.msk.f32.gmra.mrb[36].mxu1 %vm2779_vm2, %v2778_v19 }
 0x4cd   : > { %3004 = vmatprep.mubr.f32.mxu1 %v5033_v7 }
 0x4fc   : > { %v2488_v45 = vpop.f32.mrb[16].mxu0  ;;  %v2559_v48 = vpop.f32.mrb[26].mxu1 }
 0x4fd   : > { %v2490_v44 = vpop.f32.mrb[17].mxu0  ;;  %v2561_v46 = vpop.f32.mrb[27].mxu1 }
 0x4fe   : > { %2940 = vmatprep.subr.mxu1 %v2490_v44 }
 0x4ff   : > { %2941 = vmatpush1.msra.mxu1 %v2488_v45 }
 0x500   : > { %4258 = vmatmul.mubr.msk.f32.vlgmr.msra.gmra.mrb[38].mxu1 %vm2779_vm2, %v2777_v0  ;;  %3017 = vmatprep.subr.mxu1 %v2561_v46 }
 0x501   : > { %3018 = vmatpush1.msra.mxu1 %v2559_v48  ;;  %3010 = vmatprep.mubr.f32.mxu1 %v5033_v7 }
 0x504   : > { %4259 = vmatmul.mubr.msk.f32.gmra.mrb[40].mxu1 %vm2779_vm2, %v2778_v19 }
 0x505   : > { %3081 = vmatprep.mubr.f32.mxu1 %v5033_v7 }
 0x508   : > { %4260 = vmatmul.mubr.msk.f32.vlgmr.msra.gmra.mrb[42].mxu1 %vm2779_vm2, %v2777_v0 }
 0x509   : > { %3087 = vmatprep.mubr.f32.mxu1 %v5033_v7 }
 0x50c   : > { %4261 = vmatmul.mubr.msk.f32.gmra.mrb[44].mxu1 %vm2779_vm2, %v2778_v19 }
 0x50d   : > { %3158 = vmatprep.mubr.f32.mxu1 %v5033_v7 }
 0x53c   : > { %v2630_v47 = vpop.f32.mrb[18].mxu0 }
 0x53d   : > { %v2701_v49 = vpop.f32.mrb[28].mxu1  ;;  %v2632_v50 = vpop.f32.mrb[19].mxu0 }
 0x53e   : > { %v2703_v51 = vpop.f32.mrb[29].mxu1  ;;  %3094 = vmatprep.subr.mxu1 %v2632_v50 }
 0x53f   : > { %3095 = vmatpush1.msra.mxu1 %v2630_v47 }
 0x540   : > { %4262 = vmatmul.mubr.msk.f32.vlgmr.msra.gmra.mrb[46].mxu1 %vm2779_vm2, %v2777_v0  ;;  %3171 = vmatprep.subr.mxu1 %v2703_v51 }
 0x541   : > { %3172 = vmatpush1.msra.mxu1 %v2701_v49  ;;  %3164 = vmatprep.mubr.f32.mxu1 %v5033_v7 }
 0x544   : > { %4263 = vmatmul.mubr.msk.f32.gmra.mrb[48].mxu1 %vm2779_vm2, %v2778_v19 }
 0x545   : > { %3235 = vmatprep.mubr.f32.mxu1 %v5033_v7 }
 0x548   : > { %4264 = vmatmul.mubr.msk.f32.vlgmr.msra.gmra.mrb[50].mxu1 %vm2779_vm2, %v2777_v0 }
 0x549   : > { %3241 = vmatprep.mubr.f32.mxu1 %v5033_v7 }
 0x54c   : > { %4265 = vmatmul.mubr.msk.f32.gmra.mrb[52].mxu1 %vm2779_vm2, %v2778_v19 }
 0x54d   : > { %3312 = vmatprep.mubr.f32.mxu1 %v5033_v7 }
 0x57c   : > { %v2772_v52 = vpop.f32.mrb[20].mxu0 }
 0x57d   : > { %v2774_v53 = vpop.f32.mrb[21].mxu0 }
 0x57e   : > { %3248 = vmatprep.subr.mxu1 %v2774_v53 }
 0x57f   : > { %3249 = vmatpush1.msra.mxu1 %v2772_v52 }
 0x580   : > { %4266 = vmatmul.mubr.msk.f32.vlgmr.msra.gmra.mrb[54].mxu1 %vm2779_vm2, %v2777_v0 }
 0x581   : > { %3318 = vmatprep.mubr.f32.mxu1 %v5033_v7 }
 0x584   : > { %4267 = vmatmul.mubr.msk.f32.gmra.mrb[56].mxu1 %vm2779_vm2, %v2778_v19 }
 0x593   : > { %v7152_v54 = vpop.f32.mrb[30].mxu1 }
 0x594   : > { %v3440_v55 = vrot.slane %v7152_v54, 2  ;;  %v3356_v1 = vrot.slane %v7152_v54, 1  ;;  %v7156_v2 = vpop.f32.mrb[31].mxu1  ;;  %v3524_v4 = vrot.slane %v7152_v54, 3  ;;  %v3608_v8 = vrot.slane %v7152_v54, 4 }
 0x595   : > { %v3441_v7 = vrot.slane %v7156_v2, 2  ;;  %v3525_v10 = vrot.slane %v7156_v2, 3  ;;  %v3692_v16 = vrot.slane %v7152_v54, 5  ;;  %v3609_v15 = vrot.slane %v7156_v2, 4 }
 0x596   : > { %3454 = vrot.lane.b32.xlu1 %v3440_v55, %s5035_s14  ;;  %3370 = vrot.lane.b32.xlu0 %v3356_v1, %s5036_s15  ;;  %v3776_v18 = vrot.slane %v7152_v54, 6  ;;  %v3693_v56 = vrot.slane %v7156_v2, 5  ;;  %v3860_v20 = vrot.slane %v7152_v54, 7  ;;  %v3777_v21 = vrot.slane %v7156_v2, 6 }
 0x597   : > { %v2858_v3 = vpop.f32.mrb[32].mxu1  ;;  %v3861_v63 = vrot.slane %v7156_v2, 7  ;;  %v3357_v22 = vrot.slane %v7156_v2, 1 }
 0x598   : > { %v2860_v5 = vpop.f32.mrb[33].mxu1 }
 0x59a   : > { %3538 = vrot.lane.b32.xlu1 %v3524_v4, %s5037_s17  ;;  %3456 = vrot.lane.b32.xlu0 %v3441_v7, %s5035_s14 }
 0x59b   : > { %v7164_v6 = vpop.f32.mrb[34].mxu1 }
 0x59c   : > { %v7168_v11 = vpop.f32.mrb[35].mxu1  ;;  %v3358_v23 = vrot.slane %v7164_v6, 1  ;;  %v3442_v13 = vrot.slane %v7164_v6, 2  ;;  %v3526_v25 = vrot.slane %v7164_v6, 3  ;;  %v3610_v27 = vrot.slane %v7164_v6, 4 }
 0x59d   : > { %v3359_v24 = vrot.slane %v7168_v11, 1  ;;  %v3443_v14 = vrot.slane %v7168_v11, 2  ;;  %v3527_v26 = vrot.slane %v7168_v11, 3  ;;  %v3611_v28 = vrot.slane %v7168_v11, 4 }
 0x59e   : > { %3622 = vrot.lane.b32.xlu1 %v3608_v8, %s5038_s18  ;;  %3540 = vrot.lane.b32.xlu0 %v3525_v10, %s5037_s17  ;;  %v3694_v29 = vrot.slane %v7164_v6, 5  ;;  %v3695_v30 = vrot.slane %v7168_v11, 5  ;;  %v3778_v31 = vrot.slane %v7164_v6, 6  ;;  %v3779_v9 = vrot.slane %v7168_v11, 6 }
 0x59f   : > { %v2935_v12 = vpop.f32.mrb[36].mxu1  ;;  %v3862_v32 = vrot.slane %v7164_v6, 7  ;;  %v3863_v33 = vrot.slane %v7168_v11, 7 }
 0x5a0   : > { %v2937_v17 = vpop.f32.mrb[37].mxu1 }
 0x5a2   : > { %3706 = vrot.lane.b32.xlu1 %v3692_v16, %s5039_s19  ;;  %3624 = vrot.lane.b32.xlu0 %v3609_v15, %s5038_s18 }
 0x5a6   : > { %3790 = vrot.lane.b32.xlu1 %v3776_v18, %s5040_s20  ;;  %3708 = vrot.lane.b32.xlu0 %v3693_v56, %s5039_s19 }
 0x5aa   : > { %3874 = vrot.lane.b32.xlu1 %v3860_v20, %s5041_s21  ;;  %3792 = vrot.lane.b32.xlu0 %v3777_v21, %s5040_s20 }
 0x5ae   : > { %3876 = vrot.lane.b32.xlu0 %v3861_v63, %s5041_s21  ;;  %3372 = vrot.lane.b32.xlu1 %v3357_v22, %s5036_s15 }
 0x5b2   : > { %3958 = vrot.lane.b32.xlu1 %v2858_v3, %s5042_s9  ;;  %3960 = vrot.lane.b32.xlu0 %v2860_v5, %s5042_s9 }
 0x5b6   : > { %3374 = vrot.lane.b32.xlu1 %v3358_v23, %s5036_s15  ;;  %3376 = vrot.lane.b32.xlu0 %v3359_v24, %s5036_s15 }
 0x5ba   : > { %3458 = vrot.lane.b32.xlu1 %v3442_v13, %s5035_s14  ;;  %3460 = vrot.lane.b32.xlu0 %v3443_v14, %s5035_s14 }
 0x5be   : > { %3542 = vrot.lane.b32.xlu1 %v3526_v25, %s5037_s17  ;;  %3544 = vrot.lane.b32.xlu0 %v3527_v26, %s5037_s17 }
 0x5c2   : > { %3626 = vrot.lane.b32.xlu1 %v3610_v27, %s5038_s18  ;;  %3628 = vrot.lane.b32.xlu0 %v3611_v28, %s5038_s18 }
 0x5c6   : > { %3710 = vrot.lane.b32.xlu1 %v3694_v29, %s5039_s19  ;;  %3712 = vrot.lane.b32.xlu0 %v3695_v30, %s5039_s19 }
 0x5ca   : > { %3794 = vrot.lane.b32.xlu1 %v3778_v31, %s5040_s20  ;;  %3796 = vrot.lane.b32.xlu0 %v3779_v9, %s5040_s20 }
 0x5ce   : > { %3878 = vrot.lane.b32.xlu1 %v3862_v32, %s5041_s21  ;;  %3880 = vrot.lane.b32.xlu0 %v3863_v33, %s5041_s21 }
 0x5d2   : > { %3962 = vrot.lane.b32.xlu1 %v2935_v12, %s5042_s9  ;;  %3964 = vrot.lane.b32.xlu0 %v2937_v17, %s5042_s9 }
 0x5d3   : > { %v7220_v34 = vpop.f32.mrb[38].mxu1 }
 0x5d4   : > { %v7222_v35 = vpop.f32.mrb[39].mxu1  ;;  %v3360_v36 = vrot.slane %v7220_v34, 1  ;;  %v3444_v39 = vrot.slane %v7220_v34, 2  ;;  %v3528_v43 = vrot.slane %v7220_v34, 3  ;;  %v3612_v60 = vrot.slane %v7220_v34, 4 }
 0x5d5   : > { %v3361_v37 = vrot.slane %v7222_v35, 1  ;;  %v3445_v41 = vrot.slane %v7222_v35, 2  ;;  %v3529_v58 = vrot.slane %v7222_v35, 3  ;;  %v3613_v62 = vrot.slane %v7222_v35, 4 }
 0x5d6   : > { %3378 = vrot.lane.b32.xlu1 %v3360_v36, %s5036_s15  ;;  %v3696_v0 = vrot.slane %v7220_v34, 5  ;;  %v3697_v19 = vrot.slane %v7222_v35, 5  ;;  %v3780_v45 = vrot.slane %v7220_v34, 6  ;;  %v3781_v48 = vrot.slane %v7222_v35, 6 }
 0x5d7   : > { %3380 = vrot.lane.b32.xlu0 %v3361_v37, %s5036_s15  ;;  %v3012_v38 = vpop.f32.mrb[40].mxu1  ;;  %v3864_v44 = vrot.slane %v7220_v34, 7  ;;  %v3865_v46 = vrot.slane %v7222_v35, 7  ;;  %v7320_v36 = vstv %s3325_s16 }
 0x5d8   : > { %v3014_v40 = vpop.f32.mrb[41].mxu1 }
 0x5da   : > { %3462 = vrot.lane.b32.xlu1 %v3444_v39, %s5035_s14 }
 0x5db   : > { %3464 = vrot.lane.b32.xlu0 %v3445_v41, %s5035_s14  ;;  %v7232_v42 = vpop.f32.mrb[42].mxu1 }
 0x5dc   : > { %v7235_v57 = vpop.f32.mrb[43].mxu1  ;;  %v3362_v47 = vrot.slane %v7232_v42, 1  ;;  %v3446_v50 = vrot.slane %v7232_v42, 2  ;;  %v3530_v52 = vrot.slane %v7232_v42, 3  ;;  %v3614_v55 = vrot.slane %v7232_v42, 4 }
 0x5dd   : > { %v3363_v49 = vrot.slane %v7235_v57, 1  ;;  %v3447_v51 = vrot.slane %v7235_v57, 2  ;;  %v3531_v53 = vrot.slane %v7235_v57, 3  ;;  %v3615_v1 = vrot.slane %v7235_v57, 4 }
 0x5de   : > { %3546 = vrot.lane.b32.xlu1 %v3528_v43, %s5037_s17  ;;  %v3698_v3 = vrot.slane %v7232_v42, 5  ;;  %v3699_v4 = vrot.slane %v7235_v57, 5  ;;  %v3782_v8 = vrot.slane %v7232_v42, 6  ;;  %v3783_v10 = vrot.slane %v7235_v57, 6 }
 0x5df   : > { %3548 = vrot.lane.b32.xlu0 %v3529_v58, %s5037_s17  ;;  %v3089_v59 = vpop.f32.mrb[44].mxu1  ;;  %v3866_v15 = vrot.slane %v7232_v42, 7  ;;  %v3867_v17 = vrot.slane %v7235_v57, 7 }
 0x5e0   : > { %v3091_v61 = vpop.f32.mrb[45].mxu1 }
 0x5e2   : > { %3630 = vrot.lane.b32.xlu1 %v3612_v60, %s5038_s18 }
 0x5e3   : > { %3632 = vrot.lane.b32.xlu0 %v3613_v62, %s5038_s18 }
 0x5e6   : > { %3714 = vrot.lane.b32.xlu1 %v3696_v0, %s5039_s19 }
 0x5e7   : > { %3716 = vrot.lane.b32.xlu0 %v3697_v19, %s5039_s19 }
 0x5ea   : > { %3798 = vrot.lane.b32.xlu1 %v3780_v45, %s5040_s20 }
 0x5eb   : > { %3800 = vrot.lane.b32.xlu0 %v3781_v48, %s5040_s20 }
 0x5ee   : > { %3882 = vrot.lane.b32.xlu1 %v3864_v44, %s5041_s21 }
 0x5ef   : > { %3884 = vrot.lane.b32.xlu0 %v3865_v46, %s5041_s21 }
 0x5f2   : > { %3966 = vrot.lane.b32.xlu1 %v3012_v38, %s5042_s9  ;;  %v3328_v38 = vadd.f32 %v7320_v36, %v7152_v54 }
 0x5f3   : > { %3968 = vrot.lane.b32.xlu0 %v3014_v40, %s5042_s9 }
 0x5f6   : > { %3382 = vrot.lane.b32.xlu1 %v3362_v47, %s5036_s15 }
 0x5f7   : > { %3384 = vrot.lane.b32.xlu0 %v3363_v49, %s5036_s15 }
 0x5fa   : > { %3466 = vrot.lane.b32.xlu1 %v3446_v50, %s5035_s14  ;;  %v3329_v50 = vadd.f32 %v7320_v36, %v7156_v2 }
 0x5fb   : > { %3468 = vrot.lane.b32.xlu0 %v3447_v51, %s5035_s14 }
 0x5fe   : > { %3550 = vrot.lane.b32.xlu1 %v3530_v52, %s5037_s17 }
 0x5ff   : > { %3552 = vrot.lane.b32.xlu0 %v3531_v53, %s5037_s17 }
 0x602   : > { %3634 = vrot.lane.b32.xlu1 %v3614_v55, %s5038_s18 }
 0x603   : > { %3636 = vrot.lane.b32.xlu0 %v3615_v1, %s5038_s18  ;;  %v3330_v1 = vadd.f32 %v7320_v36, %v7164_v6 }
 0x606   : > { %3718 = vrot.lane.b32.xlu1 %v3698_v3, %s5039_s19 }
 0x607   : > { %3720 = vrot.lane.b32.xlu0 %v3699_v4, %s5039_s19 }
 0x608   : > { %v3455_v7 = vpop.permute.xlu1 %3454  ;;  %v3371_v5 = vpop.permute.xlu0 %3370 }
 0x60a   : > { %3802 = vrot.lane.b32.xlu1 %v3782_v8, %s5040_s20 }
 0x60b   : > { %3804 = vrot.lane.b32.xlu0 %v3783_v10, %s5040_s20 }
 0x60c   : > { %v3539_v12 = vpop.permute.xlu1 %3538  ;;  %v7282_v16 = vpop.permute.xlu0 %3456 }
 0x60e   : > { %3886 = vrot.lane.b32.xlu1 %v3866_v15, %s5041_s21 }
 0x60f   : > { %3888 = vrot.lane.b32.xlu0 %v3867_v17, %s5041_s21 }
 0x610   : > { %v3623_v18 = vpop.permute.xlu1 %3622  ;;  %v7288_v56 = vpop.permute.xlu0 %3540 }
 0x611   : > { %v3567_v19 = vsel %vm3566_vm5, %v3539_v12, %v7288_v56 }
 0x612   : > { %3970 = vrot.lane.b32.xlu1 %v3089_v59, %s5042_s9 }
 0x613   : > { %3972 = vrot.lane.b32.xlu0 %v3091_v61, %s5042_s9  ;;  %v7292_v20 = vpop.f32.mrb[46].mxu1  ;;  %v3483_v61 = vsel %vm3482_vm4, %v3455_v7, %v7282_v16 }
 0x614   : > { %v7294_v21 = vpop.f32.mrb[47].mxu1  ;;  %v3707_v63 = vpop.permute.xlu1 %3706  ;;  %v3364_v22 = vrot.slane %v7292_v20, 1  ;;  %v3448_v25 = vrot.slane %v7292_v20, 2  ;;  %v3532_v31 = vrot.slane %v7292_v20, 3  ;;  %v3616_v40 = vrot.slane %v7292_v20, 4 }
 0x615   : > { %v7297_v23 = vpop.permute.xlu0 %3624  ;;  %v3365_v24 = vrot.slane %v7294_v21, 1  ;;  %v3449_v28 = vrot.slane %v7294_v21, 2  ;;  %v3533_v33 = vrot.slane %v7294_v21, 3  ;;  %v3617_v59 = vrot.slane %v7294_v21, 4 }
 0x616   : > { %3386 = vrot.lane.b32.xlu1 %v3364_v22, %s5036_s15  ;;  %v3700_v0 = vrot.slane %v7292_v20, 5  ;;  %v3701_v48 = vrot.slane %v7294_v21, 5  ;;  %v3651_v47 = vsel %vm3650_vm7, %v3623_v18, %v7297_v23  ;;  %v3784_v52 = vrot.slane %v7292_v20, 6 }
 0x617   : > { %3388 = vrot.lane.b32.xlu0 %v3365_v24, %s5036_s15  ;;  %v7302_v13 = vpop.f32.mrb[48].mxu1  ;;  %v3785_v4 = vrot.slane %v7294_v21, 6  ;;  %v3868_v15 = vrot.slane %v7292_v20, 7  ;;  %v3869_v22 = vrot.slane %v7294_v21, 7 }
 0x618   : > { %v3791_v14 = vpop.permute.xlu1 %3790  ;;  %v7305_v26 = vpop.f32.mrb[49].mxu1 }
 0x619   : > { %v7307_v27 = vpop.permute.xlu0 %3708 }
 0x61a   : > { %3470 = vrot.lane.b32.xlu1 %v3448_v25, %s5035_s14  ;;  %v3735_v53 = vsel %vm3734_vm8, %v3707_v63, %v7307_v27 }
 0x61b   : > { %3472 = vrot.lane.b32.xlu0 %v3449_v28, %s5035_s14  ;;  %v7312_v29 = vpop.f32.mrb[50].mxu1 }
 0x61c   : > { %v3875_v30 = vpop.permute.xlu1 %3874  ;;  %v7315_v9 = vpop.f32.mrb[51].mxu1 }
 0x61d   : > { %v7317_v32 = vpop.permute.xlu0 %3792 }
 0x61e   : > { %3554 = vrot.lane.b32.xlu1 %v3532_v31, %s5037_s17  ;;  %v3819_v8 = vsel %vm3818_vm9, %v3791_v14, %v7317_v32 }
 0x61f   : > { %3556 = vrot.lane.b32.xlu0 %v3533_v33, %s5037_s17  ;;  %v7324_v37 = vpop.f32.mrb[52].mxu1 }
 0x620   : > { %v3373_v39 = vpop.permute.xlu1 %3372  ;;  %v7329_v41 = vpop.f32.mrb[53].mxu1 }
 0x621   : > { %v7331_v43 = vpop.permute.xlu0 %3876  ;;  %v3399_v58 = vsel %vm3398_vm3, %v3371_v5, %v3373_v39 }
 0x622   : > { %v3426_v60 = vadd.f32 %v3399_v58, %v3328_v38  ;;  %3638 = vrot.lane.b32.xlu1 %v3616_v40, %s5038_s18  ;;  %v3903_v17 = vsel %vm3902_vm10, %v3875_v30, %v7331_v43  ;;  %v3366_v40 = vrot.slane %v7312_v29, 1 }
 0x623   : > { %3640 = vrot.lane.b32.xlu0 %v3617_v59, %s5038_s18  ;;  %v3367_v59 = vrot.slane %v7315_v9, 1 }
 0x624   : > { %v3510_v54 = vadd.f32 %v3483_v61, %v3426_v60  ;;  %v3959_v62 = vpop.permute.xlu1 %3958 }
 0x625   : > { %v7342_v45 = vpop.permute.xlu0 %3960 }
 0x626   : > { %v3594_v44 = vadd.f32 %v3567_v19, %v3510_v54  ;;  %v3987_v46 = vsel %vm3986_vm6, %v3959_v62, %v7342_v45  ;;  %3722 = vrot.lane.b32.xlu1 %v3700_v0, %s5039_s19 }
 0x627   : > { %3724 = vrot.lane.b32.xlu0 %v3701_v48, %s5039_s19 }
 0x628   : > { %v3678_v49 = vadd.f32 %v3651_v47, %v3594_v44  ;;  %v3375_v51 = vpop.permute.xlu1 %3374 }
 0x629   : > { %v3400_v55 = vsel %vm3398_vm3, %v3373_v39, %v3375_v51  ;;  %v7359_v3 = vpop.permute.xlu0 %3376 }
 0x62a   : > { %v3762_v7 = vadd.f32 %v3735_v53, %v3678_v49  ;;  %v3427_v5 = vadd.f32 %v3400_v55, %v3329_v50  ;;  %v3401_v2 = vsel %vm3398_vm3, %v3375_v51, %v7359_v3  ;;  %3806 = vrot.lane.b32.xlu1 %v3784_v52, %s5040_s20  ;;  %v3534_v50 = vrot.slane %v7312_v29, 3 }
 0x62b   : > { %v3428_v10 = vadd.f32 %v3401_v2, %v3330_v1  ;;  %3808 = vrot.lane.b32.xlu0 %v3785_v4, %s5040_s20  ;;  %v3535_v52 = vrot.slane %v7315_v9, 3  ;;  %v3619_v2 = vrot.slane %v7315_v9, 4 }
 0x62c   : > { %v3846_v12 = vadd.f32 %v3819_v8, %v3762_v7  ;;  %v3459_v6 = vpop.permute.xlu1 %3458  ;;  %v3618_v7 = vrot.slane %v7312_v29, 4 }
 0x62d   : > { %v3484_v18 = vsel %vm3482_vm4, %v7282_v16, %v3459_v6  ;;  %v7373_v63 = vpop.permute.xlu0 %3460 }
 0x62e   : > { %v3930_v24 = vadd.f32 %v3903_v17, %v3846_v12  ;;  %v3511_v25 = vadd.f32 %v3484_v18, %v3427_v5  ;;  %v3485_v14 = vsel %vm3482_vm4, %v3459_v6, %v7373_v63  ;;  %3890 = vrot.lane.b32.xlu1 %v3868_v15, %s5041_s21  ;;  %v3702_v15 = vrot.slane %v7312_v29, 5 }
 0x62f   : > { %v3512_v28 = vadd.f32 %v3485_v14, %v3428_v10  ;;  %3892 = vrot.lane.b32.xlu0 %v3869_v22, %s5041_s21  ;;  %v3703_v18 = vrot.slane %v7315_v9, 5 }
 0x630   : > { %v7380_v31 = vadd.f32 %v3987_v46, %v3930_v24  ;;  %v3543_v30 = vpop.permute.xlu1 %3542 }
 0x631   : > { %v3568_v16 = vsel %vm3566_vm5, %v7288_v56, %v3543_v30  ;;  %v7384_v33 = vpop.permute.xlu0 %3544 }
 0x632   : > { %v3595_v38 = vadd.f32 %v3568_v16, %v3511_v25  ;;  %v3569_v39 = vsel %vm3566_vm5, %v3543_v30, %v7384_v33  ;;  %3974 = vrot.lane.b32.xlu1 %v7302_v13, %s5042_s9  ;;  %v3786_v30 = vrot.slane %v7312_v29, 6 }
 0x633   : > { %v3596_v58 = vadd.f32 %v3569_v39, %v3512_v28  ;;  %3976 = vrot.lane.b32.xlu0 %v7305_v26, %s5042_s9  ;;  %v3450_v26 = vrot.slane %v7312_v29, 2 }
 0x634   : > { %v3627_v60 = vpop.permute.xlu1 %3626 }
 0x635   : > { %v3652_v56 = vsel %vm3650_vm7, %v7297_v23, %v3627_v60  ;;  %v7396_v61 = vpop.permute.xlu0 %3628  ;;  %v3451_v23 = vrot.slane %v7315_v9, 2 }
 0x636   : > { %v3679_v54 = vadd.f32 %v3652_v56, %v3595_v38  ;;  %v3653_v62 = vsel %vm3650_vm7, %v3627_v60, %v7396_v61  ;;  %3390 = vrot.lane.b32.xlu1 %v3366_v40, %s5036_s15  ;;  %v3332_v38 = vadd.f32 %v7320_v36, %v7220_v34  ;;  %v3787_v40 = vrot.slane %v7315_v9, 6 }
 0x637   : > { %v3680_v13 = vadd.f32 %v3653_v62, %v3596_v58  ;;  %3392 = vrot.lane.b32.xlu0 %v3367_v59, %s5036_s15  ;;  %v3870_v56 = vrot.slane %v7312_v29, 7 }
 0x638   : > { %v3711_v0 = vpop.permute.xlu1 %3710 }
 0x639   : > { %v3736_v19 = vsel %vm3734_vm8, %v7307_v27, %v3711_v0  ;;  %v7405_v48 = vpop.permute.xlu0 %3712 }
 0x63a   : > { %v3763_v44 = vadd.f32 %v3736_v19, %v3679_v54  ;;  %v3737_v46 = vsel %vm3734_vm8, %v3711_v0, %v7405_v48  ;;  %3474 = vrot.lane.b32.xlu1 %v3450_v26, %s5035_s14  ;;  %v3871_v54 = vrot.slane %v7315_v9, 7 }
 0x63b   : > { %v3764_v47 = vadd.f32 %v3737_v46, %v3680_v13  ;;  %3476 = vrot.lane.b32.xlu0 %v3451_v23, %s5035_s14 }
 0x63c   : > { %v3795_v49 = vpop.permute.xlu1 %3794 }
 0x63d   : > { %v3820_v51 = vsel %vm3818_vm9, %v7317_v32, %v3795_v49  ;;  %v7415_v27 = vpop.permute.xlu0 %3796 }
 0x63e   : > { %v3847_v53 = vadd.f32 %v3820_v51, %v3763_v44  ;;  %v3821_v55 = vsel %vm3818_vm9, %v3795_v49, %v7415_v27  ;;  %3558 = vrot.lane.b32.xlu1 %v3534_v50, %s5037_s17 }
 0x63f   : > { %v3848_v1 = vadd.f32 %v3821_v55, %v3764_v47  ;;  %3560 = vrot.lane.b32.xlu0 %v3535_v52, %s5037_s17 }
 0x640   : > { %v3879_v4 = vpop.permute.xlu1 %3878 }
 0x641   : > { %v3904_v5 = vsel %vm3902_vm10, %v7331_v43, %v3879_v4  ;;  %v7425_v32 = vpop.permute.xlu0 %3880 }
 0x642   : > { %v3931_v8 = vadd.f32 %v3904_v5, %v3847_v53  ;;  %v3905_v10 = vsel %vm3902_vm10, %v3879_v4, %v7425_v32  ;;  %3642 = vrot.lane.b32.xlu1 %v3618_v7, %s5038_s18 }
 0x643   : > { %v3932_v12 = vadd.f32 %v3905_v10, %v3848_v1  ;;  %3644 = vrot.lane.b32.xlu0 %v3619_v2, %s5038_s18 }
 0x644   : > { %v3963_v6 = vpop.permute.xlu1 %3962 }
 0x645   : > { %v3988_v17 = vsel %vm3986_vm6, %v7342_v45, %v3963_v6  ;;  %v7435_v43 = vpop.permute.xlu0 %3964  ;;  %v3331_v45 = vadd.f32 %v7320_v36, %v7168_v11 }
 0x646   : > { %v7438_v22 = vadd.f32 %v3988_v17, %v3931_v8  ;;  %v3989_v24 = vsel %vm3986_vm6, %v3963_v6, %v7435_v43  ;;  %3726 = vrot.lane.b32.xlu1 %v3702_v15, %s5039_s19 }
 0x647   : > { %v7443_v25 = vadd.f32 %v3989_v24, %v3932_v12  ;;  %3728 = vrot.lane.b32.xlu0 %v3703_v18, %s5039_s19 }
 0x648   : > { %v4042_v14 = vcombine.low %v7380_v31, %v7438_v22  ;;  %v3379_v28 = vpop.permute.xlu1 %3378 }
 0x649   : > { %v3402_v16 = vsel %vm3398_vm3, %v7359_v3, %v3379_v28  ;;  %v7455_v39 = vpop.permute.xlu0 %3380 }
 0x64a   : > { %v3429_v58 = vadd.f32 %v3402_v16, %v3331_v45  ;;  %v3403_v59 = vsel %vm3398_vm3, %v3379_v28, %v7455_v39  ;;  %3810 = vrot.lane.b32.xlu1 %v3786_v30, %s5040_s20  ;;  %v5043_v45 = vmov 1966171168   ;;  %v4049_v30 = vlaneseq }
 0x64b   : > { %v3430_v11 = vadd.f32 %v3403_v59, %v3332_v38  ;;  %3812 = vrot.lane.b32.xlu0 %v3787_v40, %s5040_s20  ;;  %v4047_v28 = vunpack.c.l.s4 %v5043_v45 }
 0x64c   : > { %v3463_v60 = vpop.permute.xlu1 %3462  ;;  %vm4136_vm11 = vcmp.lt.s32.totalorder %v4049_v30, 654 }
 0x64d   : > { %v3486_v3 = vsel %vm3482_vm4, %v7373_v63, %v3463_v60  ;;  %v7465_v34 = vpop.permute.xlu0 %3464 }
 0x64e   : > { %v3513_v62 = vadd.f32 %v3486_v3, %v3429_v58  ;;  %v3487_v13 = vsel %vm3482_vm4, %v3463_v60, %v7465_v34  ;;  %3894 = vrot.lane.b32.xlu1 %v3870_v56, %s5041_s21  ;;  %v4048_v56 = vunpack.c.0.s8 %v4047_v28  ;;  %v4050_v3 = vshrl.u32 %v4049_v30, 7 }
 0x64f   : > { %v3514_v0 = vadd.f32 %v3487_v13, %v3430_v11  ;;  %3896 = vrot.lane.b32.xlu0 %v3871_v54, %s5041_s21 }
 0x650   : > { %v3547_v26 = vpop.permute.xlu1 %3546 }
 0x651   : > { %v3570_v19 = vsel %vm3566_vm5, %v7384_v33, %v3547_v26  ;;  %v7474_v23 = vpop.permute.xlu0 %3548 }
 0x652   : > { %v3597_v63 = vadd.f32 %v3570_v19, %v3513_v62  ;;  %v3571_v44 = vsel %vm3566_vm5, %v3547_v26, %v7474_v23  ;;  %3978 = vrot.lane.b32.xlu1 %v7324_v37, %s5042_s9 }
 0x653   : > { %v3598_v46 = vadd.f32 %v3571_v44, %v3514_v0  ;;  %3980 = vrot.lane.b32.xlu0 %v7329_v41, %s5042_s9  ;;  %v7482_v47 = vpop.f32.mrb[54].mxu1  ;;  %v7532_v44 = vsub.s32 %v4048_v56, %v4050_v3 }
 0x654   : > { %v7484_v49 = vpop.f32.mrb[55].mxu1  ;;  %v3631_v50 = vpop.permute.xlu1 %3630  ;;  %v3368_v33 = vrot.slane %v7482_v47, 1  ;;  %v3452_v7 = vrot.slane %v7482_v47, 2  ;;  %v3536_v17 = vrot.slane %v7482_v47, 3  ;;  %v3620_v59 = vrot.slane %v7482_v47, 4 }
 0x655   : > { %v3654_v51 = vsel %vm3650_vm7, %v7396_v61, %v3631_v50  ;;  %v7489_v52 = vpop.permute.xlu0 %3632  ;;  %v3369_v53 = vrot.slane %v7484_v49, 1  ;;  %v3453_v8 = vrot.slane %v7484_v49, 2  ;;  %v3537_v24 = vrot.slane %v7484_v49, 3 }
 0x656   : > { %v3681_v55 = vadd.f32 %v3654_v51, %v3597_v63  ;;  %v3655_v37 = vsel %vm3650_vm7, %v3631_v50, %v7489_v52  ;;  %3394 = vrot.lane.b32.xlu1 %v3368_v33, %s5036_s15  ;;  %v3621_v60 = vrot.slane %v7484_v49, 4  ;;  %v3704_v26 = vrot.slane %v7482_v47, 5 }
 0x657   : > { %v3682_v41 = vadd.f32 %v3655_v37, %v3598_v46  ;;  %3396 = vrot.lane.b32.xlu0 %v3369_v53, %s5036_s15  ;;  %v7496_v1 = vpop.f32.mrb[56].mxu1  ;;  %v3705_v63 = vrot.slane %v7484_v49, 5  ;;  %v3333_v53 = vadd.f32 %v7320_v36, %v7222_v35  ;;  %v3873_v22 = vrot.slane %v7484_v49, 7  ;;  %s7731_s15 = scalar_lea.hbm %s7783_s7, %s4917_s30 }
 0x658   : > { %v3715_v4 = vpop.permute.xlu1 %3714  ;;  %v7499_v5 = vpop.f32.mrb[57].mxu1 }
 0x659   : > { %v3738_v61 = vsel %vm3734_vm8, %v7405_v48, %v3715_v4  ;;  %v7503_v2 = vpop.permute.xlu0 %3716 }
 0x65a   : > { %v3765_v10 = vadd.f32 %v3738_v61, %v3681_v55  ;;  %v3739_v12 = vsel %vm3734_vm8, %v3715_v4, %v7503_v2  ;;  %3478 = vrot.lane.b32.xlu1 %v3452_v7, %s5035_s14  ;;  %v3788_v55 = vrot.slane %v7482_v47, 6  ;;  %v3789_v4 = vrot.slane %v7484_v49, 6 }
 0x65b   : > { %v3766_v6 = vadd.f32 %v3739_v12, %v3682_v41  ;;  %3480 = vrot.lane.b32.xlu0 %v3453_v8, %s5035_s14  ;;  %v7550_v7 = vrot.slane %v4042_v14, %v7532_v44  ;;  %v3872_v8 = vrot.slane %v7482_v47, 7 }
 0x65c   : > { %v3799_v15 = vpop.permute.xlu1 %3798 }
 0x65d   : > { %v3822_v18 = vsel %vm3818_vm9, %v7415_v27, %v3799_v15  ;;  %v7513_v48 = vpop.permute.xlu0 %3800 }
 0x65e   : > { %v3849_v16 = vadd.f32 %v3822_v18, %v3765_v10  ;;  %v3823_v38 = vsel %vm3818_vm9, %v3799_v15, %v7513_v48  ;;  %3562 = vrot.lane.b32.xlu1 %v3536_v17, %s5037_s17 }
 0x65f   : > { %v3850_v40 = vadd.f32 %v3823_v38, %v3766_v6  ;;  %3564 = vrot.lane.b32.xlu0 %v3537_v24, %s5037_s17  ;;  %s4969_s17 = scalar_lea.vmem %s7733_s25, 224 }
 0x660   : > { %v3883_v58 = vpop.permute.xlu1 %3882  ;;  %p4970_p11 = scmp.ne.s32.totalorder %s7733_s25, %s4969_s17 }
 0x661   : > { %v3906_v27 = vsel %vm3902_vm10, %v7425_v32, %v3883_v58  ;;  %v3885_v11 = vpop.permute.xlu0 %3884 }
 0x662   : > { %v3933_v54 = vadd.f32 %v3906_v27, %v3849_v16  ;;  %v3907_v62 = vsel %vm3902_vm10, %v3883_v58, %v3885_v11  ;;  %3646 = vrot.lane.b32.xlu1 %v3620_v59, %s5038_s18  ;;  %p4971_p12 = pnand %p4970_p11, %p5126_p5 }
 0x663   : > { %v3934_v13 = vadd.f32 %v3907_v62, %v3850_v40  ;;  %3648 = vrot.lane.b32.xlu0 %v3621_v60, %s5038_s18  ;;  %s5044_s18 = smov [#allocation3]  }
 0x664   : > { %v3967_v0 = vpop.permute.xlu1 %3966  ;;  %p4972_p13 = pneg %p4971_p12 }
 0x665   : > { %v3990_v32 = vsel %vm3986_vm6, %v7435_v43, %v3967_v0  ;;  %v3969_v19 = vpop.permute.xlu0 %3968 }
 0x666   : > { %v4017_v46 = vadd.f32 %v3990_v32, %v3933_v54  ;;  %v3991_v50 = vsel %vm3986_vm6, %v3967_v0, %v3969_v19  ;;  %3730 = vrot.lane.b32.xlu1 %v3704_v26, %s5039_s19 }
 0x667   : > { %v7536_v33 = vadd.f32 %v3991_v50, %v3934_v13  ;;  %3732 = vrot.lane.b32.xlu0 %v3705_v63, %s5039_s19  ;;  %s4973_s19 = sshll.u32 %s5044_s18, 4  ;;  %s4974_s19 = int_to_ptr.vmem [resolvable:$false] %s4973_s19 }
 0x668   : > { %v4043_v51 = vcombine.low %v7443_v25, %v4017_v46  ;;  %v3383_v43 = vpop.permute.xlu1 %3382  ;;  %p4976_p0 = scmp.lt.s32.totalorder %s7733_s25, %s4974_s19 }
 0x669   : > { %v3404_v37 = vsel %vm3398_vm3, %v7455_v39, %v3383_v43  ;;  %v3385_v41 = vpop.permute.xlu0 %3384 }
 0x66a   : > { %v7553_v25 = vrot.slane %v4043_v51, %v7532_v44  ;;  %v3431_v61 = vadd.f32 %v3404_v37, %v3333_v53  ;;  %3814 = vrot.lane.b32.xlu1 %v3788_v55, %s5040_s20  ;;  %v3405_v37 = vsel %vm3398_vm3, %v3383_v43, %v3385_v41 }
 0x66b   : > { %3816 = vrot.lane.b32.xlu0 %v3789_v4, %s5040_s20  ;;  %s4975_s20 = scalar_lea.vmem %s4974_s19, 448 }
 0x66c   : > { %v4074_v35 = vcombine.low %v7550_v7, %v7553_v25  ;;  %v3467_v39 = vpop.permute.xlu1 %3466  ;;  %p4977_p1 = scmp.lt.s32.totalorder %s4975_s20, %s4969_s17 }
 0x66d   : > { %v3488_v10 = vsel %vm3482_vm4, %v7465_v34, %v3467_v39  ;;  %v3469_v31 = vpop.permute.xlu0 %3468 }
 0x66e   : > { %v3515_v14 = vadd.f32 %v3488_v10, %v3431_v61  ;;  %3898 = vrot.lane.b32.xlu1 %v3872_v8, %s5041_s21  ;;  %v3334_v8 = vadd.f32 %v7320_v36, %v7232_v42  ;;  %v3335_v10 = vadd.f32 %v7320_v36, %v7235_v57  ;;  %p4978_p2 = por %p4977_p1, %p4976_p0 }
 0x66f   : > { %3900 = vrot.lane.b32.xlu0 %v3873_v22, %s5041_s21 }
 0x670   : > { %v3551_v12 = vpop.permute.xlu1 %3550  ;;  %p4979_p3 = pnand %p4978_p2, %p4972_p13 }
 0x671   : > { %v3572_v6 = vsel %vm3566_vm5, %v7474_v23, %v3551_v12  ;;  %v3553_v15 = vpop.permute.xlu0 %3552 }
 0x672   : > { %v3599_v17 = vadd.f32 %v3572_v6, %v3515_v14  ;;  %3982 = vrot.lane.b32.xlu1 %v7496_v1, %s5042_s9  ;;  %v3489_v14 = vsel %vm3482_vm4, %v3467_v39, %v3469_v31 }
 0x673   : > { %3984 = vrot.lane.b32.xlu0 %v7499_v5, %s5042_s9 }
 0x674   : > { %v3635_v34 = vpop.permute.xlu1 %3634 }
 0x675   : > { %v3656_v18 = vsel %vm3650_vm7, %v7489_v52, %v3635_v34  ;;  %v3637_v24 = vpop.permute.xlu0 %3636 }
 0x676   : > { %v3683_v45 = vadd.f32 %v3656_v18, %v3599_v17  ;;  %v3432_v18 = vadd.f32 %v3405_v37, %v3334_v8 }
 0x678   : > { %v3719_v28 = vpop.permute.xlu1 %3718  ;;  %v3516_v42 = vadd.f32 %v3489_v14, %v3432_v18 }
 0x679   : > { %v3740_v16 = vsel %vm3734_vm8, %v7503_v2, %v3719_v28  ;;  %v3721_v38 = vpop.permute.xlu0 %3720 }
 0x67a   : > { %v3767_v23 = vadd.f32 %v3740_v16, %v3683_v45 }
 0x67c   : > { %v3803_v40 = vpop.permute.xlu1 %3802 }
 0x67d   : > { %v3824_v58 = vsel %vm3818_vm9, %v7513_v48, %v3803_v40  ;;  %v3805_v1 = vpop.permute.xlu0 %3804  ;;  %v3336_v48 = vadd.f32 %v7320_v36, %v7292_v20 }
 0x67e   : > { %v3851_v59 = vadd.f32 %v3824_v58, %v3767_v23 }
 0x680   : > { %v3887_v27 = vpop.permute.xlu1 %3886 }
 0x681   : > { %v3908_v5 = vsel %vm3902_vm10, %v3885_v11, %v3887_v27  ;;  %v3889_v60 = vpop.permute.xlu0 %3888 }
 0x682   : > { %v3935_v56 = vadd.f32 %v3908_v5, %v3851_v59  ;;  %v3657_v59 = vsel %vm3650_vm7, %v3635_v34, %v3637_v24 }
 0x684   : > { %v3971_v52 = vpop.permute.xlu1 %3970 }
 0x685   : > { %v3992_v3 = vsel %vm3986_vm6, %v3969_v19, %v3971_v52  ;;  %v7579_v54 = vpop.permute.xlu0 %3972 }
 0x686   : > { %v7581_v62 = vadd.f32 %v3992_v3, %v3935_v56 }
 0x688   : > { %v4044_v2 = vcombine.low %v7536_v33, %v7581_v62  ;;  %v3387_v13 = vpop.permute.xlu1 %3386 }
 0x689   : > { %v7587_v0 = vpop.permute.xlu0 %3388  ;;  %v3406_v4 = vsel %vm3398_vm3, %v3385_v41, %v3387_v13  ;;  %v3573_v41 = vsel %vm3566_vm5, %v3551_v12, %v3553_v15 }
 0x68a   : > { %v3407_v11 = vsel %vm3398_vm3, %v3387_v13, %v7587_v0  ;;  %v3433_v43 = vadd.f32 %v3406_v4, %v3335_v10  ;;  %v3600_v5 = vadd.f32 %v3573_v41, %v3516_v42  ;;  %v3741_v13 = vsel %vm3734_vm8, %v3719_v28, %v3721_v38 }
 0x68b   : > { %v3434_v26 = vadd.f32 %v3407_v11, %v3336_v48  ;;  %v3993_v4 = vsel %vm3986_vm6, %v3971_v52, %v7579_v54 }
 0x68c   : > { %v3471_v32 = vpop.permute.xlu1 %3470  ;;  %v3684_v48 = vadd.f32 %v3657_v59, %v3600_v5 }
 0x68d   : > { %v7591_v63 = vpop.permute.xlu0 %3472  ;;  %v3490_v6 = vsel %vm3482_vm4, %v3469_v31, %v3471_v32 }
 0x68e   : > { %v3491_v19 = vsel %vm3482_vm4, %v3471_v32, %v7591_v63  ;;  %v3517_v58 = vadd.f32 %v3490_v6, %v3433_v43  ;;  %v3825_v32 = vsel %vm3818_vm9, %v3803_v40, %v3805_v1  ;;  %v3337_v43 = vadd.f32 %v7320_v36, %v7294_v21 }
 0x68f   : > { %v3518_v46 = vadd.f32 %v3491_v19, %v3434_v26 }
 0x690   : > { %v3555_v50 = vpop.permute.xlu1 %3554 }
 0x691   : > { %v7595_v51 = vpop.permute.xlu0 %3556  ;;  %v3574_v16 = vsel %vm3566_vm5, %v3553_v15, %v3555_v50 }
 0x692   : > { %v3575_v53 = vsel %vm3566_vm5, %v3555_v50, %v7595_v51  ;;  %v3601_v56 = vadd.f32 %v3574_v16, %v3517_v58 }
 0x693   : > { %v3602_v20 = vadd.f32 %v3575_v53, %v3518_v46  ;;  %v3768_v46 = vadd.f32 %v3741_v13, %v3684_v48  ;;  %v3909_v53 = vsel %vm3902_vm10, %v3887_v27, %v3889_v60 }
 0x694   : > { %v3639_v55 = vpop.permute.xlu1 %3638 }
 0x695   : > { %v7601_v61 = vpop.permute.xlu0 %3640  ;;  %v3658_v39 = vsel %vm3650_vm7, %v3637_v24, %v3639_v55 }
 0x696   : > { %v3659_v22 = vsel %vm3650_vm7, %v3639_v55, %v7601_v61  ;;  %v3685_v11 = vadd.f32 %v3658_v39, %v3601_v56  ;;  %v3852_v55 = vadd.f32 %v3825_v32, %v3768_v46 }
 0x697   : > { %v3686_v17 = vadd.f32 %v3659_v22, %v3602_v20 }
 0x698   : > { %v3723_v45 = vpop.permute.xlu1 %3722  ;;  %v3936_v8 = vadd.f32 %v3909_v53, %v3852_v55 }
 0x699   : > { %v7613_v23 = vpop.permute.xlu0 %3724  ;;  %v3742_v12 = vsel %vm3734_vm8, %v3721_v38, %v3723_v45 }
 0x69a   : > { %v3743_v57 = vsel %vm3734_vm8, %v3723_v45, %v7613_v23  ;;  %v3769_v24 = vadd.f32 %v3742_v12, %v3685_v11  ;;  %v4020_v14 = vadd.f32 %v3993_v4, %v3936_v8 }
 0x69b   : > { %v3770_v31 = vadd.f32 %v3743_v57, %v3686_v17 }
 0x69c   : > { %v3807_v3 = vpop.permute.xlu1 %3806 }
 0x69d   : > { %v3809_v15 = vpop.permute.xlu0 %3808  ;;  %v3826_v19 = vsel %vm3818_vm9, %v3805_v1, %v3807_v3 }
 0x69e   : > { %v3827_v26 = vsel %vm3818_vm9, %v3807_v3, %v3809_v15  ;;  %v3853_v38 = vadd.f32 %v3826_v19, %v3769_v24 }
 0x69f   : > { %v3854_v34 = vadd.f32 %v3827_v26, %v3770_v31 }
 0x6a0   : > { %v3891_v50 = vpop.permute.xlu1 %3890 }
 0x6a1   : > { %v3910_v20 = vsel %vm3902_vm10, %v3889_v60, %v3891_v50  ;;  %v3893_v28 = vpop.permute.xlu0 %3892 }
 0x6a2   : > { %v3911_v37 = vsel %vm3902_vm10, %v3891_v50, %v3893_v28  ;;  %v3937_v1 = vadd.f32 %v3910_v20, %v3853_v38 }
 0x6a3   : > { %v3938_v40 = vadd.f32 %v3911_v37, %v3854_v34 }
 0x6a4   : > { %v3975_v10 = vpop.permute.xlu1 %3974 }
 0x6a5   : > { %v3994_v22 = vsel %vm3986_vm6, %v7579_v54, %v3975_v10  ;;  %v3977_v27 = vpop.permute.xlu0 %3976  ;;  %v4066_v54 = vrot.slane %v4044_v2, %v7532_v44 }
 0x6a6   : > { %v4021_v60 = vadd.f32 %v3994_v22, %v3937_v1  ;;  %v3995_v6 = vsel %vm3986_vm6, %v3975_v10, %v3977_v27  ;;  %v3338_v22 = vadd.f32 %v7320_v36, %v7312_v29 }
 0x6a7   : > { %v7632_v17 = vadd.f32 %v3995_v6, %v3938_v40 }
 0x6a8   : > { %v4045_v18 = vcombine.low %v4020_v14, %v4021_v60  ;;  %v3391_v52 = vpop.permute.xlu1 %3390  ;;  %v3341_v14 = vadd.f32 %v7320_v36, %v7484_v49 }
 0x6a9   : > { %v3408_v45 = vsel %vm3398_vm3, %v7587_v0, %v3391_v52  ;;  %v3393_v41 = vpop.permute.xlu0 %3392  ;;  %v4082_v0 = vrot.slane %v4074_v35, %v7532_v44 }
 0x6aa   : > { %v4073_v16 = vrot.slane %v4045_v18, %v7532_v44  ;;  %v3435_v42 = vadd.f32 %v3408_v45, %v3337_v43  ;;  %v3409_v8 = vsel %vm3398_vm3, %v3391_v52, %v3393_v41  ;;  %v3340_v18 = vadd.f32 %v7320_v36, %v7482_v47 }
 0x6ab   : > { %v3436_v52 = vadd.f32 %v3409_v8, %v3338_v22 }
 0x6ac   : > { %v4075_v58 = vcombine.low %v4066_v54, %v4073_v16  ;;  %v3475_v57 = vpop.permute.xlu1 %3474 }
 0x6ad   : > { %v3492_v21 = vsel %vm3482_vm4, %v7591_v63, %v3475_v57  ;;  %v3477_v59 = vpop.permute.xlu0 %3476 }
 0x6ae   : > { %v3519_v39 = vadd.f32 %v3492_v21, %v3435_v42  ;;  %v4089_v33 = vrot.slane %v4075_v58, %v7532_v44  ;;  %v3493_v6 = vsel %vm3482_vm4, %v3475_v57, %v3477_v59 }
 0x6af   : > { %v3520_v58 = vadd.f32 %v3493_v6, %v3436_v52 }
 0x6b0   : > { %v3559_v62 = vpop.permute.xlu1 %3558  ;;  %v4090_v2 = vcombine.low %v4082_v0, %v4089_v33 }
 0x6b1   : > { %v3576_v31 = vsel %vm3566_vm5, %v7595_v51, %v3559_v62  ;;  %v3561_v5 = vpop.permute.xlu0 %3560 }
 0x6b2   : > { %v3603_v56 = vadd.f32 %v3576_v31, %v3519_v39  ;;  %4133 = vst [vmem:[%s7655_s24] sm:$0xff] %v4090_v2 }
 0x6b4   : > { %v3643_v63 = vpop.permute.xlu1 %3642 }
 0x6b5   : > { %v3660_v3 = vsel %vm3650_vm7, %v7601_v61, %v3643_v63  ;;  %v3645_v13 = vpop.permute.xlu0 %3644 }
 0x6b6   : > { %v3687_v7 = vadd.f32 %v3660_v3, %v3603_v56 }
 0x6b8   : > { %v3727_v25 = vpop.permute.xlu1 %3726 }
 0x6b9   : > { %v3744_v35 = vsel %vm3734_vm8, %v7613_v23, %v3727_v25  ;;  %v3729_v12 = vpop.permute.xlu0 %3728 }
 0x6ba   : > { %v3771_v48 = vadd.f32 %v3744_v35, %v3687_v7  ;;  %v3745_v56 = vsel %vm3734_vm8, %v3727_v25, %v3729_v12 }
 0x6bc   : > { %v3811_v11 = vpop.permute.xlu1 %3810 }
 0x6bd   : > { %v3828_v51 = vsel %vm3818_vm9, %v3809_v15, %v3811_v11  ;;  %v3813_v26 = vpop.permute.xlu0 %3812 }
 0x6be   : > { %v3855_v32 = vadd.f32 %v3828_v51, %v3771_v48 }
 0x6c0   : > { %v7663_v19 = vpop.permute.xlu1 %3894 }
 0x6c1   : > { %v3912_v34 = vsel %vm3902_vm10, %v3893_v28, %v7663_v19  ;;  %v7667_v46 = vpop.permute.xlu0 %3896 }
 0x6c2   : > { %v3939_v61 = vadd.f32 %v3912_v34, %v3855_v32  ;;  %v3829_v32 = vsel %vm3818_vm9, %v3811_v11, %v3813_v26 }
 0x6c4   : > { %v7669_v24 = vpop.permute.xlu1 %3978 }
 0x6c5   : > { %v3996_v23 = vsel %vm3986_vm6, %v3977_v27, %v7669_v24  ;;  %v7673_v50 = vpop.permute.xlu0 %3980  ;;  %v3339_v27 = vadd.f32 %v7320_v36, %v7315_v9  ;;  %v3577_v9 = vsel %vm3566_vm5, %v3559_v62, %v3561_v5  ;;  %v3661_v36 = vsel %vm3650_vm7, %v3643_v63, %v3645_v13 }
 0x6c6   : > { %v7675_v53 = vadd.f32 %v3996_v23, %v3939_v61  ;;  %v3604_v0 = vadd.f32 %v3577_v9, %v3520_v58  ;;  %v3997_v8 = vsel %vm3986_vm6, %v7669_v24, %v7673_v50 }
 0x6c8   : > { %v4091_v15 = vcombine.low %v7632_v17, %v7675_v53  ;;  %v3395_v20 = vpop.permute.xlu1 %3394  ;;  %v3688_v35 = vadd.f32 %v3661_v36, %v3604_v0 }
 0x6c9   : > { %v3397_v55 = vpop.permute.xlu0 %3396  ;;  %v3410_v1 = vsel %vm3398_vm3, %v3393_v41, %v3395_v20 }
 0x6ca   : > { %v3411_v60 = vsel %vm3398_vm3, %v3395_v20, %v3397_v55  ;;  %v3437_v45 = vadd.f32 %v3410_v1, %v3339_v27  ;;  %v3439_v41 = vadd.f32 %v3397_v55, %v3341_v14  ;;  %v3772_v61 = vadd.f32 %v3745_v56, %v3688_v35 }
 0x6cb   : > { %v3438_v16 = vadd.f32 %v3411_v60, %v3340_v18 }
 0x6cc   : > { %v3479_v38 = vpop.permute.xlu1 %3478 }
 0x6cd   : > { %v3481_v37 = vpop.permute.xlu0 %3480  ;;  %v3494_v43 = vsel %vm3482_vm4, %v3477_v59, %v3479_v38 }
 0x6ce   : > { %v3495_v29 = vsel %vm3482_vm4, %v3479_v38, %v3481_v37  ;;  %v3521_v21 = vadd.f32 %v3494_v43, %v3437_v45  ;;  %v3523_v57 = vadd.f32 %v3481_v37, %v3439_v41 }
 0x6cf   : > { %v3522_v47 = vadd.f32 %v3495_v29, %v3438_v16  ;;  %v4100_v29 = vrot.slane %v4091_v15, %v7532_v44 }
 0x6d0   : > { %v3563_v28 = vpop.permute.xlu1 %3562 }
 0x6d1   : > { %v3565_v4 = vpop.permute.xlu0 %3564  ;;  %v3578_v49 = vsel %vm3566_vm5, %v3561_v5, %v3563_v28 }
 0x6d2   : > { %v3579_v39 = vsel %vm3566_vm5, %v3563_v28, %v3565_v4  ;;  %v3605_v33 = vadd.f32 %v3578_v49, %v3521_v21  ;;  %v3607_v2 = vadd.f32 %v3565_v4, %v3523_v57  ;;  %v3856_v4 = vadd.f32 %v3829_v32, %v3772_v61 }
 0x6d3   : > { %v3606_v5 = vadd.f32 %v3579_v39, %v3522_v47 }
 0x6d4   : > { %v3647_v40 = vpop.permute.xlu1 %3646 }
 0x6d5   : > { %v3649_v10 = vpop.permute.xlu0 %3648  ;;  %v3662_v59 = vsel %vm3650_vm7, %v3645_v13, %v3647_v40 }
 0x6d6   : > { %v3663_v31 = vsel %vm3650_vm7, %v3647_v40, %v3649_v10  ;;  %v3689_v48 = vadd.f32 %v3662_v59, %v3605_v33  ;;  %v3691_v51 = vadd.f32 %v3649_v10, %v3607_v2 }
 0x6d7   : > { %v3690_v13 = vadd.f32 %v3663_v31, %v3606_v5 }
 0x6d8   : > { %v3731_v54 = vpop.permute.xlu1 %3730 }
 0x6d9   : > { %v3733_v42 = vpop.permute.xlu0 %3732  ;;  %v3746_v3 = vsel %vm3734_vm8, %v3729_v12, %v3731_v54  ;;  %v3913_v12 = vsel %vm3902_vm10, %v7663_v19, %v7667_v46 }
 0x6da   : > { %v3747_v63 = vsel %vm3734_vm8, %v3731_v54, %v3733_v42  ;;  %v3773_v23 = vadd.f32 %v3746_v3, %v3689_v48  ;;  %v3775_v20 = vadd.f32 %v3733_v42, %v3691_v51  ;;  %v3940_v10 = vadd.f32 %v3913_v12, %v3856_v4 }
 0x6db   : > { %v3774_v38 = vadd.f32 %v3747_v63, %v3690_v13 }
 0x6dc   : > { %v3815_v62 = vpop.permute.xlu1 %3814  ;;  %v4024_v6 = vadd.f32 %v3997_v8, %v3940_v10 }
 0x6dd   : > { %v3817_v7 = vpop.permute.xlu0 %3816  ;;  %v3830_v34 = vsel %vm3818_vm9, %v3813_v26, %v3815_v62 }
 0x6de   : > { %v3831_v55 = vsel %vm3818_vm9, %v3815_v62, %v3817_v7  ;;  %v3857_v11 = vadd.f32 %v3830_v34, %v3773_v23  ;;  %v3859_v40 = vadd.f32 %v3817_v7, %v3775_v20 }
 0x6df   : > { %v3858_v1 = vadd.f32 %v3831_v55, %v3774_v38 }
 0x6e0   : > { %v3899_v25 = vpop.permute.xlu1 %3898 }
 0x6e1   : > { %v3914_v37 = vsel %vm3902_vm10, %v7667_v46, %v3899_v25  ;;  %v3901_v28 = vpop.permute.xlu0 %3900 }
 0x6e2   : > { %v3915_v26 = vsel %vm3902_vm10, %v3899_v25, %v3901_v28  ;;  %v3941_v22 = vadd.f32 %v3914_v37, %v3857_v11  ;;  %v3943_v27 = vadd.f32 %v3901_v28, %v3859_v40 }
 0x6e3   : > { %v3942_v14 = vadd.f32 %v3915_v26, %v3858_v1 }
 0x6e4   : > { %v3983_v19 = vpop.permute.xlu1 %3982 }
 0x6e5   : > { %v3998_v46 = vsel %vm3986_vm6, %v7673_v50, %v3983_v19  ;;  %v3985_v60 = vpop.permute.xlu0 %3984 }
 0x6e6   : > { %v4025_v18 = vadd.f32 %v3998_v46, %v3941_v22  ;;  %v3999_v43 = vsel %vm3986_vm6, %v3983_v19, %v3985_v60  ;;  %v4027_v52 = vadd.f32 %v3985_v60, %v3943_v27 }
 0x6e7   : > { %v4026_v45 = vadd.f32 %v3999_v43, %v3942_v14 }
 0x6e8   : > { %v4092_v24 = vcombine.low %v4024_v6, %v4025_v18 }
 0x6e9   : > { %v4093_v41 = vcombine.low %v4026_v45, %v4027_v52 }
 0x6ea   : > { %v4107_v54 = vrot.slane %v4092_v24, %v7532_v44 }
 0x6eb   : > { %v4114_v50 = vrot.slane %v4093_v41, %v7532_v44 }
 0x6ec   : > { %v4115_v9 = vcombine.low %v4100_v29, %v4107_v54 }
 0x6ed   : > { %v4129_v49 = vrot.slane %v4114_v50, %v7532_v44 }
 0x6ee   : > { %v4122_v16 = vrot.slane %v4115_v9, %v7532_v44 }
 0x6f0   : > { %v4130_v42 = vcombine.low %v4122_v16, %v4129_v49 }
 0x6f2   : > { %4138 = vst.msk [vmem:[%s7655_s24 + $0x8] sm:$0x3f] %vm4136_vm11, %v4130_v42 }
 0x6f3   : > { %4982 = shalt.err (!%p4979_p3)
}
 0x6f4   : > { %s4983_s21 = scalar_lea.hbm %s7731_s15, 224  ;;  %s4987_s22 = scalar_lea.hbm %s7783_s7, 448 }
 0x6f5   : > { %p4984_p4 = scmp.ne.s32.totalorder %s7731_s15, %s4983_s21  ;;  %p4988_p9 = scmp.lt.u32.totalorder %s7731_s15, %s7783_s7 }
 0x6f6   : > { %p4989_p10 = scmp.lt.u32.totalorder %s4987_s22, %s4983_s21  ;;  %p4991_p12 = scmp.lt.u32.totalorder %s4983_s21, %s7731_s15 }
 0x6f7   : > { %p4985_p7 = pnand %p4984_p4, %p5126_p5 }
 0x6f8   : > { %p4990_p11 = por %p4989_p10, %p4988_p9 }
 0x6f9   : > { %p4986_p8 = pneg %p4985_p7 }
 0x6fa   : > { %p4992_p13 = por %p4991_p12, %p4990_p11 }
 0x6fc   : > { %p4993_p0 = pnand %p4992_p13, %p4986_p8 }
 0x6fe   : > { %4996 = shalt.err (!%p4993_p0)
}
 0x6ff   : > { %4918 = dma.vmem_to_hbm [thread:$0]  (%p5126_p5), %s7733_s25, 224, %s7731_s15, %s4140_s6  }
 0x700 PF: > { %p4924_p1 = scmp.ge.s32.totalorder %s5031_s29, 2  ;;  %s4166_s30 = sand.u32 1, %s5019_s26  }
 0x701   : > { %s4167_s10 = scalar_lea.sflag [#allocation4], %s4166_s30 }
 0x702   : > { %p4921_p2 = pnand %p4924_p1, %p5130_p6 }
 0x704   : > { %5014 = dma.done.wait (!%p4921_p2), %s4167_s10, 224  }
 0x705   : > { %5016 = vsyncadd (!%p4921_p2), %s4167_s10, 4294967072  ;;  %p18_p3 = scmp.ge.s32.totalorder %s5113_s8, 4   ;;  %s7786_s26 = smov %s5023_s27 }
 0x706   : > { %s7787_s27 = smov %s5027_s28  ;;  %s7788_s28 = smov %s5124_s11 }
 0x707   : > { %s7789_s29 = smov %s5113_s8  ;;  %20 = sbr.rel (!%p18_p3) target bundleno = 5 (0x5), region = 91 }
 0x70e   :  { %4172 = vsyncpa [#allocation4], 1 }
 0x70f   :  { %4174 = vsyncpa [#allocation4 + $0x1], 1 }

</bundles_post_ra>
